<compile_context>
chip_gen: v7x
topology: tpu7x:2x2x1
jax: 0.10.0
libtpu: 0.0.40
codegen_flags: <defaults>
</compile_context>

<pallas_src>
import jax
import jax.numpy as jnp
from jax.experimental import pallas as pl
from jax.experimental.pallas import tpu as pltpu


_TM = 1024          # output-row tile (sublane axis of the G tile)
_TK = 512           # reduction tile  (lane axis of the G tile)
_PAD_NODES = 1024   # lcm(_TM, _TK): node dims are used as both M and K
_PAD_D = 128        # lane-dense embedding width


def _round_up(x, m):
    return ((x + m - 1) // m) * m


def _pad2d(x, rows, cols, dtype):
    """Zero-pad a 2-D array to (rows, cols) and cast to dtype."""
    out = jnp.zeros((rows, cols), dtype=dtype)
    return out.at[: x.shape[0], : x.shape[1]].set(x.astype(dtype))


def _propagate_kernel(g_ref, e_ref, out_ref, acc_ref):
    """One (TM, D) tile of E_out = G_block @ E_in, reduced over the K grid axis.

    bf16 x bf16 operands on the MXU, f32 accumulation in VMEM scratch, bf16
    output written once in the finalize step.
    """
    k = pl.program_id(1)

    @pl.when(k == 0)
    def _():
        acc_ref[...] = jnp.zeros_like(acc_ref)

    acc_ref[...] += jnp.dot(
        g_ref[...], e_ref[...], preferred_element_type=jnp.float32
    )

    @pl.when(k == pl.num_programs(1) - 1)
    def _():
        out_ref[...] = acc_ref[...].astype(out_ref.dtype)


def block_propagate(g_bf16, e_bf16, *, tm=_TM, tk=_TK):
    """(M, K) bf16 graph block  @  (K, D) bf16 embeddings  ->  (M, D) bf16."""
    M, K = g_bf16.shape
    K2, D = e_bf16.shape
    assert K == K2
    assert M % tm == 0 and K % tk == 0 and D % 128 == 0, "caller must pad shapes"

    cost = pl.CostEstimate(
        flops=2 * M * K * D,
        transcendentals=0,
        # G stream + E re-fetched once per row tile + bf16 output write.
        bytes_accessed=M * K * 2 + (M // tm) * K * D * 2 + M * D * 2,
    )

    return pl.pallas_call(
        _propagate_kernel,
        out_shape=jax.ShapeDtypeStruct((M, D), jnp.bfloat16),
        grid_spec=pltpu.PrefetchScalarGridSpec(
            num_scalar_prefetch=0,
            grid=(M // tm, K // tk),
            in_specs=[
                pl.BlockSpec((tm, tk), lambda i, k: (i, k)),  # graph block tile
                pl.BlockSpec((tk, D), lambda i, k: (k, 0)),   # embedding tile
            ],
            out_specs=pl.BlockSpec((tm, D), lambda i, k: (i, 0)),
            scratch_shapes=[pltpu.VMEM((tm, D), jnp.float32)],  # f32 accumulator
        ),
        compiler_params=pltpu.CompilerParams(
            dimension_semantics=("parallel", "arbitrary"),
            # Footprint ~3.3 MiB (G 2x1 MiB, E 2x128 KiB, out 2x256 KiB, acc
            # 512 KiB).  48 MiB stays safely inside every generation's budget
            # (incl. v7x's 64 MiB/TC) while leaving pipelining headroom.
            vmem_limit_bytes=48 * 1024 * 1024,
        ),
        cost_estimate=cost,
    )(g_bf16, e_bf16)


def xavier_uniform(key, shape, dtype=jnp.float32):
    fan_in, fan_out = shape[0], shape[1]
    bound = (6.0 / (fan_in + fan_out)) ** 0.5
    return jax.random.uniform(key, shape, dtype=dtype, minval=-bound, maxval=bound)


class LightGCN:
    """JAX/Pallas port of the PyTorch LightGCN module (forward pass only)."""

    def __init__(self, n_users, n_items, latent_dim, n_layers, graph, key):
        self.n_users = n_users
        self.n_items = n_items
        self.latent_dim = latent_dim
        self.n_layers = n_layers
        self.graph = graph.astype(jnp.float32)

        # Padded sizes.  Node dims feed both the M and K axes of the two
        # rectangular propagation matmuls, so pad to lcm(TM, TK).
        self._up = _round_up(n_users, _PAD_NODES)
        self._ip = _round_up(n_items, _PAD_NODES)
        self._dp = _round_up(latent_dim, _PAD_D)

        # LightGCN's normalized adjacency is strictly bipartite: the (user,user)
        # and (item,item) diagonal blocks are structurally zero, so propagation
        # only needs the two off-diagonal rectangular blocks.
        diag_mass = float(
            jnp.max(jnp.abs(self.graph[:n_users, :n_users]))
            + jnp.max(jnp.abs(self.graph[n_users:, n_users:]))
        )
        assert diag_mass == 0.0, "graph must be bipartite (zero diagonal blocks)"

        # Extract, pad and cast the graph blocks ONCE (not per forward pass).
        g_ui = self.graph[:n_users, n_users:]   # (n_users, n_items)
        g_iu = self.graph[n_users:, :n_users]   # (n_items, n_users)
        self._g_ui = _pad2d(g_ui, self._up, self._ip, jnp.bfloat16)
        self._g_iu = _pad2d(g_iu, self._ip, self._up, jnp.bfloat16)

        k_user, k_item = jax.random.split(key)
        self.embedding_user = xavier_uniform(k_user, (n_users, latent_dim))
        self.embedding_item = xavier_uniform(k_item, (n_items, latent_dim))

    def computer(self):
        """Propagate embeddings through the graph (mean over 0..n_layers hops)."""
        # Padded f32 layer-mean accumulators (start at E_0).
        u_acc = _pad2d(self.embedding_user, self._up, self._dp, jnp.float32)
        i_acc = _pad2d(self.embedding_item, self._ip, self._dp, jnp.float32)
        # bf16 copies stream through the propagation kernels.
        u_cur = u_acc.astype(jnp.bfloat16)
        i_cur = i_acc.astype(jnp.bfloat16)

        # n_layers is a static Python int -> unrolled; 2 pallas_calls per hop.
        for _ in range(self.n_layers):
            u_next = block_propagate(self._g_ui, i_cur)   # users <- items
            i_next = block_propagate(self._g_iu, u_cur)   # items <- users
            u_acc = u_acc + u_next.astype(jnp.float32)
            i_acc = i_acc + i_next.astype(jnp.float32)
            u_cur, i_cur = u_next, i_next

        scale = 1.0 / float(self.n_layers + 1)
        users = (u_acc * scale)[: self.n_users, : self.latent_dim]
        items = (i_acc * scale)[: self.n_items, : self.latent_dim]
        return users, items

    def get_users_ratings(self, users):
        all_users, all_items = self.computer()
        users_emb = jnp.take(all_users, users, axis=0)
        return users_emb @ all_items.T

    def forward(self, users, pos_items, neg_items):
        all_users, all_items = self.computer()
        users_emb = jnp.take(all_users, users, axis=0)
        pos_emb = jnp.take(all_items, pos_items, axis=0)
        neg_emb = jnp.take(all_items, neg_items, axis=0)
        users_emb_initial = jnp.take(self.embedding_user, users, axis=0)
        pos_emb_initial = jnp.take(self.embedding_item, pos_items, axis=0)
        neg_emb_initial = jnp.take(self.embedding_item, neg_items, axis=0)
        return (
            users_emb,
            pos_emb,
            neg_emb,
            users_emb_initial,
            pos_emb_initial,
            neg_emb_initial,
        )


def build_normalized_graph(key, n_users, n_items):
    """Dense symmetric-normalized bipartite adjacency D^{-1/2} A D^{-1/2}."""
    R = jax.random.bernoulli(key, p=0.1, shape=(n_users, n_items)).astype(jnp.float32)
    N = n_users + n_items
    A = jnp.zeros((N, N), dtype=jnp.float32)
    A = A.at[:n_users, n_users:].set(R)
    A = A.at[n_users:, :n_users].set(R.T)
    deg = jnp.sum(A, axis=1)
    d_inv_sqrt = jnp.where(deg > 0, 1.0 / jnp.sqrt(jnp.maximum(deg, 1e-12)), 0.0)
    return d_inv_sqrt[:, None] * A * d_inv_sqrt[None, :]


if __name__ == "__main__":
    n_users = 64
    n_items = 64
    latent_dim = 128
    n_layers = 3
    batch = 8

    root = jax.random.PRNGKey(0)
    k_graph, k_model, k_u, k_p, k_n = jax.random.split(root, 5)

    graph = build_normalized_graph(k_graph, n_users, n_items)
    model = LightGCN(n_users, n_items, latent_dim, n_layers, graph, k_model)

    users = jax.random.randint(k_u, (batch,), 0, n_users, dtype=jnp.int32)
    pos_items = jax.random.randint(k_p, (batch,), 0, n_items, dtype=jnp.int32)
    neg_items = jax.random.randint(k_n, (batch,), 0, n_items, dtype=jnp.int32)

    outs = model.forward(users, pos_items, neg_items)
    for o in outs:
        jax.block_until_ready(o)

    # Sanity: shapes of BPR embeddings.
    assert outs[0].shape == (batch, latent_dim)
    assert outs[1].shape == (batch, latent_dim)
    assert outs[2].shape == (batch, latent_dim)
    assert outs[3].shape == (batch, latent_dim)

    # Reference check of the propagation (f32 JAX) vs the bf16-streamed kernel.
    all_emb = jnp.concatenate([model.embedding_user, model.embedding_item], axis=0)
    embs = [all_emb]
    cur = all_emb
    for _ in range(n_layers):
        cur = graph @ cur
        embs.append(cur)
    ref = jnp.mean(jnp.stack(embs, axis=1), axis=1)
    got = jnp.concatenate(model.computer(), axis=0)
    max_err = float(jnp.max(jnp.abs(ref - got)))
    assert max_err < 5e-2, f"propagation mismatch: {max_err}"

    print("KERNEL_OK")
</pallas_src>

<mosaic_0001>
module attributes {stable_mosaic.version = 11 : i64} {
  func.func @_propagate_kernel(%arg0: i32, %arg1: i32, %arg2: memref<1024x512xbf16, #tpu.memory_space<vmem>>, %arg3: memref<512x128xbf16, #tpu.memory_space<vmem>>, %arg4: memref<1024x128xbf16, #tpu.memory_space<vmem>>, %arg5: memref<1024x128xf32, #tpu.memory_space<vmem>>) attributes {dimension_semantics = [#tpu.dimension_semantics<parallel>, #tpu.dimension_semantics<arbitrary>], iteration_bounds = array<i64: 1, 2>, scalar_prefetch = 0 : i64, scratch_operands = 1 : i64, tpu.core_type = #tpu.core_type<tc>, window_params = [{transform_indices = @transform_0, window_bounds = array<i64: 1024, 512>}, {transform_indices = @transform_1, window_bounds = array<i64: 512, 128>}, {transform_indices = @transform_2, window_bounds = array<i64: 1024, 128>}]} {
    %c0_i32 = arith.constant 0 : i32
    %0 = arith.cmpi eq, %arg1, %c0_i32 : i32
    %1 = arith.extui %0 : i1 to i32
    %c0_i32_0 = arith.constant 0 : i32
    %2 = arith.cmpi ne, %1, %c0_i32_0 : i32
    scf.if %2 {
      %cst_9 = arith.constant 0.000000e+00 : f32
      %12 = vector.broadcast %cst_9 : f32 to vector<1024x128xf32>
      %c0_10 = arith.constant 0 : index
      %c0_11 = arith.constant 0 : index
      %13 = vector.load %arg5[%c0_10, %c0_11] : memref<1024x128xf32, #tpu.memory_space<vmem>>, vector<1024x128xf32>
      tpu.vector_store %arg5[%c0_10, %c0_11], %12 {strides = array<i32>} : memref<1024x128xf32, #tpu.memory_space<vmem>>, vector<1024x128xf32>,
    } else {
    }
    %c0 = arith.constant 0 : index
    %c0_1 = arith.constant 0 : index
    %3 = vector.load %arg5[%c0, %c0_1] : memref<1024x128xf32, #tpu.memory_space<vmem>>, vector<1024x128xf32>
    %c0_2 = arith.constant 0 : index
    %c0_3 = arith.constant 0 : index
    %4 = vector.load %arg2[%c0_2, %c0_3] : memref<1024x512xbf16, #tpu.memory_space<vmem>>, vector<1024x512xbf16>
    %c0_4 = arith.constant 0 : index
    %c0_5 = arith.constant 0 : index
    %5 = vector.load %arg3[%c0_4, %c0_5] : memref<512x128xbf16, #tpu.memory_space<vmem>>, vector<512x128xbf16>
    %cst = arith.constant dense<0.000000e+00> : vector<1024x128xf32>
    %6 = tpu.matmul %4, %5, %cst {dimension_numbers = #tpu.dot_dimension_numbers<[1], [0], [0], [1], [0, 0, 1, 1], [], []>} : vector<1024x512xbf16>, vector<512x128xbf16>, vector<1024x128xf32> -> vector<1024x128xf32>
    %7 = arith.addf %3, %6 : vector<1024x128xf32>
    %c0_6 = arith.constant 0 : index
    %c0_7 = arith.constant 0 : index
    %8 = vector.load %arg5[%c0_6, %c0_7] : memref<1024x128xf32, #tpu.memory_space<vmem>>, vector<1024x128xf32>
    tpu.vector_store %arg5[%c0_6, %c0_7], %7 {strides = array<i32>} : memref<1024x128xf32, #tpu.memory_space<vmem>>, vector<1024x128xf32>,
    %c1_i32 = arith.constant 1 : i32
    %9 = arith.cmpi eq, %arg1, %c1_i32 : i32
    %10 = arith.extui %9 : i1 to i32
    %c0_i32_8 = arith.constant 0 : i32
    %11 = arith.cmpi ne, %10, %c0_i32_8 : i32
    scf.if %11 {
      %c0_9 = arith.constant 0 : index
      %c0_10 = arith.constant 0 : index
      %12 = vector.load %arg5[%c0_9, %c0_10] : memref<1024x128xf32, #tpu.memory_space<vmem>>, vector<1024x128xf32>
      %13 = arith.truncf %12 : vector<1024x128xf32> to vector<1024x128xbf16>
      %c0_11 = arith.constant 0 : index
      %c0_12 = arith.constant 0 : index
      %14 = vector.load %arg4[%c0_11, %c0_12] : memref<1024x128xbf16, #tpu.memory_space<vmem>>, vector<1024x128xbf16>
      tpu.vector_store %arg4[%c0_11, %c0_12], %13 {strides = array<i32>} : memref<1024x128xbf16, #tpu.memory_space<vmem>>, vector<1024x128xbf16>,
    } else {
    }
    return
  }
  func.func @transform_0(%arg0: i32, %arg1: i32) -> (i32, i32) {
    %c0_i32 = arith.constant 0 : i32
    return %arg0, %arg1 : i32, i32
  }
  func.func @transform_1(%arg0: i32, %arg1: i32) -> (i32, i32) {
    %c0_i32 = arith.constant 0 : i32
    %c0_i32_0 = arith.constant 0 : i32
    return %arg1, %c0_i32 : i32, i32
  }
  func.func @transform_2(%arg0: i32, %arg1: i32) -> (i32, i32) {
    %c0_i32 = arith.constant 0 : i32
    %c0_i32_0 = arith.constant 0 : i32
    return %arg0, %c0_i32 : i32, i32
  }
}

</mosaic_0001>

<bundles_post_ra>
// kernel: tpu_custom_call.1
= control target key start
LH: loop header
LB: loop body
LE: loop exit
PB: predicated region body
PF: predicated region fallthrough
CT: control target
= control target key end

     0   :  { %7 = vsyncpa [#allocation4], 0  ;;  %s6751_s0 = inlined_call_operand.hbm [shape: bf16[1024,1024], index: 0, kind: input, shape index: {}]   ;;  %s6752_s1 = inlined_call_operand.hbm [shape: bf16[1024,128], index: 1, kind: input, shape index: {}]   ;;  %s6753_s2 = inlined_call_operand.hbm [shape: bf16[1024,128], index: 2, kind: output, shape index: {}]  }
   0x1   :  { %9 = vsyncpa [#allocation4 + $0x1], 0 }
   0x2   :  { %10 = vsyncpa [#allocation7], 0 }
   0x3   :  { %12 = vsyncpa [#allocation7 + $0x1], 0 }
   0x4   :  { %13 = vsyncpa [#allocation5], 0  ;;  %s6098_s9 = smov 0   ;;  %s6100_s10 = smov 0  }
   0x5   :  { %s6102_s11 = smov 0   ;;  %s6104_s12 = smov 0  }
   0x6   :  { %s6106_s13 = smov 0   ;;  %s6108_s14 = smov 0  }
   0x7 LB: > { %s4486_s15 = sadd.s32 4294967295, %s6069_s14   ;;  %s28_s16 = sadd.s32 1, %s6065_s13  ;;  %s6069_s14 = sphi %s6108_s14, %s19_s14   ;;  %s6065_s13 = sphi %s6106_s13, %s6766_s13   ;;  %s6061_s12 = sphi %s6104_s12, %s6765_s12   ;;  %s6057_s11 = sphi %s6102_s11, %s6764_s11   ;;  %s6053_s10 = sphi %s6100_s10, %s6763_s10   ;;  %s6049_s9 = sphi %s6098_s9, %s6762_s9  }
   0x8   : > { %p29_p0 = scmp.ge.s32.totalorder %s28_s16, 2  ;;  %s40_s17 = sadd.s32 1, %s6057_s11 }
   0x9   : > { %p47_p1 = scmp.ne.s32.totalorder %s6057_s11, %s6053_s10  ;;  %p48_p2 = scmp.eq.s32.totalorder %s6069_s14, 0 }
   0xa   : > { %s6768_s16 = smov (%p29_p0, %s28_s16), 0  ;;  %p53_p4 = scmp.ne.s32.totalorder %s6053_s10, %s6049_s9 }
   0xb   : > { %p6134_p3 = por %p48_p2, %p47_p1  ;;  %s36_s19 = ssub.s32 %s6065_s13, %s6768_s16 }
   0xc   : > { %p54_p5 = scmp.eq.s32.totalorder %s4486_s15, 0  ;;  %p38_p6 = scmp.eq.s32.totalorder %s36_s19, 0 }
   0xd   : > { %p5448_p8 = scmp.lt.s32.totalorder %s6069_s14, 2  ;;  %s6152_s22 = sand.u32 1, %s6057_s11  }
   0xe   : > { %p6143_p7 = por %p54_p5, %p53_p4  ;;  %s4920_s23 = sshll.u32 %s6065_s13, 8 }
   0xf   : > { %s6149_s21 = scalar_select %p38_p6, %s6057_s11, %s40_s17  }
  0x10   : > { %s6756_s20 = scalar_select %p6143_p7, 1, 0 }
  0x11   : > { %s4489_s24 = sshll.u32 %s6152_s22, 11  ;;  %s6159_s27 = scalar_lea.hbm %s6751_s0, %s4920_s23 }
  0x12   : > { %s133_s28 = scalar_lea.vmem [#allocation3], %s4489_s24  ;;  %p6163_p9 = pnand %p5448_p8, %p6134_p3 }
  0x13   : > { %s143_s29 = sshll.u32 %s133_s28, 4  ;;  %s130_s3 = scalar_lea.sflag [#allocation4], %s6152_s22  ;;  %s6167_s29 = int_to_ptr.vmem [resolvable:$true] %s143_s29 }
  0x14   : > { %s5925_s4 = scalar_lea.hbm %s6159_s27, 32768  ;;  %p5927_p12 = pneg %p6163_p9 }
  0x15   : > { %p5926_p11 = scmp.ne.s32.totalorder %s6159_s27, %s5925_s4  ;;  %s5930_s7 = scalar_lea.hbm %s6751_s0, 65536 }
  0x16   : > { %p5931_p1 = scmp.lt.u32.totalorder %s6159_s27, %s6751_s0  ;;  %p5932_p2 = scmp.lt.u32.totalorder %s5930_s7, %s5925_s4 }
  0x17   : > { %p5928_p13 = pnand %p5927_p12, %p5926_p11  ;;  %p5934_p4 = scmp.lt.u32.totalorder %s5925_s4, %s6159_s27 }
  0x18   : > { %p5933_p3 = por %p5932_p2, %p5931_p1 }
  0x19   : > { %p5929_p0 = pneg %p5928_p13 }
  0x1a   : > { %p5935_p5 = por %p5934_p4, %p5933_p3 }
  0x1c   : > { %p5936_p6 = pnand %p5935_p5, %p5929_p0 }
  0x1e   : > { %5939 = shalt.err (!%p5936_p6)
}
  0x1f   : > { %s5940_s17 = scalar_lea.vmem %s6167_s29, 32768  ;;  %s6071_s18 = smov [#allocation3]  }
  0x20   : > { %p5941_p8 = scmp.ne.s32.totalorder %s6167_s29, %s5940_s17  ;;  %s5945_s19 = sshll.u32 %s6071_s18, 4  ;;  %s5946_s19 = int_to_ptr.vmem [resolvable:$false] %s5945_s19 }
  0x21   : > { %s5947_s23 = scalar_lea.vmem %s5946_s19, 65536  ;;  %p5948_p10 = scmp.lt.s32.totalorder %s6167_s29, %s5946_s19 }
  0x22   : > { %p5943_p11 = pnand %p5941_p8, %p5927_p12  ;;  %p5949_p1 = scmp.lt.s32.totalorder %s5947_s23, %s5940_s17 }
  0x24   : > { %p5944_p13 = pneg %p5943_p11  ;;  %p5950_p2 = por %p5949_p1, %p5948_p10 }
  0x26   : > { %p5951_p3 = pnand %p5950_p2, %p5944_p13 }
  0x28   : > { %5954 = shalt.err (!%p5951_p3)
}
  0x29   : > { %s6072_s24 = smov 512   ;;  %s6073_s25 = smov 256  }
  0x2a   : > { %s6074_s26 = smov 16   ;;  %p172_p0 = scmp.lt.s32.totalorder %s6069_s14, 3 }
  0x2b   : > { %5444 = dma.hbm_to_vmem [thread:$0]  (!%p6163_p9), %s6159_s27, 32768, %s6167_s29, %s130_s3, %s6072_s24, %s6073_s25, %s6074_s26  }
  0x2c   : > { %s4492_s28 = sshll.u32 %s6152_s22, 8  ;;  %s4921_s4 = sshll.u32 %s6065_s13, 12 }
  0x2d   : > { %p6758_p10 = scmp.ge.s32.totalorder %s6069_s14, 1  ;;  %s6210_s8 = scalar_lea.hbm %s6752_s1, %s4921_s4 }
  0x2e   : > { %s157_s9 = scalar_lea.vmem [#allocation6], %s4492_s28  ;;  %s154_s27 = scalar_lea.sflag [#allocation7], %s6152_s22 }
  0x2f   : > { %p6203_p4 = pnand %p6758_p10, %p172_p0  ;;  %s164_s17 = sshll.u32 %s157_s9, 4  ;;  %s6212_s17 = int_to_ptr.vmem [resolvable:$true] %s164_s17 }
  0x30   : > { %s5955_s29 = scalar_lea.hbm %s6210_s8, 4096  ;;  %s5960_s19 = scalar_lea.hbm %s6752_s1, 8192 }
  0x31   : > { %p5956_p5 = scmp.ne.s32.totalorder %s6210_s8, %s5955_s29  ;;  %p5961_p11 = scmp.lt.u32.totalorder %s6210_s8, %s6752_s1 }
  0x32   : > { %p5962_p13 = scmp.lt.u32.totalorder %s5960_s19, %s5955_s29  ;;  %p5964_p2 = scmp.lt.u32.totalorder %s5955_s29, %s6210_s8 }
  0x33   : > { %p5958_p6 = pnand %p5956_p5, %p5927_p12 }
  0x34   : > { %p5963_p1 = por %p5962_p13, %p5961_p11 }
  0x35   : > { %p5959_p8 = pneg %p5958_p6 }
  0x36   : > { %p5965_p3 = por %p5964_p2, %p5963_p1 }
  0x38   : > { %p5966_p0 = pnand %p5965_p3, %p5959_p8 }
  0x3a   : > { %5969 = shalt.err (!%p5966_p0)
}
  0x3b   : > { %s5970_s25 = scalar_lea.vmem %s6212_s17, 4096  ;;  %s6075_s26 = smov [#allocation6]  }
  0x3c   : > { %p5971_p10 = scmp.ne.s32.totalorder %s6212_s17, %s5970_s25  ;;  %s5975_s28 = sshll.u32 %s6075_s26, 4  ;;  %s5976_s28 = int_to_ptr.vmem [resolvable:$false] %s5975_s28 }
  0x3d   : > { %s5977_s4 = scalar_lea.vmem %s5976_s28, 8192  ;;  %p5978_p7 = scmp.lt.s32.totalorder %s6212_s17, %s5976_s28 }
  0x3e   : > { %p5973_p5 = pnand %p5971_p10, %p5927_p12  ;;  %p5979_p11 = scmp.lt.s32.totalorder %s5977_s4, %s5970_s25 }
  0x40   : > { %p5974_p6 = pneg %p5973_p5  ;;  %p5980_p13 = por %p5979_p11, %p5978_p7 }
  0x42   : > { %p5981_p1 = pnand %p5980_p13, %p5974_p6 }
  0x44   : > { %5984 = shalt.err (!%p5981_p1)
}
  0x45   : > { %s6076_s6 = smov 64   ;;  %s6077_s7 = smov 4  }
  0x46   : > { %5447 = dma.hbm_to_vmem [thread:$0]  (!%p6163_p9), %s6210_s8, 4096, %s6212_s17, %s154_s27, %s6076_s6, %s6076_s6, %s6077_s7  }
  0x47   : > { %176 = sbr.rel (%p6203_p4) target bundleno = 982 (0x3d6), region = 28  ;;  %s178_s9 = sand.u32 (!%p6203_p4), 1, %s6053_s10  }
  0x48   : > { %s4496_s29 = sshll.u32 (!%p6203_p4), %s178_s9, 11  ;;  %s179_s3 = scalar_lea.sflag (!%p6203_p4), [#allocation4], %s178_s9 }
  0x49   : > { %s6243_s18 = scalar_lea.vmem (!%p6203_p4), [#allocation3], %s4496_s29  ;;  %p6760_p7 = scmp.ne.s32.totalorder (!%p6203_p4), %s6756_s20, 0 }
  0x4e   : > { %6036 = dma.done.wait (%p6760_p7), %s179_s3, 32768  }
  0x4f   : > { %6038 = vsyncadd (%p6760_p7), %s179_s3, 4294934528  ;;  %s4497_s19 = sshll.u32 %s178_s9, 8  ;;  %s188_s30 = scalar_lea.sflag [#allocation7], %s178_s9 }
  0x50   : > { %s6249_s22 = scalar_lea.vmem [#allocation6], %s4497_s19 }
  0x51   : > { %6040 = dma.done.wait (%p6760_p7), %s188_s30, 4096  }
  0x52   : > { %6042 = vsyncadd (%p6760_p7), %s188_s30, 4294963200  ;;  %p4498_p9 = scmp.ne.s32.totalorder %s6061_s12, 0 }
  0x53   : > { %v6078_v0 = vmov (!%p4498_p9), 0.0  }
  0x54   : > { %220 = sbr.rel (%p4498_p9) target bundleno = 148 (0x94), region = 40  ;;  %221 = vst [vmem:[#allocation2] sm:$0xff] (!%p4498_p9), %v6078_v0  ;;  %222 = vst [vmem:[#allocation2 + $0x8] sm:$0xff] (!%p4498_p9), %v6078_v0 }
  0x55   : > { %223 = vst [vmem:[#allocation2 + $0x10] sm:$0xff] (!%p4498_p9), %v6078_v0  ;;  %224 = vst [vmem:[#allocation2 + $0x18] sm:$0xff] (!%p4498_p9), %v6078_v0 }
  0x56   : > { %225 = vst [vmem:[#allocation2 + $0x20] sm:$0xff] (!%p4498_p9), %v6078_v0  ;;  %226 = vst [vmem:[#allocation2 + $0x28] sm:$0xff] (!%p4498_p9), %v6078_v0 }
  0x57   : > { %227 = vst [vmem:[#allocation2 + $0x30] sm:$0xff] (!%p4498_p9), %v6078_v0  ;;  %228 = vst [vmem:[#allocation2 + $0x38] sm:$0xff] (!%p4498_p9), %v6078_v0 }
  0x58   : > { %229 = vst [vmem:[#allocation2 + $0x40] sm:$0xff] (!%p4498_p9), %v6078_v0  ;;  %230 = vst [vmem:[#allocation2 + $0x48] sm:$0xff] (!%p4498_p9), %v6078_v0 }
  0x59   : > { %231 = vst [vmem:[#allocation2 + $0x50] sm:$0xff] (!%p4498_p9), %v6078_v0  ;;  %232 = vst [vmem:[#allocation2 + $0x58] sm:$0xff] (!%p4498_p9), %v6078_v0 }
  0x5a   : > { %233 = vst [vmem:[#allocation2 + $0x60] sm:$0xff] (!%p4498_p9), %v6078_v0  ;;  %234 = vst [vmem:[#allocation2 + $0x68] sm:$0xff] (!%p4498_p9), %v6078_v0 }
  0x5b   : > { %235 = vst [vmem:[#allocation2 + $0x70] sm:$0xff] %v6078_v0  ;;  %236 = vst [vmem:[#allocation2 + $0x78] sm:$0xff] %v6078_v0 }
  0x5c   : > { %237 = vst [vmem:[#allocation2 + $0x80] sm:$0xff] %v6078_v0  ;;  %238 = vst [vmem:[#allocation2 + $0x88] sm:$0xff] %v6078_v0 }
  0x5d   : > { %239 = vst [vmem:[#allocation2 + $0x90] sm:$0xff] %v6078_v0  ;;  %240 = vst [vmem:[#allocation2 + $0x98] sm:$0xff] %v6078_v0 }
  0x5e   : > { %241 = vst [vmem:[#allocation2 + $0xa0] sm:$0xff] %v6078_v0  ;;  %242 = vst [vmem:[#allocation2 + $0xa8] sm:$0xff] %v6078_v0 }
  0x5f   : > { %243 = vst [vmem:[#allocation2 + $0xb0] sm:$0xff] %v6078_v0  ;;  %244 = vst [vmem:[#allocation2 + $0xb8] sm:$0xff] %v6078_v0 }
  0x60   : > { %245 = vst [vmem:[#allocation2 + $0xc0] sm:$0xff] %v6078_v0  ;;  %246 = vst [vmem:[#allocation2 + $0xc8] sm:$0xff] %v6078_v0 }
  0x61   : > { %247 = vst [vmem:[#allocation2 + $0xd0] sm:$0xff] %v6078_v0  ;;  %248 = vst [vmem:[#allocation2 + $0xd8] sm:$0xff] %v6078_v0 }
  0x62   : > { %249 = vst [vmem:[#allocation2 + $0xe0] sm:$0xff] %v6078_v0  ;;  %250 = vst [vmem:[#allocation2 + $0xe8] sm:$0xff] %v6078_v0 }
  0x63   : > { %251 = vst [vmem:[#allocation2 + $0xf0] sm:$0xff] %v6078_v0  ;;  %252 = vst [vmem:[#allocation2 + $0xf8] sm:$0xff] %v6078_v0 }
  0x64   : > { %253 = vst [vmem:[#allocation2 + $0x100] sm:$0xff] %v6078_v0  ;;  %254 = vst [vmem:[#allocation2 + $0x108] sm:$0xff] %v6078_v0 }
  0x65   : > { %255 = vst [vmem:[#allocation2 + $0x110] sm:$0xff] %v6078_v0  ;;  %256 = vst [vmem:[#allocation2 + $0x118] sm:$0xff] %v6078_v0 }
  0x66   : > { %257 = vst [vmem:[#allocation2 + $0x120] sm:$0xff] %v6078_v0  ;;  %258 = vst [vmem:[#allocation2 + $0x128] sm:$0xff] %v6078_v0 }
  0x67   : > { %259 = vst [vmem:[#allocation2 + $0x130] sm:$0xff] %v6078_v0  ;;  %260 = vst [vmem:[#allocation2 + $0x138] sm:$0xff] %v6078_v0 }
  0x68   : > { %261 = vst [vmem:[#allocation2 + $0x140] sm:$0xff] %v6078_v0  ;;  %262 = vst [vmem:[#allocation2 + $0x148] sm:$0xff] %v6078_v0 }
  0x69   : > { %263 = vst [vmem:[#allocation2 + $0x150] sm:$0xff] %v6078_v0  ;;  %264 = vst [vmem:[#allocation2 + $0x158] sm:$0xff] %v6078_v0 }
  0x6a   : > { %265 = vst [vmem:[#allocation2 + $0x160] sm:$0xff] %v6078_v0  ;;  %266 = vst [vmem:[#allocation2 + $0x168] sm:$0xff] %v6078_v0 }
  0x6b   : > { %267 = vst [vmem:[#allocation2 + $0x170] sm:$0xff] %v6078_v0  ;;  %268 = vst [vmem:[#allocation2 + $0x178] sm:$0xff] %v6078_v0 }
  0x6c   : > { %269 = vst [vmem:[#allocation2 + $0x180] sm:$0xff] %v6078_v0  ;;  %270 = vst [vmem:[#allocation2 + $0x188] sm:$0xff] %v6078_v0 }
  0x6d   : > { %271 = vst [vmem:[#allocation2 + $0x190] sm:$0xff] %v6078_v0  ;;  %272 = vst [vmem:[#allocation2 + $0x198] sm:$0xff] %v6078_v0 }
  0x6e   : > { %273 = vst [vmem:[#allocation2 + $0x1a0] sm:$0xff] %v6078_v0  ;;  %274 = vst [vmem:[#allocation2 + $0x1a8] sm:$0xff] %v6078_v0 }
  0x6f   : > { %275 = vst [vmem:[#allocation2 + $0x1b0] sm:$0xff] %v6078_v0  ;;  %276 = vst [vmem:[#allocation2 + $0x1b8] sm:$0xff] %v6078_v0 }
  0x70   : > { %277 = vst [vmem:[#allocation2 + $0x1c0] sm:$0xff] %v6078_v0  ;;  %278 = vst [vmem:[#allocation2 + $0x1c8] sm:$0xff] %v6078_v0 }
  0x71   : > { %279 = vst [vmem:[#allocation2 + $0x1d0] sm:$0xff] %v6078_v0  ;;  %280 = vst [vmem:[#allocation2 + $0x1d8] sm:$0xff] %v6078_v0 }
  0x72   : > { %281 = vst [vmem:[#allocation2 + $0x1e0] sm:$0xff] %v6078_v0  ;;  %282 = vst [vmem:[#allocation2 + $0x1e8] sm:$0xff] %v6078_v0 }
  0x73   : > { %283 = vst [vmem:[#allocation2 + $0x1f0] sm:$0xff] %v6078_v0  ;;  %284 = vst [vmem:[#allocation2 + $0x1f8] sm:$0xff] %v6078_v0 }
  0x74   : > { %285 = vst [vmem:[#allocation2 + $0x200] sm:$0xff] %v6078_v0  ;;  %286 = vst [vmem:[#allocation2 + $0x208] sm:$0xff] %v6078_v0 }
  0x75   : > { %287 = vst [vmem:[#allocation2 + $0x210] sm:$0xff] %v6078_v0  ;;  %288 = vst [vmem:[#allocation2 + $0x218] sm:$0xff] %v6078_v0 }
  0x76   : > { %289 = vst [vmem:[#allocation2 + $0x220] sm:$0xff] %v6078_v0  ;;  %290 = vst [vmem:[#allocation2 + $0x228] sm:$0xff] %v6078_v0 }
  0x77   : > { %291 = vst [vmem:[#allocation2 + $0x230] sm:$0xff] %v6078_v0  ;;  %292 = vst [vmem:[#allocation2 + $0x238] sm:$0xff] %v6078_v0 }
  0x78   : > { %293 = vst [vmem:[#allocation2 + $0x240] sm:$0xff] %v6078_v0  ;;  %294 = vst [vmem:[#allocation2 + $0x248] sm:$0xff] %v6078_v0 }
  0x79   : > { %295 = vst [vmem:[#allocation2 + $0x250] sm:$0xff] %v6078_v0  ;;  %296 = vst [vmem:[#allocation2 + $0x258] sm:$0xff] %v6078_v0 }
  0x7a   : > { %297 = vst [vmem:[#allocation2 + $0x260] sm:$0xff] %v6078_v0  ;;  %298 = vst [vmem:[#allocation2 + $0x268] sm:$0xff] %v6078_v0 }
  0x7b   : > { %299 = vst [vmem:[#allocation2 + $0x270] sm:$0xff] %v6078_v0  ;;  %300 = vst [vmem:[#allocation2 + $0x278] sm:$0xff] %v6078_v0 }
  0x7c   : > { %301 = vst [vmem:[#allocation2 + $0x280] sm:$0xff] %v6078_v0  ;;  %302 = vst [vmem:[#allocation2 + $0x288] sm:$0xff] %v6078_v0 }
  0x7d   : > { %303 = vst [vmem:[#allocation2 + $0x290] sm:$0xff] %v6078_v0  ;;  %304 = vst [vmem:[#allocation2 + $0x298] sm:$0xff] %v6078_v0 }
  0x7e   : > { %305 = vst [vmem:[#allocation2 + $0x2a0] sm:$0xff] %v6078_v0  ;;  %306 = vst [vmem:[#allocation2 + $0x2a8] sm:$0xff] %v6078_v0 }
  0x7f   : > { %307 = vst [vmem:[#allocation2 + $0x2b0] sm:$0xff] %v6078_v0  ;;  %308 = vst [vmem:[#allocation2 + $0x2b8] sm:$0xff] %v6078_v0 }
  0x80   : > { %309 = vst [vmem:[#allocation2 + $0x2c0] sm:$0xff] %v6078_v0  ;;  %310 = vst [vmem:[#allocation2 + $0x2c8] sm:$0xff] %v6078_v0 }
  0x81   : > { %311 = vst [vmem:[#allocation2 + $0x2d0] sm:$0xff] %v6078_v0  ;;  %312 = vst [vmem:[#allocation2 + $0x2d8] sm:$0xff] %v6078_v0 }
  0x82   : > { %313 = vst [vmem:[#allocation2 + $0x2e0] sm:$0xff] %v6078_v0  ;;  %314 = vst [vmem:[#allocation2 + $0x2e8] sm:$0xff] %v6078_v0 }
  0x83   : > { %315 = vst [vmem:[#allocation2 + $0x2f0] sm:$0xff] %v6078_v0  ;;  %316 = vst [vmem:[#allocation2 + $0x2f8] sm:$0xff] %v6078_v0 }
  0x84   : > { %317 = vst [vmem:[#allocation2 + $0x300] sm:$0xff] %v6078_v0  ;;  %318 = vst [vmem:[#allocation2 + $0x308] sm:$0xff] %v6078_v0 }
  0x85   : > { %319 = vst [vmem:[#allocation2 + $0x310] sm:$0xff] %v6078_v0  ;;  %320 = vst [vmem:[#allocation2 + $0x318] sm:$0xff] %v6078_v0 }
  0x86   : > { %321 = vst [vmem:[#allocation2 + $0x320] sm:$0xff] %v6078_v0  ;;  %322 = vst [vmem:[#allocation2 + $0x328] sm:$0xff] %v6078_v0 }
  0x87   : > { %323 = vst [vmem:[#allocation2 + $0x330] sm:$0xff] %v6078_v0  ;;  %324 = vst [vmem:[#allocation2 + $0x338] sm:$0xff] %v6078_v0 }
  0x88   : > { %325 = vst [vmem:[#allocation2 + $0x340] sm:$0xff] %v6078_v0  ;;  %326 = vst [vmem:[#allocation2 + $0x348] sm:$0xff] %v6078_v0 }
  0x89   : > { %327 = vst [vmem:[#allocation2 + $0x350] sm:$0xff] %v6078_v0  ;;  %328 = vst [vmem:[#allocation2 + $0x358] sm:$0xff] %v6078_v0 }
  0x8a   : > { %329 = vst [vmem:[#allocation2 + $0x360] sm:$0xff] %v6078_v0  ;;  %330 = vst [vmem:[#allocation2 + $0x368] sm:$0xff] %v6078_v0 }
  0x8b   : > { %331 = vst [vmem:[#allocation2 + $0x370] sm:$0xff] %v6078_v0  ;;  %332 = vst [vmem:[#allocation2 + $0x378] sm:$0xff] %v6078_v0 }
  0x8c   : > { %333 = vst [vmem:[#allocation2 + $0x380] sm:$0xff] %v6078_v0  ;;  %334 = vst [vmem:[#allocation2 + $0x388] sm:$0xff] %v6078_v0 }
  0x8d   : > { %335 = vst [vmem:[#allocation2 + $0x390] sm:$0xff] %v6078_v0  ;;  %336 = vst [vmem:[#allocation2 + $0x398] sm:$0xff] %v6078_v0 }
  0x8e   : > { %337 = vst [vmem:[#allocation2 + $0x3a0] sm:$0xff] %v6078_v0  ;;  %338 = vst [vmem:[#allocation2 + $0x3a8] sm:$0xff] %v6078_v0 }
  0x8f   : > { %339 = vst [vmem:[#allocation2 + $0x3b0] sm:$0xff] %v6078_v0  ;;  %340 = vst [vmem:[#allocation2 + $0x3b8] sm:$0xff] %v6078_v0 }
  0x90   : > { %341 = vst [vmem:[#allocation2 + $0x3c0] sm:$0xff] %v6078_v0  ;;  %342 = vst [vmem:[#allocation2 + $0x3c8] sm:$0xff] %v6078_v0 }
  0x91   : > { %343 = vst [vmem:[#allocation2 + $0x3d0] sm:$0xff] %v6078_v0  ;;  %344 = vst [vmem:[#allocation2 + $0x3d8] sm:$0xff] %v6078_v0 }
  0x92   : > { %345 = vst [vmem:[#allocation2 + $0x3e0] sm:$0xff] %v6078_v0  ;;  %346 = vst [vmem:[#allocation2 + $0x3e8] sm:$0xff] %v6078_v0 }
  0x93   : > { %347 = vst [vmem:[#allocation2 + $0x3f0] sm:$0xff] %v6078_v0  ;;  %348 = vst [vmem:[#allocation2 + $0x3f8] sm:$0xff] %v6078_v0 }
  0x94 PF: > { %v5509_v1 = vld [vmem:[%s6249_s22] sm:$0xff]   ;;  %v6079_v2 = vmov 0   ;;  %v5511_v4 = vld [vmem:[%s6249_s22 + $0x8] sm:$0xff]   ;;  %v5513_v6 = vld [vmem:[%s6249_s22 + $0x10] sm:$0xff]   ;;  %p4787_p12 = scmp.ne.s32.totalorder %s6061_s12, 1 }
  0x95   : > { %2269 = vmatprep.subr.bf16.mxu0 %v6079_v2  ;;  %2814 = vmatprep.subr.bf16.mxu1 %v6079_v2  ;;  %v5510_v3 = vld [vmem:[%s6249_s22 + $0x80] sm:$0xff]   ;;  %v5512_v5 = vld [vmem:[%s6249_s22 + $0x88] sm:$0xff]   ;;  %v5514_v7 = vld [vmem:[%s6249_s22 + $0x90] sm:$0xff]  }
  0x96   : > { %2270 = vmatpush1.bf16.msra.mxu0 %v5509_v1  ;;  %2815 = vmatpush1.bf16.msra.mxu1 %v5510_v3  ;;  %v5515_v8 = vld [vmem:[%s6249_s22 + $0x18] sm:$0xff]   ;;  %v5517_v10 = vld [vmem:[%s6249_s22 + $0x20] sm:$0xff]   ;;  %v5519_v12 = vld [vmem:[%s6249_s22 + $0x28] sm:$0xff]  }
  0x97   : > { %2271 = vmatprep.subr.bf16.mxu0 %v6079_v2  ;;  %2816 = vmatprep.subr.bf16.mxu1 %v6079_v2  ;;  %v5516_v9 = vld [vmem:[%s6249_s22 + $0x98] sm:$0xff]   ;;  %v5518_v11 = vld [vmem:[%s6249_s22 + $0xa0] sm:$0xff]   ;;  %v5520_v13 = vld [vmem:[%s6249_s22 + $0xa8] sm:$0xff]  }
  0x98   : > { %v5521_v14 = vld [vmem:[%s6249_s22 + $0x30] sm:$0xff]   ;;  %v5523_v16 = vld [vmem:[%s6249_s22 + $0x38] sm:$0xff]   ;;  %v5525_v18 = vld [vmem:[%s6249_s22 + $0x40] sm:$0xff]  }
  0x99   : > { %v5522_v15 = vld [vmem:[%s6249_s22 + $0xb0] sm:$0xff]   ;;  %v5524_v17 = vld [vmem:[%s6249_s22 + $0xb8] sm:$0xff]   ;;  %v5526_v19 = vld [vmem:[%s6249_s22 + $0xc0] sm:$0xff]  }
  0x9a   : > { %2272 = vmatpush1.bf16.msra.mxu0 %v5511_v4  ;;  %2817 = vmatpush1.bf16.msra.mxu1 %v5512_v5  ;;  %v5543_v20 = vld [vmem:[%s6243_s18 + $0x4] ss:$16 sps:$4 sm:$0xff]   ;;  %v5527_v21 = vld [vmem:[%s6249_s22 + $0x48] sm:$0xff]   ;;  %v5531_v26 = vld [vmem:[%s6249_s22 + $0x58] sm:$0xff]  }
  0x9b   : > { %2273 = vmatprep.subr.bf16.mxu0 %v6079_v2  ;;  %2818 = vmatprep.subr.bf16.mxu1 %v6079_v2  ;;  %v5546_v22 = vld [vmem:[%s6243_s18 + $0xc] ss:$16 sps:$4 sm:$0xff]   ;;  %v5529_v24 = vld [vmem:[%s6249_s22 + $0x50] sm:$0xff]   ;;  %v5533_v28 = vld [vmem:[%s6249_s22 + $0x60] sm:$0xff]  }
  0x9c   : > { %v5528_v23 = vld [vmem:[%s6249_s22 + $0xc8] sm:$0xff]   ;;  %2301 = vmatprep.mubr.bf16.mxu0 %v5543_v20  ;;  %2846 = vmatprep.mubr.bf16.mxu1 %v5546_v22  ;;  %v5530_v25 = vld [vmem:[%s6249_s22 + $0xd0] sm:$0xff]   ;;  %v5532_v27 = vld [vmem:[%s6249_s22 + $0xd8] sm:$0xff]  }
  0x9d   : > { %v5534_v29 = vld [vmem:[%s6249_s22 + $0xe0] sm:$0xff]   ;;  %v5535_v30 = vld [vmem:[%s6249_s22 + $0x68] sm:$0xff]   ;;  %v5537_v32 = vld [vmem:[%s6249_s22 + $0x70] sm:$0xff]  }
  0x9e   : > { %2274 = vmatpush1.bf16.msra.mxu0 %v5513_v6  ;;  %2819 = vmatpush1.bf16.msra.mxu1 %v5514_v7  ;;  %v5536_v31 = vld [vmem:[%s6249_s22 + $0xe8] sm:$0xff]   ;;  %v5538_v33 = vld [vmem:[%s6249_s22 + $0xf0] sm:$0xff]   ;;  %v5539_v34 = vld [vmem:[%s6249_s22 + $0x78] sm:$0xff]  }
  0x9f   : > { %2275 = vmatprep.subr.bf16.mxu0 %v6079_v2  ;;  %2820 = vmatprep.subr.bf16.mxu1 %v6079_v2  ;;  %v5540_v35 = vld [vmem:[%s6249_s22 + $0xf8] sm:$0xff]   ;;  %v5541_v36 = vld [vmem:[%s6243_s18] ss:$16 sps:$4 sm:$0xff]   ;;  %v5547_v38 = vld [vmem:[%s6243_s18 + $0x24] ss:$16 sps:$4 sm:$0xff]  }
  0xa0   : > { %v5544_v37 = vld [vmem:[%s6243_s18 + $0x8] ss:$16 sps:$4 sm:$0xff]   ;;  %v5549_v39 = vld [vmem:[%s6243_s18 + $0x2c] ss:$16 sps:$4 sm:$0xff]   ;;  %v5551_v40 = vld [vmem:[%s6243_s18 + $0x20] ss:$16 sps:$4 sm:$0xff]  }
  0xa1   : > { %v5552_v41 = vld [vmem:[%s6243_s18 + $0x28] ss:$16 sps:$4 sm:$0xff]   ;;  %v5553_v42 = vld [vmem:[%s6243_s18 + $0x44] ss:$16 sps:$4 sm:$0xff]   ;;  %v5555_v43 = vld [vmem:[%s6243_s18 + $0x4c] ss:$16 sps:$4 sm:$0xff]  }
  0xa2   : > { %2276 = vmatpush1.bf16.msra.mxu0 %v5515_v8  ;;  %2821 = vmatpush1.bf16.msra.mxu1 %v5516_v9  ;;  %v5557_v44 = vld [vmem:[%s6243_s18 + $0x40] ss:$16 sps:$4 sm:$0xff]   ;;  %v5558_v45 = vld [vmem:[%s6243_s18 + $0x48] ss:$16 sps:$4 sm:$0xff]   ;;  %v5559_v46 = vld [vmem:[%s6243_s18 + $0x64] ss:$16 sps:$4 sm:$0xff]  }
  0xa3   : > { %2277 = vmatprep.subr.bf16.mxu0 %v6079_v2  ;;  %2822 = vmatprep.subr.bf16.mxu1 %v6079_v2  ;;  %v5561_v47 = vld [vmem:[%s6243_s18 + $0x6c] ss:$16 sps:$4 sm:$0xff]   ;;  %v5563_v48 = vld [vmem:[%s6243_s18 + $0x60] ss:$16 sps:$4 sm:$0xff]   ;;  %v5564_v49 = vld [vmem:[%s6243_s18 + $0x68] ss:$16 sps:$4 sm:$0xff]  }
  0xa4   : > { %v5565_v50 = vld [vmem:[%s6243_s18 + $0x84] ss:$16 sps:$4 sm:$0xff]   ;;  %v5567_v51 = vld [vmem:[%s6243_s18 + $0x8c] ss:$16 sps:$4 sm:$0xff]   ;;  %v5569_v52 = vld [vmem:[%s6243_s18 + $0x80] ss:$16 sps:$4 sm:$0xff]  }
  0xa5   : > { %v5570_v53 = vld [vmem:[%s6243_s18 + $0x88] ss:$16 sps:$4 sm:$0xff]   ;;  %v5571_v54 = vld [vmem:[%s6243_s18 + $0xa4] ss:$16 sps:$4 sm:$0xff]   ;;  %v5573_v55 = vld [vmem:[%s6243_s18 + $0xac] ss:$16 sps:$4 sm:$0xff]  }
  0xa6   : > { %2278 = vmatpush1.bf16.msra.mxu0 %v5517_v10  ;;  %2823 = vmatpush1.bf16.msra.mxu1 %v5518_v11  ;;  %v5575_v56 = vld [vmem:[%s6243_s18 + $0xa0] ss:$16 sps:$4 sm:$0xff]   ;;  %v5576_v57 = vld [vmem:[%s6243_s18 + $0xa8] ss:$16 sps:$4 sm:$0xff]   ;;  %v5577_v58 = vld [vmem:[%s6243_s18 + $0xc4] ss:$16 sps:$4 sm:$0xff]  }
  0xa7   : > { %2279 = vmatprep.subr.bf16.mxu0 %v6079_v2  ;;  %2824 = vmatprep.subr.bf16.mxu1 %v6079_v2  ;;  %v5579_v59 = vld [vmem:[%s6243_s18 + $0xcc] ss:$16 sps:$4 sm:$0xff]   ;;  %v5581_v60 = vld [vmem:[%s6243_s18 + $0xc0] ss:$16 sps:$4 sm:$0xff]   ;;  %v5582_v61 = vld [vmem:[%s6243_s18 + $0xc8] ss:$16 sps:$4 sm:$0xff]  }
  0xa8   : > { %v5583_v62 = vld [vmem:[%s6243_s18 + $0xe4] ss:$16 sps:$4 sm:$0xff]   ;;  %v5585_v63 = vld [vmem:[%s6243_s18 + $0xec] ss:$16 sps:$4 sm:$0xff]   ;;  %v5587_v0 = vld [vmem:[%s6243_s18 + $0xe0] ss:$16 sps:$4 sm:$0xff]  }
  0xa9   : > { %v5588_v1 = vld [vmem:[%s6243_s18 + $0xe8] ss:$16 sps:$4 sm:$0xff]   ;;  %v5591_v3 = vld [vmem:[%s6243_s18 + $0x10c] ss:$16 sps:$4 sm:$0xff]   ;;  %v5593_v4 = vld [vmem:[%s6243_s18 + $0x100] ss:$16 sps:$4 sm:$0xff]  }
  0xaa   : > { %2280 = vmatpush1.bf16.msra.mxu0 %v5519_v12  ;;  %2825 = vmatpush1.bf16.msra.mxu1 %v5520_v13  ;;  %v5594_v5 = vld [vmem:[%s6243_s18 + $0x108] ss:$16 sps:$4 sm:$0xff]   ;;  %v5595_v6 = vld [vmem:[%s6243_s18 + $0x124] ss:$16 sps:$4 sm:$0xff]   ;;  %v5597_v7 = vld [vmem:[%s6243_s18 + $0x12c] ss:$16 sps:$4 sm:$0xff]  }
  0xab   : > { %2281 = vmatprep.subr.bf16.mxu0 %v6079_v2  ;;  %2826 = vmatprep.subr.bf16.mxu1 %v6079_v2  ;;  %v5599_v8 = vld [vmem:[%s6243_s18 + $0x120] ss:$16 sps:$4 sm:$0xff]   ;;  %v5600_v9 = vld [vmem:[%s6243_s18 + $0x128] ss:$16 sps:$4 sm:$0xff]   ;;  %v5601_v10 = vld [vmem:[%s6243_s18 + $0x144] ss:$16 sps:$4 sm:$0xff]  }
  0xac   : > { %v5603_v11 = vld [vmem:[%s6243_s18 + $0x14c] ss:$16 sps:$4 sm:$0xff]   ;;  %v5605_v12 = vld [vmem:[%s6243_s18 + $0x140] ss:$16 sps:$4 sm:$0xff]   ;;  %v5606_v13 = vld [vmem:[%s6243_s18 + $0x148] ss:$16 sps:$4 sm:$0xff]  }
  0xad   : > { %v5617_v20 = vld [vmem:[%s6243_s18 + $0x180] ss:$16 sps:$4 sm:$0xff]   ;;  %v5619_v22 = vld [vmem:[%s6243_s18 + $0x1a4] ss:$16 sps:$4 sm:$0xff]  }
  0xae   : > { %2282 = vmatpush1.bf16.msra.mxu0 %v5521_v14  ;;  %2827 = vmatpush1.bf16.msra.mxu1 %v5522_v15  ;;  %v5607_v14 = vld [vmem:[%s6243_s18 + $0x164] ss:$16 sps:$4 sm:$0xff]   ;;  %v5609_v15 = vld [vmem:[%s6243_s18 + $0x16c] ss:$16 sps:$4 sm:$0xff]  }
  0xaf   : > { %2283 = vmatprep.subr.bf16.mxu0 %v6079_v2  ;;  %2828 = vmatprep.subr.bf16.mxu1 %v6079_v2 }
  0xb2   : > { %2284 = vmatpush1.bf16.msra.mxu0 %v5523_v16  ;;  %2829 = vmatpush1.bf16.msra.mxu1 %v5524_v17  ;;  %v5611_v16 = vld [vmem:[%s6243_s18 + $0x160] ss:$16 sps:$4 sm:$0xff]   ;;  %v5612_v17 = vld [vmem:[%s6243_s18 + $0x168] ss:$16 sps:$4 sm:$0xff]  }
  0xb3   : > { %2285 = vmatprep.subr.bf16.mxu0 %v6079_v2  ;;  %2830 = vmatprep.subr.bf16.mxu1 %v6079_v2 }
  0xb6   : > { %2286 = vmatpush1.bf16.msra.mxu0 %v5525_v18  ;;  %2831 = vmatpush1.bf16.msra.mxu1 %v5526_v19  ;;  %v5613_v18 = vld [vmem:[%s6243_s18 + $0x184] ss:$16 sps:$4 sm:$0xff]   ;;  %v5615_v19 = vld [vmem:[%s6243_s18 + $0x18c] ss:$16 sps:$4 sm:$0xff]  }
  0xb7   : > { %2287 = vmatprep.subr.bf16.mxu0 %v6079_v2  ;;  %2832 = vmatprep.subr.bf16.mxu1 %v6079_v2 }
  0xba   : > { %2288 = vmatpush1.bf16.msra.mxu0 %v5527_v21  ;;  %2833 = vmatpush1.bf16.msra.mxu1 %v5528_v23  ;;  %v5618_v21 = vld [vmem:[%s6243_s18 + $0x188] ss:$16 sps:$4 sm:$0xff]   ;;  %v5621_v23 = vld [vmem:[%s6243_s18 + $0x1ac] ss:$16 sps:$4 sm:$0xff]  }
  0xbb   : > { %2289 = vmatprep.subr.bf16.mxu0 %v6079_v2  ;;  %2834 = vmatprep.subr.bf16.mxu1 %v6079_v2 }
  0xbe   : > { %2290 = vmatpush1.bf16.msra.mxu0 %v5529_v24  ;;  %2835 = vmatpush1.bf16.msra.mxu1 %v5530_v25  ;;  %v5623_v24 = vld [vmem:[%s6243_s18 + $0x1a0] ss:$16 sps:$4 sm:$0xff]   ;;  %v5624_v25 = vld [vmem:[%s6243_s18 + $0x1a8] ss:$16 sps:$4 sm:$0xff]  }
  0xbf   : > { %2291 = vmatprep.subr.bf16.mxu0 %v6079_v2  ;;  %2836 = vmatprep.subr.bf16.mxu1 %v6079_v2 }
  0xc2   : > { %2292 = vmatpush1.bf16.msra.mxu0 %v5531_v26  ;;  %2837 = vmatpush1.bf16.msra.mxu1 %v5532_v27  ;;  %v5625_v26 = vld [vmem:[%s6243_s18 + $0x1c4] ss:$16 sps:$4 sm:$0xff]   ;;  %v5627_v27 = vld [vmem:[%s6243_s18 + $0x1cc] ss:$16 sps:$4 sm:$0xff]  }
  0xc3   : > { %2293 = vmatprep.subr.bf16.mxu0 %v6079_v2  ;;  %2838 = vmatprep.subr.bf16.mxu1 %v6079_v2 }
  0xc6   : > { %2294 = vmatpush1.bf16.msra.mxu0 %v5533_v28  ;;  %2839 = vmatpush1.bf16.msra.mxu1 %v5534_v29  ;;  %v5629_v28 = vld [vmem:[%s6243_s18 + $0x1c0] ss:$16 sps:$4 sm:$0xff]   ;;  %v5630_v29 = vld [vmem:[%s6243_s18 + $0x1c8] ss:$16 sps:$4 sm:$0xff]  }
  0xc7   : > { %2295 = vmatprep.subr.bf16.mxu0 %v6079_v2  ;;  %2840 = vmatprep.subr.bf16.mxu1 %v6079_v2 }
  0xca   : > { %2296 = vmatpush1.bf16.msra.mxu0 %v5535_v30  ;;  %2841 = vmatpush1.bf16.msra.mxu1 %v5536_v31  ;;  %v5631_v30 = vld [vmem:[%s6243_s18 + $0x1e4] ss:$16 sps:$4 sm:$0xff]   ;;  %v5633_v31 = vld [vmem:[%s6243_s18 + $0x1ec] ss:$16 sps:$4 sm:$0xff]  }
  0xcb   : > { %2297 = vmatprep.subr.bf16.mxu0 %v6079_v2  ;;  %2842 = vmatprep.subr.bf16.mxu1 %v6079_v2 }
  0xce   : > { %2298 = vmatpush1.bf16.msra.mxu0 %v5537_v32  ;;  %2843 = vmatpush1.bf16.msra.mxu1 %v5538_v33  ;;  %v5635_v32 = vld [vmem:[%s6243_s18 + $0x1e0] ss:$16 sps:$4 sm:$0xff]   ;;  %v5636_v33 = vld [vmem:[%s6243_s18 + $0x1e8] ss:$16 sps:$4 sm:$0xff]  }
  0xcf   : > { %2299 = vmatprep.subr.bf16.mxu0 %v6079_v2  ;;  %2844 = vmatprep.subr.bf16.mxu1 %v6079_v2  ;;  %v5589_v2 = vld [vmem:[%s6243_s18 + $0x104] ss:$16 sps:$4 sm:$0xff]  }
  0xd2   : > { %2300 = vmatpush1.bf16.msra.mxu0 %v5539_v34  ;;  %2845 = vmatpush1.bf16.msra.mxu1 %v5540_v35  ;;  %v5637_v34 = vld [vmem:[%s6243_s18 + $0x204] ss:$16 sps:$4 sm:$0xff]   ;;  %v5639_v35 = vld [vmem:[%s6243_s18 + $0x20c] ss:$16 sps:$4 sm:$0xff]  }
  0xd5   : > { %2302 = vmatmul.mubr.bf16.vlgmr.msra.gmra.mrb[0].mxu0 %v5541_v36  ;;  %2847 = vmatmul.mubr.bf16.vlgmr.msra.gmra.mrb[0].mxu1 %v5544_v37  ;;  %v5641_v36 = vld [vmem:[%s6243_s18 + $0x200] ss:$16 sps:$4 sm:$0xff]   ;;  %v5642_v37 = vld [vmem:[%s6243_s18 + $0x208] ss:$16 sps:$4 sm:$0xff]  }
  0xd6   : > { %2309 = vmatprep.mubr.bf16.mxu0 %v5547_v38  ;;  %2854 = vmatprep.mubr.bf16.mxu1 %v5549_v39  ;;  %v5643_v38 = vld [vmem:[%s6243_s18 + $0x224] ss:$16 sps:$4 sm:$0xff]   ;;  %v5645_v39 = vld [vmem:[%s6243_s18 + $0x22c] ss:$16 sps:$4 sm:$0xff]  }
  0xdd   : > { %2310 = vmatmul.mubr.bf16.gmra.mrb[4].mxu0 %v5551_v40  ;;  %2855 = vmatmul.mubr.bf16.gmra.mrb[4].mxu1 %v5552_v41  ;;  %v5647_v40 = vld [vmem:[%s6243_s18 + $0x220] ss:$16 sps:$4 sm:$0xff]   ;;  %v5648_v41 = vld [vmem:[%s6243_s18 + $0x228] ss:$16 sps:$4 sm:$0xff]  }
  0xde   : > { %2317 = vmatprep.mubr.bf16.mxu0 %v5553_v42  ;;  %2862 = vmatprep.mubr.bf16.mxu1 %v5555_v43  ;;  %v5649_v42 = vld [vmem:[%s6243_s18 + $0x244] ss:$16 sps:$4 sm:$0xff]   ;;  %v5651_v43 = vld [vmem:[%s6243_s18 + $0x24c] ss:$16 sps:$4 sm:$0xff]  }
  0xe5   : > { %2318 = vmatmul.mubr.bf16.gmra.mrb[8].mxu0 %v5557_v44  ;;  %2863 = vmatmul.mubr.bf16.gmra.mrb[8].mxu1 %v5558_v45  ;;  %v5653_v44 = vld [vmem:[%s6243_s18 + $0x240] ss:$16 sps:$4 sm:$0xff]   ;;  %v5654_v45 = vld [vmem:[%s6243_s18 + $0x248] ss:$16 sps:$4 sm:$0xff]  }
  0xe6   : > { %2325 = vmatprep.mubr.bf16.mxu0 %v5559_v46  ;;  %2870 = vmatprep.mubr.bf16.mxu1 %v5561_v47  ;;  %v5655_v46 = vld [vmem:[%s6243_s18 + $0x264] ss:$16 sps:$4 sm:$0xff]   ;;  %v5657_v47 = vld [vmem:[%s6243_s18 + $0x26c] ss:$16 sps:$4 sm:$0xff]  }
  0xed   : > { %2326 = vmatmul.mubr.bf16.gmra.mrb[12].mxu0 %v5563_v48  ;;  %2871 = vmatmul.mubr.bf16.gmra.mrb[12].mxu1 %v5564_v49  ;;  %v5659_v48 = vld [vmem:[%s6243_s18 + $0x260] ss:$16 sps:$4 sm:$0xff]   ;;  %v5660_v49 = vld [vmem:[%s6243_s18 + $0x268] ss:$16 sps:$4 sm:$0xff]  }
  0xee   : > { %2333 = vmatprep.mubr.bf16.mxu0 %v5565_v50  ;;  %2878 = vmatprep.mubr.bf16.mxu1 %v5567_v51  ;;  %v5661_v50 = vld [vmem:[%s6243_s18 + $0x284] ss:$16 sps:$4 sm:$0xff]   ;;  %v5663_v51 = vld [vmem:[%s6243_s18 + $0x28c] ss:$16 sps:$4 sm:$0xff]  }
  0xf5   : > { %2334 = vmatmul.mubr.bf16.gmra.mrb[16].mxu0 %v5569_v52  ;;  %2879 = vmatmul.mubr.bf16.gmra.mrb[16].mxu1 %v5570_v53  ;;  %v5665_v52 = vld [vmem:[%s6243_s18 + $0x280] ss:$16 sps:$4 sm:$0xff]   ;;  %v5666_v53 = vld [vmem:[%s6243_s18 + $0x288] ss:$16 sps:$4 sm:$0xff]  }
  0xf6   : > { %2341 = vmatprep.mubr.bf16.mxu0 %v5571_v54  ;;  %2886 = vmatprep.mubr.bf16.mxu1 %v5573_v55  ;;  %v5667_v54 = vld [vmem:[%s6243_s18 + $0x2a4] ss:$16 sps:$4 sm:$0xff]   ;;  %v5669_v55 = vld [vmem:[%s6243_s18 + $0x2ac] ss:$16 sps:$4 sm:$0xff]  }
  0xfd   : > { %2342 = vmatmul.mubr.bf16.gmra.mrb[20].mxu0 %v5575_v56  ;;  %2887 = vmatmul.mubr.bf16.gmra.mrb[20].mxu1 %v5576_v57  ;;  %v5671_v56 = vld [vmem:[%s6243_s18 + $0x2a0] ss:$16 sps:$4 sm:$0xff]   ;;  %v5672_v57 = vld [vmem:[%s6243_s18 + $0x2a8] ss:$16 sps:$4 sm:$0xff]  }
  0xfe   : > { %2349 = vmatprep.mubr.bf16.mxu0 %v5577_v58  ;;  %2894 = vmatprep.mubr.bf16.mxu1 %v5579_v59  ;;  %v5673_v58 = vld [vmem:[%s6243_s18 + $0x2c4] ss:$16 sps:$4 sm:$0xff]   ;;  %v5675_v59 = vld [vmem:[%s6243_s18 + $0x2cc] ss:$16 sps:$4 sm:$0xff]  }
 0x105   : > { %2350 = vmatmul.mubr.bf16.gmra.mrb[24].mxu0 %v5581_v60  ;;  %2895 = vmatmul.mubr.bf16.gmra.mrb[24].mxu1 %v5582_v61  ;;  %v5677_v60 = vld [vmem:[%s6243_s18 + $0x2c0] ss:$16 sps:$4 sm:$0xff]   ;;  %v5678_v61 = vld [vmem:[%s6243_s18 + $0x2c8] ss:$16 sps:$4 sm:$0xff]  }
 0x106   : > { %2357 = vmatprep.mubr.bf16.mxu0 %v5583_v62  ;;  %2902 = vmatprep.mubr.bf16.mxu1 %v5585_v63  ;;  %v5679_v62 = vld [vmem:[%s6243_s18 + $0x2e4] ss:$16 sps:$4 sm:$0xff]   ;;  %v5681_v63 = vld [vmem:[%s6243_s18 + $0x2ec] ss:$16 sps:$4 sm:$0xff]  }
 0x10d   : > { %2358 = vmatmul.mubr.bf16.gmra.mrb[28].mxu0 %v5587_v0  ;;  %2903 = vmatmul.mubr.bf16.gmra.mrb[28].mxu1 %v5588_v1  ;;  %v5683_v0 = vld [vmem:[%s6243_s18 + $0x2e0] ss:$16 sps:$4 sm:$0xff]   ;;  %v5684_v1 = vld [vmem:[%s6243_s18 + $0x2e8] ss:$16 sps:$4 sm:$0xff]  }
 0x10e   : > { %2365 = vmatprep.mubr.bf16.mxu0 %v5589_v2  ;;  %2910 = vmatprep.mubr.bf16.mxu1 %v5591_v3  ;;  %v5685_v2 = vld [vmem:[%s6243_s18 + $0x304] ss:$16 sps:$4 sm:$0xff]   ;;  %v5687_v3 = vld [vmem:[%s6243_s18 + $0x30c] ss:$16 sps:$4 sm:$0xff]  }
 0x115   : > { %2366 = vmatmul.mubr.bf16.gmra.mrb[32].mxu0 %v5593_v4  ;;  %2911 = vmatmul.mubr.bf16.gmra.mrb[32].mxu1 %v5594_v5  ;;  %v5689_v4 = vld [vmem:[%s6243_s18 + $0x300] ss:$16 sps:$4 sm:$0xff]   ;;  %v5690_v5 = vld [vmem:[%s6243_s18 + $0x308] ss:$16 sps:$4 sm:$0xff]  }
 0x116   : > { %2373 = vmatprep.mubr.bf16.mxu0 %v5595_v6  ;;  %2918 = vmatprep.mubr.bf16.mxu1 %v5597_v7  ;;  %v5691_v6 = vld [vmem:[%s6243_s18 + $0x324] ss:$16 sps:$4 sm:$0xff]   ;;  %v5693_v7 = vld [vmem:[%s6243_s18 + $0x32c] ss:$16 sps:$4 sm:$0xff]  }
 0x11d   : > { %2374 = vmatmul.mubr.bf16.gmra.mrb[36].mxu0 %v5599_v8  ;;  %2919 = vmatmul.mubr.bf16.gmra.mrb[36].mxu1 %v5600_v9  ;;  %v5695_v8 = vld [vmem:[%s6243_s18 + $0x320] ss:$16 sps:$4 sm:$0xff]   ;;  %v5696_v9 = vld [vmem:[%s6243_s18 + $0x328] ss:$16 sps:$4 sm:$0xff]  }
 0x11e   : > { %2381 = vmatprep.mubr.bf16.mxu0 %v5601_v10  ;;  %2926 = vmatprep.mubr.bf16.mxu1 %v5603_v11  ;;  %v5697_v10 = vld [vmem:[%s6243_s18 + $0x344] ss:$16 sps:$4 sm:$0xff]   ;;  %v5699_v11 = vld [vmem:[%s6243_s18 + $0x34c] ss:$16 sps:$4 sm:$0xff]  }
 0x125   : > { %2382 = vmatmul.mubr.bf16.gmra.mrb[40].mxu0 %v5605_v12  ;;  %2927 = vmatmul.mubr.bf16.gmra.mrb[40].mxu1 %v5606_v13  ;;  %v5701_v12 = vld [vmem:[%s6243_s18 + $0x340] ss:$16 sps:$4 sm:$0xff]   ;;  %v5702_v13 = vld [vmem:[%s6243_s18 + $0x348] ss:$16 sps:$4 sm:$0xff]  }
 0x126   : > { %2389 = vmatprep.mubr.bf16.mxu0 %v5607_v14  ;;  %2934 = vmatprep.mubr.bf16.mxu1 %v5609_v15  ;;  %v5703_v14 = vld [vmem:[%s6243_s18 + $0x364] ss:$16 sps:$4 sm:$0xff]   ;;  %v5705_v15 = vld [vmem:[%s6243_s18 + $0x36c] ss:$16 sps:$4 sm:$0xff]  }
 0x12d   : > { %2390 = vmatmul.mubr.bf16.gmra.mrb[44].mxu0 %v5611_v16  ;;  %2935 = vmatmul.mubr.bf16.gmra.mrb[44].mxu1 %v5612_v17  ;;  %v349_v17 = vld [vmem:[#allocation2] sm:$0xff] }
 0x12e   : > { %2397 = vmatprep.mubr.bf16.mxu0 %v5613_v18  ;;  %2942 = vmatprep.mubr.bf16.mxu1 %v5615_v19 }
 0x135   : > { %2398 = vmatmul.mubr.bf16.gmra.mrb[48].mxu0 %v5617_v20  ;;  %2943 = vmatmul.mubr.bf16.gmra.mrb[48].mxu1 %v5618_v21  ;;  %v5707_v20 = vld [vmem:[%s6243_s18 + $0x360] ss:$16 sps:$4 sm:$0xff]  }
 0x136   : > { %2405 = vmatprep.mubr.bf16.mxu0 %v5619_v22  ;;  %2950 = vmatprep.mubr.bf16.mxu1 %v5621_v23 }
 0x13d   : > { %2406 = vmatmul.mubr.bf16.gmra.mrb[52].mxu0 %v5623_v24  ;;  %2951 = vmatmul.mubr.bf16.gmra.mrb[52].mxu1 %v5624_v25  ;;  %v5708_v24 = vld [vmem:[%s6243_s18 + $0x368] ss:$16 sps:$4 sm:$0xff]   ;;  %v5709_v25 = vld [vmem:[%s6243_s18 + $0x384] ss:$16 sps:$4 sm:$0xff]  }
 0x13e   : > { %2413 = vmatprep.mubr.bf16.mxu0 %v5625_v26  ;;  %2958 = vmatprep.mubr.bf16.mxu1 %v5627_v27  ;;  %v350_v26 = vld [vmem:[#allocation2 + $0x8] sm:$0xff] }
 0x145   : > { %2414 = vmatmul.mubr.bf16.gmra.mrb[56].mxu0 %v5629_v28  ;;  %2959 = vmatmul.mubr.bf16.gmra.mrb[56].mxu1 %v5630_v29  ;;  %v5711_v29 = vld [vmem:[%s6243_s18 + $0x38c] ss:$16 sps:$4 sm:$0xff]  }
 0x146   : > { %2421 = vmatprep.mubr.bf16.mxu0 %v5631_v30  ;;  %2966 = vmatprep.mubr.bf16.mxu1 %v5633_v31 }
 0x14d   : > { %2422 = vmatmul.mubr.bf16.gmra.mrb[60].mxu0 %v5635_v32  ;;  %2967 = vmatmul.mubr.bf16.gmra.mrb[60].mxu1 %v5636_v33 }
 0x14e   : > { %2429 = vmatprep.mubr.bf16.mxu0 %v5637_v34  ;;  %2974 = vmatprep.mubr.bf16.mxu1 %v5639_v35  ;;  %v351_v35 = vld [vmem:[#allocation2 + $0x10] sm:$0xff] }
 0x155   : > { %2430 = vmatmul.mubr.bf16.gmra.mrb[64].mxu0 %v5641_v36  ;;  %2975 = vmatmul.mubr.bf16.gmra.mrb[64].mxu1 %v5642_v37 }
 0x156   : > { %2437 = vmatprep.mubr.bf16.mxu0 %v5643_v38  ;;  %2982 = vmatprep.mubr.bf16.mxu1 %v5645_v39  ;;  %v5713_v38 = vld [vmem:[%s6243_s18 + $0x380] ss:$16 sps:$4 sm:$0xff]  }
 0x15d   : > { %2438 = vmatmul.mubr.bf16.gmra.mrb[68].mxu0 %v5647_v40  ;;  %2983 = vmatmul.mubr.bf16.gmra.mrb[68].mxu1 %v5648_v41 }
 0x15e   : > { %2445 = vmatprep.mubr.bf16.mxu0 %v5649_v42  ;;  %2990 = vmatprep.mubr.bf16.mxu1 %v5651_v43  ;;  %v5714_v42 = vld [vmem:[%s6243_s18 + $0x388] ss:$16 sps:$4 sm:$0xff]   ;;  %v5715_v43 = vld [vmem:[%s6243_s18 + $0x3a4] ss:$16 sps:$4 sm:$0xff]  }
 0x165   : > { %2446 = vmatmul.mubr.bf16.gmra.mrb[72].mxu0 %v5653_v44  ;;  %2991 = vmatmul.mubr.bf16.gmra.mrb[72].mxu1 %v5654_v45  ;;  %v352_v44 = vld [vmem:[#allocation2 + $0x18] sm:$0xff] }
 0x166   : > { %2453 = vmatprep.mubr.bf16.mxu0 %v5655_v46  ;;  %2998 = vmatprep.mubr.bf16.mxu1 %v5657_v47  ;;  %v5717_v47 = vld [vmem:[%s6243_s18 + $0x3ac] ss:$16 sps:$4 sm:$0xff]  }
 0x16d   : > { %2454 = vmatmul.mubr.bf16.gmra.mrb[76].mxu0 %v5659_v48  ;;  %2999 = vmatmul.mubr.bf16.gmra.mrb[76].mxu1 %v5660_v49 }
 0x16e   : > { %2461 = vmatprep.mubr.bf16.mxu0 %v5661_v50  ;;  %3006 = vmatprep.mubr.bf16.mxu1 %v5663_v51 }
 0x175   : > { %2462 = vmatmul.mubr.bf16.gmra.mrb[80].mxu0 %v5665_v52  ;;  %3007 = vmatmul.mubr.bf16.gmra.mrb[80].mxu1 %v5666_v53  ;;  %v353_v53 = vld [vmem:[#allocation2 + $0x20] sm:$0xff] }
 0x176   : > { %2469 = vmatprep.mubr.bf16.mxu0 %v5667_v54  ;;  %3014 = vmatprep.mubr.bf16.mxu1 %v5669_v55 }
 0x17d   : > { %2470 = vmatmul.mubr.bf16.gmra.mrb[84].mxu0 %v5671_v56  ;;  %3015 = vmatmul.mubr.bf16.gmra.mrb[84].mxu1 %v5672_v57  ;;  %v5719_v56 = vld [vmem:[%s6243_s18 + $0x3a0] ss:$16 sps:$4 sm:$0xff]  }
 0x17e   : > { %2477 = vmatprep.mubr.bf16.mxu0 %v5673_v58  ;;  %3022 = vmatprep.mubr.bf16.mxu1 %v5675_v59 }
 0x185   : > { %2478 = vmatmul.mubr.bf16.gmra.mrb[88].mxu0 %v5677_v60  ;;  %3023 = vmatmul.mubr.bf16.gmra.mrb[88].mxu1 %v5678_v61  ;;  %v5720_v60 = vld [vmem:[%s6243_s18 + $0x3a8] ss:$16 sps:$4 sm:$0xff]   ;;  %v5721_v61 = vld [vmem:[%s6243_s18 + $0x3c4] ss:$16 sps:$4 sm:$0xff]  }
 0x186   : > { %2485 = vmatprep.mubr.bf16.mxu0 %v5679_v62  ;;  %3030 = vmatprep.mubr.bf16.mxu1 %v5681_v63  ;;  %v354_v62 = vld [vmem:[#allocation2 + $0x28] sm:$0xff] }
 0x18d   : > { %2486 = vmatmul.mubr.bf16.gmra.mrb[92].mxu0 %v5683_v0  ;;  %3031 = vmatmul.mubr.bf16.gmra.mrb[92].mxu1 %v5684_v1  ;;  %v5723_v1 = vld [vmem:[%s6243_s18 + $0x3cc] ss:$16 sps:$4 sm:$0xff]  }
 0x18e   : > { %2493 = vmatprep.mubr.bf16.mxu0 %v5685_v2  ;;  %3038 = vmatprep.mubr.bf16.mxu1 %v5687_v3 }
 0x195   : > { %2494 = vmatmul.mubr.bf16.gmra.mrb[96].mxu0 %v5689_v4  ;;  %3039 = vmatmul.mubr.bf16.gmra.mrb[96].mxu1 %v5690_v5 }
 0x196   : > { %2501 = vmatprep.mubr.bf16.mxu0 %v5691_v6  ;;  %3046 = vmatprep.mubr.bf16.mxu1 %v5693_v7  ;;  %v355_v7 = vld [vmem:[#allocation2 + $0x30] sm:$0xff] }
 0x19d   : > { %2502 = vmatmul.mubr.bf16.gmra.mrb[100].mxu0 %v5695_v8  ;;  %3047 = vmatmul.mubr.bf16.gmra.mrb[100].mxu1 %v5696_v9 }
 0x19e   : > { %2509 = vmatprep.mubr.bf16.mxu0 %v5697_v10  ;;  %3054 = vmatprep.mubr.bf16.mxu1 %v5699_v11  ;;  %v5725_v10 = vld [vmem:[%s6243_s18 + $0x3c0] ss:$16 sps:$4 sm:$0xff]  }
 0x1a5   : > { %2510 = vmatmul.mubr.bf16.gmra.mrb[104].mxu0 %v5701_v12  ;;  %3055 = vmatmul.mubr.bf16.gmra.mrb[104].mxu1 %v5702_v13 }
 0x1a6   : > { %2517 = vmatprep.mubr.bf16.mxu0 %v5703_v14  ;;  %3062 = vmatprep.mubr.bf16.mxu1 %v5705_v15  ;;  %v5726_v14 = vld [vmem:[%s6243_s18 + $0x3c8] ss:$16 sps:$4 sm:$0xff]   ;;  %v5727_v15 = vld [vmem:[%s6243_s18 + $0x3e4] ss:$16 sps:$4 sm:$0xff]  }
 0x1a8   : > { %v2303_v16 = vpop.f32.mrb[0].mxu0  ;;  %v2848_v18 = vpop.f32.mrb[0].mxu1 }
 0x1a9   : > { %v2305_v19 = vpop.f32.mrb[1].mxu0  ;;  %v2849_v21 = vadd.f32 %v2848_v18, %v2303_v16  ;;  %v2850_v22 = vpop.f32.mrb[1].mxu1  ;;  %v356_v16 = vld [vmem:[#allocation2 + $0x38] sm:$0xff] }
 0x1aa   : > { %v2306_v23 = vpop.f32.mrb[2].mxu0  ;;  %v2851_v27 = vpop.f32.mrb[2].mxu1  ;;  %v5729_v19 = vld [vmem:[%s6243_s18 + $0x3ec] ss:$16 sps:$4 sm:$0xff]  }
 0x1ab   : > { %v2308_v28 = vpop.f32.mrb[3].mxu0  ;;  %v3359_v30 = vadd.f32 %v2849_v21, %v349_v17  ;;  %v2852_v31 = vadd.f32 %v2851_v27, %v2306_v23  ;;  %v2853_v32 = vpop.f32.mrb[3].mxu1 }
 0x1ac   : > { %v5731_v28 = vld [vmem:[%s6243_s18 + $0x3e0] ss:$16 sps:$4 sm:$0xff]   ;;  %v5732_v32 = vld [vmem:[%s6243_s18 + $0x3e8] ss:$16 sps:$4 sm:$0xff]  }
 0x1ad   : > { %2518 = vmatmul.mubr.bf16.gmra.mrb[108].mxu0 %v5707_v20  ;;  %3487 = vst [vmem:[#allocation2] sm:$0xff] %v3359_v30  ;;  %v3360_v33 = vadd.f32 %v2852_v31, %v350_v26  ;;  %3063 = vmatmul.mubr.bf16.gmra.mrb[108].mxu1 %v5708_v24 }
 0x1ae   : > { %2525 = vmatprep.mubr.bf16.mxu0 %v5709_v25  ;;  %3070 = vmatprep.mubr.bf16.mxu1 %v5711_v29  ;;  %v357_v25 = vld [vmem:[#allocation2 + $0x40] sm:$0xff] }
 0x1af   : > { %3488 = vst [vmem:[#allocation2 + $0x8] sm:$0xff] %v3360_v33  ;;  %v5733_v33 = vld [vmem:[%s6243_s18 + $0x404] ss:$16 sps:$4 sm:$0xff]  }
 0x1b0   : > { %v2311_v34 = vpop.f32.mrb[4].mxu0  ;;  %v2856_v36 = vpop.f32.mrb[4].mxu1 }
 0x1b1   : > { %v2313_v37 = vpop.f32.mrb[5].mxu0  ;;  %v2857_v39 = vadd.f32 %v2856_v36, %v2311_v34  ;;  %v2858_v40 = vpop.f32.mrb[5].mxu1  ;;  %v358_v34 = vld [vmem:[#allocation2 + $0x48] sm:$0xff] }
 0x1b2   : > { %v2314_v41 = vpop.f32.mrb[6].mxu0  ;;  %v2859_v45 = vpop.f32.mrb[6].mxu1  ;;  %v5735_v37 = vld [vmem:[%s6243_s18 + $0x40c] ss:$16 sps:$4 sm:$0xff]  }
 0x1b3   : > { %v2316_v46 = vpop.f32.mrb[7].mxu0  ;;  %v3361_v48 = vadd.f32 %v2857_v39, %v351_v35  ;;  %v2860_v49 = vadd.f32 %v2859_v45, %v2314_v41  ;;  %v2861_v50 = vpop.f32.mrb[7].mxu1 }
 0x1b4   : > { %v5737_v46 = vld [vmem:[%s6243_s18 + $0x400] ss:$16 sps:$4 sm:$0xff]   ;;  %v5738_v50 = vld [vmem:[%s6243_s18 + $0x408] ss:$16 sps:$4 sm:$0xff]  }
 0x1b5   : > { %2526 = vmatmul.mubr.bf16.gmra.mrb[112].mxu0 %v5713_v38  ;;  %3489 = vst [vmem:[#allocation2 + $0x10] sm:$0xff] %v3361_v48  ;;  %v3362_v51 = vadd.f32 %v2860_v49, %v352_v44  ;;  %3071 = vmatmul.mubr.bf16.gmra.mrb[112].mxu1 %v5714_v42 }
 0x1b6   : > { %2533 = vmatprep.mubr.bf16.mxu0 %v5715_v43  ;;  %3078 = vmatprep.mubr.bf16.mxu1 %v5717_v47  ;;  %v359_v43 = vld [vmem:[#allocation2 + $0x50] sm:$0xff] }
 0x1b7   : > { %3490 = vst [vmem:[#allocation2 + $0x18] sm:$0xff] %v3362_v51  ;;  %v5739_v51 = vld [vmem:[%s6243_s18 + $0x424] ss:$16 sps:$4 sm:$0xff]  }
 0x1b8   : > { %v2319_v52 = vpop.f32.mrb[8].mxu0  ;;  %v2864_v54 = vpop.f32.mrb[8].mxu1 }
 0x1b9   : > { %v2321_v55 = vpop.f32.mrb[9].mxu0  ;;  %v2865_v57 = vadd.f32 %v2864_v54, %v2319_v52  ;;  %v2866_v58 = vpop.f32.mrb[9].mxu1  ;;  %v360_v52 = vld [vmem:[#allocation2 + $0x58] sm:$0xff] }
 0x1ba   : > { %v2322_v59 = vpop.f32.mrb[10].mxu0  ;;  %v2867_v63 = vpop.f32.mrb[10].mxu1  ;;  %v5741_v55 = vld [vmem:[%s6243_s18 + $0x42c] ss:$16 sps:$4 sm:$0xff]  }
 0x1bb   : > { %v2324_v0 = vpop.f32.mrb[11].mxu0  ;;  %v3363_v2 = vadd.f32 %v2865_v57, %v353_v53  ;;  %v2868_v3 = vadd.f32 %v2867_v63, %v2322_v59  ;;  %v2869_v4 = vpop.f32.mrb[11].mxu1 }
 0x1bc   : > { %v5743_v0 = vld [vmem:[%s6243_s18 + $0x420] ss:$16 sps:$4 sm:$0xff]   ;;  %v5744_v4 = vld [vmem:[%s6243_s18 + $0x428] ss:$16 sps:$4 sm:$0xff]  }
 0x1bd   : > { %2534 = vmatmul.mubr.bf16.gmra.mrb[116].mxu0 %v5719_v56  ;;  %3491 = vst [vmem:[#allocation2 + $0x20] sm:$0xff] %v3363_v2  ;;  %v3364_v5 = vadd.f32 %v2868_v3, %v354_v62  ;;  %3079 = vmatmul.mubr.bf16.gmra.mrb[116].mxu1 %v5720_v60 }
 0x1be   : > { %2541 = vmatprep.mubr.bf16.mxu0 %v5721_v61  ;;  %3086 = vmatprep.mubr.bf16.mxu1 %v5723_v1  ;;  %v361_v61 = vld [vmem:[#allocation2 + $0x60] sm:$0xff] }
 0x1bf   : > { %3492 = vst [vmem:[#allocation2 + $0x28] sm:$0xff] %v3364_v5  ;;  %v5745_v5 = vld [vmem:[%s6243_s18 + $0x444] ss:$16 sps:$4 sm:$0xff]  }
 0x1c0   : > { %v2327_v6 = vpop.f32.mrb[12].mxu0  ;;  %v2872_v8 = vpop.f32.mrb[12].mxu1 }
 0x1c1   : > { %v2329_v9 = vpop.f32.mrb[13].mxu0  ;;  %v2873_v11 = vadd.f32 %v2872_v8, %v2327_v6  ;;  %v2874_v12 = vpop.f32.mrb[13].mxu1  ;;  %v362_v6 = vld [vmem:[#allocation2 + $0x68] sm:$0xff] }
 0x1c2   : > { %v2330_v13 = vpop.f32.mrb[14].mxu0  ;;  %v2875_v17 = vpop.f32.mrb[14].mxu1  ;;  %v5747_v9 = vld [vmem:[%s6243_s18 + $0x44c] ss:$16 sps:$4 sm:$0xff]  }
 0x1c3   : > { %v2332_v18 = vpop.f32.mrb[15].mxu0  ;;  %v3365_v20 = vadd.f32 %v2873_v11, %v355_v7  ;;  %v2876_v21 = vadd.f32 %v2875_v17, %v2330_v13  ;;  %v2877_v22 = vpop.f32.mrb[15].mxu1 }
 0x1c4   : > { %v5749_v18 = vld [vmem:[%s6243_s18 + $0x440] ss:$16 sps:$4 sm:$0xff]   ;;  %v5750_v22 = vld [vmem:[%s6243_s18 + $0x448] ss:$16 sps:$4 sm:$0xff]  }
 0x1c5   : > { %2542 = vmatmul.mubr.bf16.gmra.mrb[120].mxu0 %v5725_v10  ;;  %3493 = vst [vmem:[#allocation2 + $0x30] sm:$0xff] %v3365_v20  ;;  %v3366_v23 = vadd.f32 %v2876_v21, %v356_v16  ;;  %3087 = vmatmul.mubr.bf16.gmra.mrb[120].mxu1 %v5726_v14 }
 0x1c6   : > { %2549 = vmatprep.mubr.bf16.mxu0 %v5727_v15  ;;  %3094 = vmatprep.mubr.bf16.mxu1 %v5729_v19  ;;  %v363_v15 = vld [vmem:[#allocation2 + $0x70] sm:$0xff] }
 0x1c7   : > { %3494 = vst [vmem:[#allocation2 + $0x38] sm:$0xff] %v3366_v23  ;;  %v5751_v23 = vld [vmem:[%s6243_s18 + $0x464] ss:$16 sps:$4 sm:$0xff]  }
 0x1c8   : > { %v2335_v24 = vpop.f32.mrb[16].mxu0  ;;  %v2880_v26 = vpop.f32.mrb[16].mxu1 }
 0x1c9   : > { %v2337_v27 = vpop.f32.mrb[17].mxu0  ;;  %v2881_v29 = vadd.f32 %v2880_v26, %v2335_v24  ;;  %v2882_v30 = vpop.f32.mrb[17].mxu1  ;;  %v364_v24 = vld [vmem:[#allocation2 + $0x78] sm:$0xff] }
 0x1ca   : > { %v2338_v31 = vpop.f32.mrb[18].mxu0  ;;  %v2883_v35 = vpop.f32.mrb[18].mxu1  ;;  %v5753_v27 = vld [vmem:[%s6243_s18 + $0x46c] ss:$16 sps:$4 sm:$0xff]  }
 0x1cb   : > { %v2340_v36 = vpop.f32.mrb[19].mxu0  ;;  %v3367_v38 = vadd.f32 %v2881_v29, %v357_v25  ;;  %v2884_v39 = vadd.f32 %v2883_v35, %v2338_v31  ;;  %v2885_v40 = vpop.f32.mrb[19].mxu1 }
 0x1cc   : > { %v5755_v36 = vld [vmem:[%s6243_s18 + $0x460] ss:$16 sps:$4 sm:$0xff]   ;;  %v5756_v40 = vld [vmem:[%s6243_s18 + $0x468] ss:$16 sps:$4 sm:$0xff]  }
 0x1cd   : > { %2550 = vmatmul.mubr.bf16.gmra.mrb[124].mxu0 %v5731_v28  ;;  %3495 = vst [vmem:[#allocation2 + $0x40] sm:$0xff] %v3367_v38  ;;  %v3368_v41 = vadd.f32 %v2884_v39, %v358_v34  ;;  %3095 = vmatmul.mubr.bf16.gmra.mrb[124].mxu1 %v5732_v32 }
 0x1ce   : > { %2557 = vmatprep.mubr.bf16.mxu0 %v5733_v33  ;;  %3102 = vmatprep.mubr.bf16.mxu1 %v5735_v37  ;;  %v365_v33 = vld [vmem:[#allocation2 + $0x80] sm:$0xff] }
 0x1cf   : > { %3496 = vst [vmem:[#allocation2 + $0x48] sm:$0xff] %v3368_v41  ;;  %v5757_v41 = vld [vmem:[%s6243_s18 + $0x484] ss:$16 sps:$4 sm:$0xff]  }
 0x1d0   : > { %v2343_v42 = vpop.f32.mrb[20].mxu0  ;;  %v2888_v44 = vpop.f32.mrb[20].mxu1 }
 0x1d1   : > { %v2345_v45 = vpop.f32.mrb[21].mxu0  ;;  %v2889_v47 = vadd.f32 %v2888_v44, %v2343_v42  ;;  %v2890_v48 = vpop.f32.mrb[21].mxu1  ;;  %v366_v42 = vld [vmem:[#allocation2 + $0x88] sm:$0xff] }
 0x1d2   : > { %v2346_v49 = vpop.f32.mrb[22].mxu0  ;;  %v2891_v53 = vpop.f32.mrb[22].mxu1  ;;  %v5759_v45 = vld [vmem:[%s6243_s18 + $0x48c] ss:$16 sps:$4 sm:$0xff]  }
 0x1d3   : > { %v2348_v54 = vpop.f32.mrb[23].mxu0  ;;  %v3369_v56 = vadd.f32 %v2889_v47, %v359_v43  ;;  %v2892_v57 = vadd.f32 %v2891_v53, %v2346_v49  ;;  %v2893_v58 = vpop.f32.mrb[23].mxu1 }
 0x1d4   : > { %v5761_v54 = vld [vmem:[%s6243_s18 + $0x480] ss:$16 sps:$4 sm:$0xff]   ;;  %v5762_v58 = vld [vmem:[%s6243_s18 + $0x488] ss:$16 sps:$4 sm:$0xff]  }
 0x1d5   : > { %2558 = vmatmul.mubr.bf16.gmra.mrb[128].mxu0 %v5737_v46  ;;  %3497 = vst [vmem:[#allocation2 + $0x50] sm:$0xff] %v3369_v56  ;;  %v3370_v59 = vadd.f32 %v2892_v57, %v360_v52  ;;  %3103 = vmatmul.mubr.bf16.gmra.mrb[128].mxu1 %v5738_v50 }
 0x1d6   : > { %2565 = vmatprep.mubr.bf16.mxu0 %v5739_v51  ;;  %3110 = vmatprep.mubr.bf16.mxu1 %v5741_v55  ;;  %v367_v51 = vld [vmem:[#allocation2 + $0x90] sm:$0xff] }
 0x1d7   : > { %3498 = vst [vmem:[#allocation2 + $0x58] sm:$0xff] %v3370_v59  ;;  %v5763_v59 = vld [vmem:[%s6243_s18 + $0x4a4] ss:$16 sps:$4 sm:$0xff]  }
 0x1d8   : > { %v2351_v60 = vpop.f32.mrb[24].mxu0  ;;  %v2896_v62 = vpop.f32.mrb[24].mxu1 }
 0x1d9   : > { %v2353_v63 = vpop.f32.mrb[25].mxu0  ;;  %v2897_v1 = vadd.f32 %v2896_v62, %v2351_v60  ;;  %v2898_v2 = vpop.f32.mrb[25].mxu1  ;;  %v368_v60 = vld [vmem:[#allocation2 + $0x98] sm:$0xff] }
 0x1da   : > { %v2354_v3 = vpop.f32.mrb[26].mxu0  ;;  %v2899_v7 = vpop.f32.mrb[26].mxu1  ;;  %v5765_v63 = vld [vmem:[%s6243_s18 + $0x4ac] ss:$16 sps:$4 sm:$0xff]  }
 0x1db   : > { %v2356_v8 = vpop.f32.mrb[27].mxu0  ;;  %v3371_v10 = vadd.f32 %v2897_v1, %v361_v61  ;;  %v2900_v11 = vadd.f32 %v2899_v7, %v2354_v3  ;;  %v2901_v12 = vpop.f32.mrb[27].mxu1 }
 0x1dc   : > { %v5767_v8 = vld [vmem:[%s6243_s18 + $0x4a0] ss:$16 sps:$4 sm:$0xff]   ;;  %v5768_v12 = vld [vmem:[%s6243_s18 + $0x4a8] ss:$16 sps:$4 sm:$0xff]  }
 0x1dd   : > { %2566 = vmatmul.mubr.bf16.gmra.mrb[132].mxu0 %v5743_v0  ;;  %3499 = vst [vmem:[#allocation2 + $0x60] sm:$0xff] %v3371_v10  ;;  %v3372_v13 = vadd.f32 %v2900_v11, %v362_v6  ;;  %3111 = vmatmul.mubr.bf16.gmra.mrb[132].mxu1 %v5744_v4 }
 0x1de   : > { %2573 = vmatprep.mubr.bf16.mxu0 %v5745_v5  ;;  %3118 = vmatprep.mubr.bf16.mxu1 %v5747_v9  ;;  %v369_v5 = vld [vmem:[#allocation2 + $0xa0] sm:$0xff] }
 0x1df   : > { %3500 = vst [vmem:[#allocation2 + $0x68] sm:$0xff] %v3372_v13  ;;  %v5769_v13 = vld [vmem:[%s6243_s18 + $0x4c4] ss:$16 sps:$4 sm:$0xff]  }
 0x1e0   : > { %v2359_v14 = vpop.f32.mrb[28].mxu0  ;;  %v2904_v16 = vpop.f32.mrb[28].mxu1 }
 0x1e1   : > { %v2361_v17 = vpop.f32.mrb[29].mxu0  ;;  %v2905_v19 = vadd.f32 %v2904_v16, %v2359_v14  ;;  %v2906_v20 = vpop.f32.mrb[29].mxu1  ;;  %v370_v14 = vld [vmem:[#allocation2 + $0xa8] sm:$0xff] }
 0x1e2   : > { %v2362_v21 = vpop.f32.mrb[30].mxu0  ;;  %v2907_v25 = vpop.f32.mrb[30].mxu1  ;;  %v5771_v17 = vld [vmem:[%s6243_s18 + $0x4cc] ss:$16 sps:$4 sm:$0xff]  }
 0x1e3   : > { %v2364_v26 = vpop.f32.mrb[31].mxu0  ;;  %v3373_v28 = vadd.f32 %v2905_v19, %v363_v15  ;;  %v2908_v29 = vadd.f32 %v2907_v25, %v2362_v21  ;;  %v2909_v30 = vpop.f32.mrb[31].mxu1 }
 0x1e4   : > { %v5773_v26 = vld [vmem:[%s6243_s18 + $0x4c0] ss:$16 sps:$4 sm:$0xff]   ;;  %v5774_v30 = vld [vmem:[%s6243_s18 + $0x4c8] ss:$16 sps:$4 sm:$0xff]  }
 0x1e5   : > { %2574 = vmatmul.mubr.bf16.gmra.mrb[136].mxu0 %v5749_v18  ;;  %3501 = vst [vmem:[#allocation2 + $0x70] sm:$0xff] %v3373_v28  ;;  %v3374_v31 = vadd.f32 %v2908_v29, %v364_v24  ;;  %3119 = vmatmul.mubr.bf16.gmra.mrb[136].mxu1 %v5750_v22 }
 0x1e6   : > { %2581 = vmatprep.mubr.bf16.mxu0 %v5751_v23  ;;  %3126 = vmatprep.mubr.bf16.mxu1 %v5753_v27  ;;  %v371_v23 = vld [vmem:[#allocation2 + $0xb0] sm:$0xff] }
 0x1e7   : > { %3502 = vst [vmem:[#allocation2 + $0x78] sm:$0xff] %v3374_v31  ;;  %v5775_v31 = vld [vmem:[%s6243_s18 + $0x4e4] ss:$16 sps:$4 sm:$0xff]  }
 0x1e8   : > { %v2367_v32 = vpop.f32.mrb[32].mxu0  ;;  %v2912_v34 = vpop.f32.mrb[32].mxu1 }
 0x1e9   : > { %v2369_v35 = vpop.f32.mrb[33].mxu0  ;;  %v2913_v37 = vadd.f32 %v2912_v34, %v2367_v32  ;;  %v2914_v38 = vpop.f32.mrb[33].mxu1  ;;  %v372_v32 = vld [vmem:[#allocation2 + $0xb8] sm:$0xff] }
 0x1ea   : > { %v2370_v39 = vpop.f32.mrb[34].mxu0  ;;  %v2915_v43 = vpop.f32.mrb[34].mxu1  ;;  %v5777_v35 = vld [vmem:[%s6243_s18 + $0x4ec] ss:$16 sps:$4 sm:$0xff]  }
 0x1eb   : > { %v2372_v44 = vpop.f32.mrb[35].mxu0  ;;  %v3375_v46 = vadd.f32 %v2913_v37, %v365_v33  ;;  %v2916_v47 = vadd.f32 %v2915_v43, %v2370_v39  ;;  %v2917_v48 = vpop.f32.mrb[35].mxu1 }
 0x1ec   : > { %v5779_v44 = vld [vmem:[%s6243_s18 + $0x4e0] ss:$16 sps:$4 sm:$0xff]   ;;  %v5780_v48 = vld [vmem:[%s6243_s18 + $0x4e8] ss:$16 sps:$4 sm:$0xff]  }
 0x1ed   : > { %2582 = vmatmul.mubr.bf16.gmra.mrb[140].mxu0 %v5755_v36  ;;  %3503 = vst [vmem:[#allocation2 + $0x80] sm:$0xff] %v3375_v46  ;;  %v3376_v49 = vadd.f32 %v2916_v47, %v366_v42  ;;  %3127 = vmatmul.mubr.bf16.gmra.mrb[140].mxu1 %v5756_v40 }
 0x1ee   : > { %2589 = vmatprep.mubr.bf16.mxu0 %v5757_v41  ;;  %3134 = vmatprep.mubr.bf16.mxu1 %v5759_v45  ;;  %v373_v41 = vld [vmem:[#allocation2 + $0xc0] sm:$0xff] }
 0x1ef   : > { %3504 = vst [vmem:[#allocation2 + $0x88] sm:$0xff] %v3376_v49  ;;  %v5781_v49 = vld [vmem:[%s6243_s18 + $0x504] ss:$16 sps:$4 sm:$0xff]  }
 0x1f0   : > { %v2375_v50 = vpop.f32.mrb[36].mxu0  ;;  %v2920_v52 = vpop.f32.mrb[36].mxu1 }
 0x1f1   : > { %v2377_v53 = vpop.f32.mrb[37].mxu0  ;;  %v2921_v55 = vadd.f32 %v2920_v52, %v2375_v50  ;;  %v2922_v56 = vpop.f32.mrb[37].mxu1  ;;  %v374_v50 = vld [vmem:[#allocation2 + $0xc8] sm:$0xff] }
 0x1f2   : > { %v2378_v57 = vpop.f32.mrb[38].mxu0  ;;  %v2923_v61 = vpop.f32.mrb[38].mxu1  ;;  %v5783_v53 = vld [vmem:[%s6243_s18 + $0x50c] ss:$16 sps:$4 sm:$0xff]  }
 0x1f3   : > { %v2380_v62 = vpop.f32.mrb[39].mxu0  ;;  %v3377_v0 = vadd.f32 %v2921_v55, %v367_v51  ;;  %v2924_v1 = vadd.f32 %v2923_v61, %v2378_v57  ;;  %v2925_v2 = vpop.f32.mrb[39].mxu1 }
 0x1f4   : > { %v5785_v62 = vld [vmem:[%s6243_s18 + $0x500] ss:$16 sps:$4 sm:$0xff]   ;;  %v5786_v2 = vld [vmem:[%s6243_s18 + $0x508] ss:$16 sps:$4 sm:$0xff]  }
 0x1f5   : > { %2590 = vmatmul.mubr.bf16.gmra.mrb[144].mxu0 %v5761_v54  ;;  %3505 = vst [vmem:[#allocation2 + $0x90] sm:$0xff] %v3377_v0  ;;  %v3378_v3 = vadd.f32 %v2924_v1, %v368_v60  ;;  %3135 = vmatmul.mubr.bf16.gmra.mrb[144].mxu1 %v5762_v58 }
 0x1f6   : > { %2597 = vmatprep.mubr.bf16.mxu0 %v5763_v59  ;;  %3142 = vmatprep.mubr.bf16.mxu1 %v5765_v63  ;;  %v375_v59 = vld [vmem:[#allocation2 + $0xd0] sm:$0xff] }
 0x1f7   : > { %3506 = vst [vmem:[#allocation2 + $0x98] sm:$0xff] %v3378_v3  ;;  %v5787_v3 = vld [vmem:[%s6243_s18 + $0x524] ss:$16 sps:$4 sm:$0xff]  }
 0x1f8   : > { %v2383_v4 = vpop.f32.mrb[40].mxu0  ;;  %v2928_v6 = vpop.f32.mrb[40].mxu1 }
 0x1f9   : > { %v2385_v7 = vpop.f32.mrb[41].mxu0  ;;  %v2929_v9 = vadd.f32 %v2928_v6, %v2383_v4  ;;  %v2930_v10 = vpop.f32.mrb[41].mxu1  ;;  %v376_v4 = vld [vmem:[#allocation2 + $0xd8] sm:$0xff] }
 0x1fa   : > { %v2386_v11 = vpop.f32.mrb[42].mxu0  ;;  %v2931_v15 = vpop.f32.mrb[42].mxu1  ;;  %v5789_v7 = vld [vmem:[%s6243_s18 + $0x52c] ss:$16 sps:$4 sm:$0xff]  }
 0x1fb   : > { %v2388_v16 = vpop.f32.mrb[43].mxu0  ;;  %v3379_v18 = vadd.f32 %v2929_v9, %v369_v5  ;;  %v2932_v19 = vadd.f32 %v2931_v15, %v2386_v11  ;;  %v2933_v20 = vpop.f32.mrb[43].mxu1 }
 0x1fc   : > { %v5791_v16 = vld [vmem:[%s6243_s18 + $0x520] ss:$16 sps:$4 sm:$0xff]   ;;  %v5792_v20 = vld [vmem:[%s6243_s18 + $0x528] ss:$16 sps:$4 sm:$0xff]  }
 0x1fd   : > { %2598 = vmatmul.mubr.bf16.gmra.mrb[148].mxu0 %v5767_v8  ;;  %3507 = vst [vmem:[#allocation2 + $0xa0] sm:$0xff] %v3379_v18  ;;  %v3380_v21 = vadd.f32 %v2932_v19, %v370_v14  ;;  %3143 = vmatmul.mubr.bf16.gmra.mrb[148].mxu1 %v5768_v12 }
 0x1fe   : > { %2605 = vmatprep.mubr.bf16.mxu0 %v5769_v13  ;;  %3150 = vmatprep.mubr.bf16.mxu1 %v5771_v17  ;;  %v377_v13 = vld [vmem:[#allocation2 + $0xe0] sm:$0xff] }
 0x1ff   : > { %3508 = vst [vmem:[#allocation2 + $0xa8] sm:$0xff] %v3380_v21  ;;  %v5793_v21 = vld [vmem:[%s6243_s18 + $0x544] ss:$16 sps:$4 sm:$0xff]  }
 0x200   : > { %v2391_v22 = vpop.f32.mrb[44].mxu0  ;;  %v2936_v24 = vpop.f32.mrb[44].mxu1 }
 0x201   : > { %v2393_v25 = vpop.f32.mrb[45].mxu0  ;;  %v2937_v27 = vadd.f32 %v2936_v24, %v2391_v22  ;;  %v2938_v28 = vpop.f32.mrb[45].mxu1  ;;  %v378_v22 = vld [vmem:[#allocation2 + $0xe8] sm:$0xff] }
 0x202   : > { %v2394_v29 = vpop.f32.mrb[46].mxu0  ;;  %v2939_v33 = vpop.f32.mrb[46].mxu1  ;;  %v5795_v25 = vld [vmem:[%s6243_s18 + $0x54c] ss:$16 sps:$4 sm:$0xff]  }
 0x203   : > { %v2396_v34 = vpop.f32.mrb[47].mxu0  ;;  %v3381_v36 = vadd.f32 %v2937_v27, %v371_v23  ;;  %v2940_v37 = vadd.f32 %v2939_v33, %v2394_v29  ;;  %v2941_v38 = vpop.f32.mrb[47].mxu1 }
 0x204   : > { %v5797_v34 = vld [vmem:[%s6243_s18 + $0x540] ss:$16 sps:$4 sm:$0xff]   ;;  %v5798_v38 = vld [vmem:[%s6243_s18 + $0x548] ss:$16 sps:$4 sm:$0xff]  }
 0x205   : > { %2606 = vmatmul.mubr.bf16.gmra.mrb[152].mxu0 %v5773_v26  ;;  %3509 = vst [vmem:[#allocation2 + $0xb0] sm:$0xff] %v3381_v36  ;;  %v3382_v39 = vadd.f32 %v2940_v37, %v372_v32  ;;  %3151 = vmatmul.mubr.bf16.gmra.mrb[152].mxu1 %v5774_v30 }
 0x206   : > { %2613 = vmatprep.mubr.bf16.mxu0 %v5775_v31  ;;  %3158 = vmatprep.mubr.bf16.mxu1 %v5777_v35  ;;  %v379_v31 = vld [vmem:[#allocation2 + $0xf0] sm:$0xff] }
 0x207   : > { %3510 = vst [vmem:[#allocation2 + $0xb8] sm:$0xff] %v3382_v39  ;;  %v5799_v39 = vld [vmem:[%s6243_s18 + $0x564] ss:$16 sps:$4 sm:$0xff]  }
 0x208   : > { %v2399_v40 = vpop.f32.mrb[48].mxu0  ;;  %v2944_v42 = vpop.f32.mrb[48].mxu1 }
 0x209   : > { %v2401_v43 = vpop.f32.mrb[49].mxu0  ;;  %v2945_v45 = vadd.f32 %v2944_v42, %v2399_v40  ;;  %v2946_v46 = vpop.f32.mrb[49].mxu1  ;;  %v380_v40 = vld [vmem:[#allocation2 + $0xf8] sm:$0xff] }
 0x20a   : > { %v2402_v47 = vpop.f32.mrb[50].mxu0  ;;  %v2947_v51 = vpop.f32.mrb[50].mxu1  ;;  %v5801_v43 = vld [vmem:[%s6243_s18 + $0x56c] ss:$16 sps:$4 sm:$0xff]  }
 0x20b   : > { %v2404_v52 = vpop.f32.mrb[51].mxu0  ;;  %v3383_v54 = vadd.f32 %v2945_v45, %v373_v41  ;;  %v2948_v55 = vadd.f32 %v2947_v51, %v2402_v47  ;;  %v2949_v56 = vpop.f32.mrb[51].mxu1 }
 0x20c   : > { %v5803_v52 = vld [vmem:[%s6243_s18 + $0x560] ss:$16 sps:$4 sm:$0xff]   ;;  %v5804_v56 = vld [vmem:[%s6243_s18 + $0x568] ss:$16 sps:$4 sm:$0xff]  }
 0x20d   : > { %2614 = vmatmul.mubr.bf16.gmra.mrb[156].mxu0 %v5779_v44  ;;  %3511 = vst [vmem:[#allocation2 + $0xc0] sm:$0xff] %v3383_v54  ;;  %v3384_v57 = vadd.f32 %v2948_v55, %v374_v50  ;;  %3159 = vmatmul.mubr.bf16.gmra.mrb[156].mxu1 %v5780_v48 }
 0x20e   : > { %2621 = vmatprep.mubr.bf16.mxu0 %v5781_v49  ;;  %3166 = vmatprep.mubr.bf16.mxu1 %v5783_v53  ;;  %v381_v49 = vld [vmem:[#allocation2 + $0x100] sm:$0xff] }
 0x20f   : > { %3512 = vst [vmem:[#allocation2 + $0xc8] sm:$0xff] %v3384_v57  ;;  %v5805_v57 = vld [vmem:[%s6243_s18 + $0x584] ss:$16 sps:$4 sm:$0xff]  }
 0x210   : > { %v2407_v58 = vpop.f32.mrb[52].mxu0  ;;  %v2952_v60 = vpop.f32.mrb[52].mxu1 }
 0x211   : > { %v2409_v61 = vpop.f32.mrb[53].mxu0  ;;  %v2953_v63 = vadd.f32 %v2952_v60, %v2407_v58  ;;  %v2954_v0 = vpop.f32.mrb[53].mxu1  ;;  %v382_v58 = vld [vmem:[#allocation2 + $0x108] sm:$0xff] }
 0x212   : > { %v2410_v1 = vpop.f32.mrb[54].mxu0  ;;  %v2955_v5 = vpop.f32.mrb[54].mxu1  ;;  %v5807_v61 = vld [vmem:[%s6243_s18 + $0x58c] ss:$16 sps:$4 sm:$0xff]  }
 0x213   : > { %v2412_v6 = vpop.f32.mrb[55].mxu0  ;;  %v3385_v8 = vadd.f32 %v2953_v63, %v375_v59  ;;  %v2956_v9 = vadd.f32 %v2955_v5, %v2410_v1  ;;  %v2957_v10 = vpop.f32.mrb[55].mxu1 }
 0x214   : > { %v5809_v6 = vld [vmem:[%s6243_s18 + $0x580] ss:$16 sps:$4 sm:$0xff]   ;;  %v5810_v10 = vld [vmem:[%s6243_s18 + $0x588] ss:$16 sps:$4 sm:$0xff]  }
 0x215   : > { %2622 = vmatmul.mubr.bf16.gmra.mrb[160].mxu0 %v5785_v62  ;;  %3513 = vst [vmem:[#allocation2 + $0xd0] sm:$0xff] %v3385_v8  ;;  %v3386_v11 = vadd.f32 %v2956_v9, %v376_v4  ;;  %3167 = vmatmul.mubr.bf16.gmra.mrb[160].mxu1 %v5786_v2 }
 0x216   : > { %2629 = vmatprep.mubr.bf16.mxu0 %v5787_v3  ;;  %3174 = vmatprep.mubr.bf16.mxu1 %v5789_v7  ;;  %v383_v3 = vld [vmem:[#allocation2 + $0x110] sm:$0xff] }
 0x217   : > { %3514 = vst [vmem:[#allocation2 + $0xd8] sm:$0xff] %v3386_v11  ;;  %v5811_v11 = vld [vmem:[%s6243_s18 + $0x5a4] ss:$16 sps:$4 sm:$0xff]  }
 0x218   : > { %v2415_v12 = vpop.f32.mrb[56].mxu0  ;;  %v2960_v14 = vpop.f32.mrb[56].mxu1 }
 0x219   : > { %v2417_v15 = vpop.f32.mrb[57].mxu0  ;;  %v2961_v17 = vadd.f32 %v2960_v14, %v2415_v12  ;;  %v2962_v18 = vpop.f32.mrb[57].mxu1  ;;  %v384_v12 = vld [vmem:[#allocation2 + $0x118] sm:$0xff] }
 0x21a   : > { %v2418_v19 = vpop.f32.mrb[58].mxu0  ;;  %v2963_v23 = vpop.f32.mrb[58].mxu1  ;;  %v5813_v15 = vld [vmem:[%s6243_s18 + $0x5ac] ss:$16 sps:$4 sm:$0xff]  }
 0x21b   : > { %v2420_v24 = vpop.f32.mrb[59].mxu0  ;;  %v3387_v26 = vadd.f32 %v2961_v17, %v377_v13  ;;  %v2964_v27 = vadd.f32 %v2963_v23, %v2418_v19  ;;  %v2965_v28 = vpop.f32.mrb[59].mxu1 }
 0x21c   : > { %v5815_v24 = vld [vmem:[%s6243_s18 + $0x5a0] ss:$16 sps:$4 sm:$0xff]   ;;  %v5816_v28 = vld [vmem:[%s6243_s18 + $0x5a8] ss:$16 sps:$4 sm:$0xff]  }
 0x21d   : > { %2630 = vmatmul.mubr.bf16.gmra.mrb[164].mxu0 %v5791_v16  ;;  %3515 = vst [vmem:[#allocation2 + $0xe0] sm:$0xff] %v3387_v26  ;;  %v3388_v29 = vadd.f32 %v2964_v27, %v378_v22  ;;  %3175 = vmatmul.mubr.bf16.gmra.mrb[164].mxu1 %v5792_v20 }
 0x21e   : > { %2637 = vmatprep.mubr.bf16.mxu0 %v5793_v21  ;;  %3182 = vmatprep.mubr.bf16.mxu1 %v5795_v25  ;;  %v385_v21 = vld [vmem:[#allocation2 + $0x120] sm:$0xff] }
 0x21f   : > { %3516 = vst [vmem:[#allocation2 + $0xe8] sm:$0xff] %v3388_v29  ;;  %v5817_v29 = vld [vmem:[%s6243_s18 + $0x5c4] ss:$16 sps:$4 sm:$0xff]  }
 0x220   : > { %v2423_v30 = vpop.f32.mrb[60].mxu0  ;;  %v2968_v32 = vpop.f32.mrb[60].mxu1 }
 0x221   : > { %v2425_v33 = vpop.f32.mrb[61].mxu0  ;;  %v2969_v35 = vadd.f32 %v2968_v32, %v2423_v30  ;;  %v2970_v36 = vpop.f32.mrb[61].mxu1  ;;  %v386_v30 = vld [vmem:[#allocation2 + $0x128] sm:$0xff] }
 0x222   : > { %v2426_v37 = vpop.f32.mrb[62].mxu0  ;;  %v2971_v41 = vpop.f32.mrb[62].mxu1  ;;  %v5819_v33 = vld [vmem:[%s6243_s18 + $0x5cc] ss:$16 sps:$4 sm:$0xff]  }
 0x223   : > { %v2428_v42 = vpop.f32.mrb[63].mxu0  ;;  %v3389_v44 = vadd.f32 %v2969_v35, %v379_v31  ;;  %v2972_v45 = vadd.f32 %v2971_v41, %v2426_v37  ;;  %v2973_v46 = vpop.f32.mrb[63].mxu1 }
 0x224   : > { %v5821_v42 = vld [vmem:[%s6243_s18 + $0x5c0] ss:$16 sps:$4 sm:$0xff]   ;;  %v5822_v46 = vld [vmem:[%s6243_s18 + $0x5c8] ss:$16 sps:$4 sm:$0xff]  }
 0x225   : > { %2638 = vmatmul.mubr.bf16.gmra.mrb[168].mxu0 %v5797_v34  ;;  %3517 = vst [vmem:[#allocation2 + $0xf0] sm:$0xff] %v3389_v44  ;;  %v3390_v47 = vadd.f32 %v2972_v45, %v380_v40  ;;  %3183 = vmatmul.mubr.bf16.gmra.mrb[168].mxu1 %v5798_v38 }
 0x226   : > { %2645 = vmatprep.mubr.bf16.mxu0 %v5799_v39  ;;  %3190 = vmatprep.mubr.bf16.mxu1 %v5801_v43  ;;  %v387_v39 = vld [vmem:[#allocation2 + $0x130] sm:$0xff] }
 0x227   : > { %3518 = vst [vmem:[#allocation2 + $0xf8] sm:$0xff] %v3390_v47  ;;  %v5823_v47 = vld [vmem:[%s6243_s18 + $0x5e4] ss:$16 sps:$4 sm:$0xff]  }
 0x228   : > { %v2431_v48 = vpop.f32.mrb[64].mxu0  ;;  %v2976_v50 = vpop.f32.mrb[64].mxu1 }
 0x229   : > { %v2433_v51 = vpop.f32.mrb[65].mxu0  ;;  %v2977_v53 = vadd.f32 %v2976_v50, %v2431_v48  ;;  %v2978_v54 = vpop.f32.mrb[65].mxu1  ;;  %v388_v48 = vld [vmem:[#allocation2 + $0x138] sm:$0xff] }
 0x22a   : > { %v2434_v55 = vpop.f32.mrb[66].mxu0  ;;  %v2979_v59 = vpop.f32.mrb[66].mxu1  ;;  %v5825_v51 = vld [vmem:[%s6243_s18 + $0x5ec] ss:$16 sps:$4 sm:$0xff]  }
 0x22b   : > { %v2436_v60 = vpop.f32.mrb[67].mxu0  ;;  %v3391_v62 = vadd.f32 %v2977_v53, %v381_v49  ;;  %v2980_v63 = vadd.f32 %v2979_v59, %v2434_v55  ;;  %v2981_v0 = vpop.f32.mrb[67].mxu1 }
 0x22c   : > { %v5827_v60 = vld [vmem:[%s6243_s18 + $0x5e0] ss:$16 sps:$4 sm:$0xff]   ;;  %v5828_v0 = vld [vmem:[%s6243_s18 + $0x5e8] ss:$16 sps:$4 sm:$0xff]  }
 0x22d   : > { %2646 = vmatmul.mubr.bf16.gmra.mrb[172].mxu0 %v5803_v52  ;;  %3519 = vst [vmem:[#allocation2 + $0x100] sm:$0xff] %v3391_v62  ;;  %v3392_v1 = vadd.f32 %v2980_v63, %v382_v58  ;;  %3191 = vmatmul.mubr.bf16.gmra.mrb[172].mxu1 %v5804_v56 }
 0x22e   : > { %2653 = vmatprep.mubr.bf16.mxu0 %v5805_v57  ;;  %3198 = vmatprep.mubr.bf16.mxu1 %v5807_v61  ;;  %v389_v57 = vld [vmem:[#allocation2 + $0x140] sm:$0xff] }
 0x22f   : > { %3520 = vst [vmem:[#allocation2 + $0x108] sm:$0xff] %v3392_v1  ;;  %v5829_v1 = vld [vmem:[%s6243_s18 + $0x604] ss:$16 sps:$4 sm:$0xff]  }
 0x230   : > { %v2439_v2 = vpop.f32.mrb[68].mxu0  ;;  %v2984_v4 = vpop.f32.mrb[68].mxu1 }
 0x231   : > { %v2441_v5 = vpop.f32.mrb[69].mxu0  ;;  %v2985_v7 = vadd.f32 %v2984_v4, %v2439_v2  ;;  %v2986_v8 = vpop.f32.mrb[69].mxu1  ;;  %v390_v2 = vld [vmem:[#allocation2 + $0x148] sm:$0xff] }
 0x232   : > { %v2442_v9 = vpop.f32.mrb[70].mxu0  ;;  %v2987_v13 = vpop.f32.mrb[70].mxu1  ;;  %v5831_v5 = vld [vmem:[%s6243_s18 + $0x60c] ss:$16 sps:$4 sm:$0xff]  }
 0x233   : > { %v2444_v14 = vpop.f32.mrb[71].mxu0  ;;  %v3393_v16 = vadd.f32 %v2985_v7, %v383_v3  ;;  %v2988_v17 = vadd.f32 %v2987_v13, %v2442_v9  ;;  %v2989_v18 = vpop.f32.mrb[71].mxu1 }
 0x234   : > { %v5833_v14 = vld [vmem:[%s6243_s18 + $0x600] ss:$16 sps:$4 sm:$0xff]   ;;  %v5834_v18 = vld [vmem:[%s6243_s18 + $0x608] ss:$16 sps:$4 sm:$0xff]  }
 0x235   : > { %2654 = vmatmul.mubr.bf16.gmra.mrb[176].mxu0 %v5809_v6  ;;  %3521 = vst [vmem:[#allocation2 + $0x110] sm:$0xff] %v3393_v16  ;;  %v3394_v19 = vadd.f32 %v2988_v17, %v384_v12  ;;  %3199 = vmatmul.mubr.bf16.gmra.mrb[176].mxu1 %v5810_v10 }
 0x236   : > { %2661 = vmatprep.mubr.bf16.mxu0 %v5811_v11  ;;  %3206 = vmatprep.mubr.bf16.mxu1 %v5813_v15  ;;  %v391_v11 = vld [vmem:[#allocation2 + $0x150] sm:$0xff] }
 0x237   : > { %3522 = vst [vmem:[#allocation2 + $0x118] sm:$0xff] %v3394_v19  ;;  %v5835_v19 = vld [vmem:[%s6243_s18 + $0x624] ss:$16 sps:$4 sm:$0xff]  }
 0x238   : > { %v2447_v20 = vpop.f32.mrb[72].mxu0  ;;  %v2992_v22 = vpop.f32.mrb[72].mxu1 }
 0x239   : > { %v2449_v23 = vpop.f32.mrb[73].mxu0  ;;  %v2993_v25 = vadd.f32 %v2992_v22, %v2447_v20  ;;  %v2994_v26 = vpop.f32.mrb[73].mxu1  ;;  %v392_v20 = vld [vmem:[#allocation2 + $0x158] sm:$0xff] }
 0x23a   : > { %v2450_v27 = vpop.f32.mrb[74].mxu0  ;;  %v2995_v31 = vpop.f32.mrb[74].mxu1  ;;  %v5837_v23 = vld [vmem:[%s6243_s18 + $0x62c] ss:$16 sps:$4 sm:$0xff]  }
 0x23b   : > { %v2452_v32 = vpop.f32.mrb[75].mxu0  ;;  %v3395_v34 = vadd.f32 %v2993_v25, %v385_v21  ;;  %v2996_v35 = vadd.f32 %v2995_v31, %v2450_v27  ;;  %v2997_v36 = vpop.f32.mrb[75].mxu1 }
 0x23c   : > { %v5839_v32 = vld [vmem:[%s6243_s18 + $0x620] ss:$16 sps:$4 sm:$0xff]   ;;  %v5840_v36 = vld [vmem:[%s6243_s18 + $0x628] ss:$16 sps:$4 sm:$0xff]  }
 0x23d   : > { %2662 = vmatmul.mubr.bf16.gmra.mrb[180].mxu0 %v5815_v24  ;;  %3523 = vst [vmem:[#allocation2 + $0x120] sm:$0xff] %v3395_v34  ;;  %v3396_v37 = vadd.f32 %v2996_v35, %v386_v30  ;;  %3207 = vmatmul.mubr.bf16.gmra.mrb[180].mxu1 %v5816_v28 }
 0x23e   : > { %2669 = vmatprep.mubr.bf16.mxu0 %v5817_v29  ;;  %3214 = vmatprep.mubr.bf16.mxu1 %v5819_v33  ;;  %v393_v29 = vld [vmem:[#allocation2 + $0x160] sm:$0xff] }
 0x23f   : > { %3524 = vst [vmem:[#allocation2 + $0x128] sm:$0xff] %v3396_v37  ;;  %v5841_v37 = vld [vmem:[%s6243_s18 + $0x644] ss:$16 sps:$4 sm:$0xff]  }
 0x240   : > { %v2455_v38 = vpop.f32.mrb[76].mxu0  ;;  %v3000_v40 = vpop.f32.mrb[76].mxu1 }
 0x241   : > { %v2457_v41 = vpop.f32.mrb[77].mxu0  ;;  %v3001_v43 = vadd.f32 %v3000_v40, %v2455_v38  ;;  %v3002_v44 = vpop.f32.mrb[77].mxu1  ;;  %v394_v38 = vld [vmem:[#allocation2 + $0x168] sm:$0xff] }
 0x242   : > { %v2458_v45 = vpop.f32.mrb[78].mxu0  ;;  %v3003_v49 = vpop.f32.mrb[78].mxu1  ;;  %v5843_v41 = vld [vmem:[%s6243_s18 + $0x64c] ss:$16 sps:$4 sm:$0xff]  }
 0x243   : > { %v2460_v50 = vpop.f32.mrb[79].mxu0  ;;  %v3397_v52 = vadd.f32 %v3001_v43, %v387_v39  ;;  %v3004_v53 = vadd.f32 %v3003_v49, %v2458_v45  ;;  %v3005_v54 = vpop.f32.mrb[79].mxu1 }
 0x244   : > { %v5845_v50 = vld [vmem:[%s6243_s18 + $0x640] ss:$16 sps:$4 sm:$0xff]   ;;  %v5846_v54 = vld [vmem:[%s6243_s18 + $0x648] ss:$16 sps:$4 sm:$0xff]  }
 0x245   : > { %2670 = vmatmul.mubr.bf16.gmra.mrb[184].mxu0 %v5821_v42  ;;  %3525 = vst [vmem:[#allocation2 + $0x130] sm:$0xff] %v3397_v52  ;;  %v3398_v55 = vadd.f32 %v3004_v53, %v388_v48  ;;  %3215 = vmatmul.mubr.bf16.gmra.mrb[184].mxu1 %v5822_v46 }
 0x246   : > { %2677 = vmatprep.mubr.bf16.mxu0 %v5823_v47  ;;  %3222 = vmatprep.mubr.bf16.mxu1 %v5825_v51  ;;  %v395_v47 = vld [vmem:[#allocation2 + $0x170] sm:$0xff] }
 0x247   : > { %3526 = vst [vmem:[#allocation2 + $0x138] sm:$0xff] %v3398_v55  ;;  %v5847_v55 = vld [vmem:[%s6243_s18 + $0x664] ss:$16 sps:$4 sm:$0xff]  }
 0x248   : > { %v2463_v56 = vpop.f32.mrb[80].mxu0  ;;  %v3008_v58 = vpop.f32.mrb[80].mxu1 }
 0x249   : > { %v2465_v59 = vpop.f32.mrb[81].mxu0  ;;  %v3009_v61 = vadd.f32 %v3008_v58, %v2463_v56  ;;  %v3010_v62 = vpop.f32.mrb[81].mxu1  ;;  %v396_v56 = vld [vmem:[#allocation2 + $0x178] sm:$0xff] }
 0x24a   : > { %v2466_v63 = vpop.f32.mrb[82].mxu0  ;;  %v3011_v3 = vpop.f32.mrb[82].mxu1  ;;  %v5849_v59 = vld [vmem:[%s6243_s18 + $0x66c] ss:$16 sps:$4 sm:$0xff]  }
 0x24b   : > { %v2468_v4 = vpop.f32.mrb[83].mxu0  ;;  %v3399_v6 = vadd.f32 %v3009_v61, %v389_v57  ;;  %v3012_v7 = vadd.f32 %v3011_v3, %v2466_v63  ;;  %v3013_v8 = vpop.f32.mrb[83].mxu1 }
 0x24c   : > { %v5851_v4 = vld [vmem:[%s6243_s18 + $0x660] ss:$16 sps:$4 sm:$0xff]   ;;  %v5852_v8 = vld [vmem:[%s6243_s18 + $0x668] ss:$16 sps:$4 sm:$0xff]  }
 0x24d   : > { %2678 = vmatmul.mubr.bf16.gmra.mrb[188].mxu0 %v5827_v60  ;;  %3527 = vst [vmem:[#allocation2 + $0x140] sm:$0xff] %v3399_v6  ;;  %v3400_v9 = vadd.f32 %v3012_v7, %v390_v2  ;;  %3223 = vmatmul.mubr.bf16.gmra.mrb[188].mxu1 %v5828_v0 }
 0x24e   : > { %2685 = vmatprep.mubr.bf16.mxu0 %v5829_v1  ;;  %3230 = vmatprep.mubr.bf16.mxu1 %v5831_v5  ;;  %v397_v1 = vld [vmem:[#allocation2 + $0x180] sm:$0xff] }
 0x24f   : > { %3528 = vst [vmem:[#allocation2 + $0x148] sm:$0xff] %v3400_v9  ;;  %v5853_v9 = vld [vmem:[%s6243_s18 + $0x684] ss:$16 sps:$4 sm:$0xff]  }
 0x250   : > { %v2471_v10 = vpop.f32.mrb[84].mxu0  ;;  %v3016_v12 = vpop.f32.mrb[84].mxu1 }
 0x251   : > { %v2473_v13 = vpop.f32.mrb[85].mxu0  ;;  %v3017_v15 = vadd.f32 %v3016_v12, %v2471_v10  ;;  %v3018_v16 = vpop.f32.mrb[85].mxu1  ;;  %v398_v10 = vld [vmem:[#allocation2 + $0x188] sm:$0xff] }
 0x252   : > { %v2474_v17 = vpop.f32.mrb[86].mxu0  ;;  %v3019_v21 = vpop.f32.mrb[86].mxu1  ;;  %v5855_v13 = vld [vmem:[%s6243_s18 + $0x68c] ss:$16 sps:$4 sm:$0xff]  }
 0x253   : > { %v2476_v22 = vpop.f32.mrb[87].mxu0  ;;  %v3401_v24 = vadd.f32 %v3017_v15, %v391_v11  ;;  %v3020_v25 = vadd.f32 %v3019_v21, %v2474_v17  ;;  %v3021_v26 = vpop.f32.mrb[87].mxu1 }
 0x254   : > { %v5857_v22 = vld [vmem:[%s6243_s18 + $0x680] ss:$16 sps:$4 sm:$0xff]   ;;  %v5858_v26 = vld [vmem:[%s6243_s18 + $0x688] ss:$16 sps:$4 sm:$0xff]  }
 0x255   : > { %2686 = vmatmul.mubr.bf16.gmra.mrb[192].mxu0 %v5833_v14  ;;  %3529 = vst [vmem:[#allocation2 + $0x150] sm:$0xff] %v3401_v24  ;;  %v3402_v27 = vadd.f32 %v3020_v25, %v392_v20  ;;  %3231 = vmatmul.mubr.bf16.gmra.mrb[192].mxu1 %v5834_v18 }
 0x256   : > { %2693 = vmatprep.mubr.bf16.mxu0 %v5835_v19  ;;  %3238 = vmatprep.mubr.bf16.mxu1 %v5837_v23  ;;  %v399_v19 = vld [vmem:[#allocation2 + $0x190] sm:$0xff] }
 0x257   : > { %3530 = vst [vmem:[#allocation2 + $0x158] sm:$0xff] %v3402_v27  ;;  %v5859_v27 = vld [vmem:[%s6243_s18 + $0x6a4] ss:$16 sps:$4 sm:$0xff]  }
 0x258   : > { %v2479_v28 = vpop.f32.mrb[88].mxu0  ;;  %v3024_v30 = vpop.f32.mrb[88].mxu1 }
 0x259   : > { %v2481_v31 = vpop.f32.mrb[89].mxu0  ;;  %v3025_v33 = vadd.f32 %v3024_v30, %v2479_v28  ;;  %v3026_v34 = vpop.f32.mrb[89].mxu1  ;;  %v400_v28 = vld [vmem:[#allocation2 + $0x198] sm:$0xff] }
 0x25a   : > { %v2482_v35 = vpop.f32.mrb[90].mxu0  ;;  %v3027_v39 = vpop.f32.mrb[90].mxu1  ;;  %v5861_v31 = vld [vmem:[%s6243_s18 + $0x6ac] ss:$16 sps:$4 sm:$0xff]  }
 0x25b   : > { %v2484_v40 = vpop.f32.mrb[91].mxu0  ;;  %v3403_v42 = vadd.f32 %v3025_v33, %v393_v29  ;;  %v3028_v43 = vadd.f32 %v3027_v39, %v2482_v35  ;;  %v3029_v44 = vpop.f32.mrb[91].mxu1 }
 0x25c   : > { %v5863_v40 = vld [vmem:[%s6243_s18 + $0x6a0] ss:$16 sps:$4 sm:$0xff]   ;;  %v5864_v44 = vld [vmem:[%s6243_s18 + $0x6a8] ss:$16 sps:$4 sm:$0xff]  }
 0x25d   : > { %2694 = vmatmul.mubr.bf16.gmra.mrb[196].mxu0 %v5839_v32  ;;  %3531 = vst [vmem:[#allocation2 + $0x160] sm:$0xff] %v3403_v42  ;;  %v3404_v45 = vadd.f32 %v3028_v43, %v394_v38  ;;  %3239 = vmatmul.mubr.bf16.gmra.mrb[196].mxu1 %v5840_v36 }
 0x25e   : > { %2701 = vmatprep.mubr.bf16.mxu0 %v5841_v37  ;;  %3246 = vmatprep.mubr.bf16.mxu1 %v5843_v41  ;;  %v401_v37 = vld [vmem:[#allocation2 + $0x1a0] sm:$0xff] }
 0x25f   : > { %3532 = vst [vmem:[#allocation2 + $0x168] sm:$0xff] %v3404_v45  ;;  %v5865_v45 = vld [vmem:[%s6243_s18 + $0x6c4] ss:$16 sps:$4 sm:$0xff]  }
 0x260   : > { %v2487_v46 = vpop.f32.mrb[92].mxu0  ;;  %v3032_v48 = vpop.f32.mrb[92].mxu1 }
 0x261   : > { %v2489_v49 = vpop.f32.mrb[93].mxu0  ;;  %v3033_v51 = vadd.f32 %v3032_v48, %v2487_v46  ;;  %v3034_v52 = vpop.f32.mrb[93].mxu1  ;;  %v402_v46 = vld [vmem:[#allocation2 + $0x1a8] sm:$0xff] }
 0x262   : > { %v2490_v53 = vpop.f32.mrb[94].mxu0  ;;  %v3035_v57 = vpop.f32.mrb[94].mxu1  ;;  %v5867_v49 = vld [vmem:[%s6243_s18 + $0x6cc] ss:$16 sps:$4 sm:$0xff]  }
 0x263   : > { %v2492_v58 = vpop.f32.mrb[95].mxu0  ;;  %v3405_v60 = vadd.f32 %v3033_v51, %v395_v47  ;;  %v3036_v61 = vadd.f32 %v3035_v57, %v2490_v53  ;;  %v3037_v62 = vpop.f32.mrb[95].mxu1 }
 0x264   : > { %v5869_v58 = vld [vmem:[%s6243_s18 + $0x6c0] ss:$16 sps:$4 sm:$0xff]   ;;  %v5870_v62 = vld [vmem:[%s6243_s18 + $0x6c8] ss:$16 sps:$4 sm:$0xff]  }
 0x265   : > { %2702 = vmatmul.mubr.bf16.gmra.mrb[200].mxu0 %v5845_v50  ;;  %3533 = vst [vmem:[#allocation2 + $0x170] sm:$0xff] %v3405_v60  ;;  %v3406_v63 = vadd.f32 %v3036_v61, %v396_v56  ;;  %3247 = vmatmul.mubr.bf16.gmra.mrb[200].mxu1 %v5846_v54 }
 0x266   : > { %2709 = vmatprep.mubr.bf16.mxu0 %v5847_v55  ;;  %3254 = vmatprep.mubr.bf16.mxu1 %v5849_v59  ;;  %v403_v55 = vld [vmem:[#allocation2 + $0x1b0] sm:$0xff] }
 0x267   : > { %3534 = vst [vmem:[#allocation2 + $0x178] sm:$0xff] %v3406_v63  ;;  %v5871_v63 = vld [vmem:[%s6243_s18 + $0x6e4] ss:$16 sps:$4 sm:$0xff]  }
 0x268   : > { %v2495_v0 = vpop.f32.mrb[96].mxu0  ;;  %v3040_v2 = vpop.f32.mrb[96].mxu1 }
 0x269   : > { %v2497_v3 = vpop.f32.mrb[97].mxu0  ;;  %v3041_v5 = vadd.f32 %v3040_v2, %v2495_v0  ;;  %v3042_v6 = vpop.f32.mrb[97].mxu1  ;;  %v404_v0 = vld [vmem:[#allocation2 + $0x1b8] sm:$0xff] }
 0x26a   : > { %v2498_v7 = vpop.f32.mrb[98].mxu0  ;;  %v3043_v11 = vpop.f32.mrb[98].mxu1  ;;  %v5873_v3 = vld [vmem:[%s6243_s18 + $0x6ec] ss:$16 sps:$4 sm:$0xff]  }
 0x26b   : > { %v2500_v12 = vpop.f32.mrb[99].mxu0  ;;  %v3407_v14 = vadd.f32 %v3041_v5, %v397_v1  ;;  %v3044_v15 = vadd.f32 %v3043_v11, %v2498_v7  ;;  %v3045_v16 = vpop.f32.mrb[99].mxu1 }
 0x26c   : > { %v5875_v12 = vld [vmem:[%s6243_s18 + $0x6e0] ss:$16 sps:$4 sm:$0xff]   ;;  %v5876_v16 = vld [vmem:[%s6243_s18 + $0x6e8] ss:$16 sps:$4 sm:$0xff]  }
 0x26d   : > { %2710 = vmatmul.mubr.bf16.gmra.mrb[204].mxu0 %v5851_v4  ;;  %3535 = vst [vmem:[#allocation2 + $0x180] sm:$0xff] %v3407_v14  ;;  %v3408_v17 = vadd.f32 %v3044_v15, %v398_v10  ;;  %3255 = vmatmul.mubr.bf16.gmra.mrb[204].mxu1 %v5852_v8 }
 0x26e   : > { %2717 = vmatprep.mubr.bf16.mxu0 %v5853_v9  ;;  %3262 = vmatprep.mubr.bf16.mxu1 %v5855_v13  ;;  %v405_v9 = vld [vmem:[#allocation2 + $0x1c0] sm:$0xff] }
 0x26f   : > { %3536 = vst [vmem:[#allocation2 + $0x188] sm:$0xff] %v3408_v17  ;;  %v5877_v17 = vld [vmem:[%s6243_s18 + $0x704] ss:$16 sps:$4 sm:$0xff]  }
 0x270   : > { %v2503_v18 = vpop.f32.mrb[100].mxu0  ;;  %v3048_v20 = vpop.f32.mrb[100].mxu1 }
 0x271   : > { %v2505_v21 = vpop.f32.mrb[101].mxu0  ;;  %v3049_v23 = vadd.f32 %v3048_v20, %v2503_v18  ;;  %v3050_v24 = vpop.f32.mrb[101].mxu1  ;;  %v406_v18 = vld [vmem:[#allocation2 + $0x1c8] sm:$0xff] }
 0x272   : > { %v2506_v25 = vpop.f32.mrb[102].mxu0  ;;  %v3051_v29 = vpop.f32.mrb[102].mxu1  ;;  %v5879_v21 = vld [vmem:[%s6243_s18 + $0x70c] ss:$16 sps:$4 sm:$0xff]  }
 0x273   : > { %v2508_v30 = vpop.f32.mrb[103].mxu0  ;;  %v3409_v32 = vadd.f32 %v3049_v23, %v399_v19  ;;  %v3052_v33 = vadd.f32 %v3051_v29, %v2506_v25  ;;  %v3053_v34 = vpop.f32.mrb[103].mxu1 }
 0x274   : > { %v5881_v30 = vld [vmem:[%s6243_s18 + $0x700] ss:$16 sps:$4 sm:$0xff]   ;;  %v5882_v34 = vld [vmem:[%s6243_s18 + $0x708] ss:$16 sps:$4 sm:$0xff]  }
 0x275   : > { %2718 = vmatmul.mubr.bf16.gmra.mrb[208].mxu0 %v5857_v22  ;;  %3537 = vst [vmem:[#allocation2 + $0x190] sm:$0xff] %v3409_v32  ;;  %v3410_v35 = vadd.f32 %v3052_v33, %v400_v28  ;;  %3263 = vmatmul.mubr.bf16.gmra.mrb[208].mxu1 %v5858_v26 }
 0x276   : > { %2725 = vmatprep.mubr.bf16.mxu0 %v5859_v27  ;;  %3270 = vmatprep.mubr.bf16.mxu1 %v5861_v31  ;;  %v407_v27 = vld [vmem:[#allocation2 + $0x1d0] sm:$0xff] }
 0x277   : > { %3538 = vst [vmem:[#allocation2 + $0x198] sm:$0xff] %v3410_v35  ;;  %v5883_v35 = vld [vmem:[%s6243_s18 + $0x724] ss:$16 sps:$4 sm:$0xff]  }
 0x278   : > { %v2511_v36 = vpop.f32.mrb[104].mxu0  ;;  %v3056_v38 = vpop.f32.mrb[104].mxu1 }
 0x279   : > { %v2513_v39 = vpop.f32.mrb[105].mxu0  ;;  %v3057_v41 = vadd.f32 %v3056_v38, %v2511_v36  ;;  %v3058_v42 = vpop.f32.mrb[105].mxu1  ;;  %v408_v36 = vld [vmem:[#allocation2 + $0x1d8] sm:$0xff] }
 0x27a   : > { %v2514_v43 = vpop.f32.mrb[106].mxu0  ;;  %v3059_v47 = vpop.f32.mrb[106].mxu1  ;;  %v5885_v39 = vld [vmem:[%s6243_s18 + $0x72c] ss:$16 sps:$4 sm:$0xff]  }
 0x27b   : > { %v2516_v48 = vpop.f32.mrb[107].mxu0  ;;  %v3411_v50 = vadd.f32 %v3057_v41, %v401_v37  ;;  %v3060_v51 = vadd.f32 %v3059_v47, %v2514_v43  ;;  %v3061_v52 = vpop.f32.mrb[107].mxu1 }
 0x27c   : > { %v5887_v48 = vld [vmem:[%s6243_s18 + $0x720] ss:$16 sps:$4 sm:$0xff]   ;;  %v5888_v52 = vld [vmem:[%s6243_s18 + $0x728] ss:$16 sps:$4 sm:$0xff]  }
 0x27d   : > { %2726 = vmatmul.mubr.bf16.gmra.mrb[212].mxu0 %v5863_v40  ;;  %3539 = vst [vmem:[#allocation2 + $0x1a0] sm:$0xff] %v3411_v50  ;;  %v3412_v53 = vadd.f32 %v3060_v51, %v402_v46  ;;  %3271 = vmatmul.mubr.bf16.gmra.mrb[212].mxu1 %v5864_v44 }
 0x27e   : > { %2733 = vmatprep.mubr.bf16.mxu0 %v5865_v45  ;;  %3278 = vmatprep.mubr.bf16.mxu1 %v5867_v49  ;;  %v409_v45 = vld [vmem:[#allocation2 + $0x1e0] sm:$0xff] }
 0x27f   : > { %3540 = vst [vmem:[#allocation2 + $0x1a8] sm:$0xff] %v3412_v53  ;;  %v5889_v53 = vld [vmem:[%s6243_s18 + $0x744] ss:$16 sps:$4 sm:$0xff]  }
 0x280   : > { %v2519_v54 = vpop.f32.mrb[108].mxu0  ;;  %v3064_v56 = vpop.f32.mrb[108].mxu1 }
 0x281   : > { %v2521_v57 = vpop.f32.mrb[109].mxu0  ;;  %v3065_v59 = vadd.f32 %v3064_v56, %v2519_v54  ;;  %v3066_v60 = vpop.f32.mrb[109].mxu1  ;;  %v410_v54 = vld [vmem:[#allocation2 + $0x1e8] sm:$0xff] }
 0x282   : > { %v2522_v61 = vpop.f32.mrb[110].mxu0  ;;  %v3067_v1 = vpop.f32.mrb[110].mxu1  ;;  %v5891_v57 = vld [vmem:[%s6243_s18 + $0x74c] ss:$16 sps:$4 sm:$0xff]  }
 0x283   : > { %v2524_v2 = vpop.f32.mrb[111].mxu0  ;;  %v3413_v4 = vadd.f32 %v3065_v59, %v403_v55  ;;  %v3068_v5 = vadd.f32 %v3067_v1, %v2522_v61  ;;  %v3069_v6 = vpop.f32.mrb[111].mxu1 }
 0x284   : > { %v5893_v2 = vld [vmem:[%s6243_s18 + $0x740] ss:$16 sps:$4 sm:$0xff]   ;;  %v5894_v6 = vld [vmem:[%s6243_s18 + $0x748] ss:$16 sps:$4 sm:$0xff]  }
 0x285   : > { %2734 = vmatmul.mubr.bf16.gmra.mrb[216].mxu0 %v5869_v58  ;;  %3541 = vst [vmem:[#allocation2 + $0x1b0] sm:$0xff] %v3413_v4  ;;  %v3414_v7 = vadd.f32 %v3068_v5, %v404_v0  ;;  %3279 = vmatmul.mubr.bf16.gmra.mrb[216].mxu1 %v5870_v62 }
 0x286   : > { %2741 = vmatprep.mubr.bf16.mxu0 %v5871_v63  ;;  %3286 = vmatprep.mubr.bf16.mxu1 %v5873_v3  ;;  %v411_v63 = vld [vmem:[#allocation2 + $0x1f0] sm:$0xff] }
 0x287   : > { %3542 = vst [vmem:[#allocation2 + $0x1b8] sm:$0xff] %v3414_v7  ;;  %v5895_v7 = vld [vmem:[%s6243_s18 + $0x764] ss:$16 sps:$4 sm:$0xff]  }
 0x288   : > { %v2527_v8 = vpop.f32.mrb[112].mxu0  ;;  %v3072_v10 = vpop.f32.mrb[112].mxu1 }
 0x289   : > { %v2529_v11 = vpop.f32.mrb[113].mxu0  ;;  %v3073_v13 = vadd.f32 %v3072_v10, %v2527_v8  ;;  %v3074_v14 = vpop.f32.mrb[113].mxu1  ;;  %v412_v8 = vld [vmem:[#allocation2 + $0x1f8] sm:$0xff] }
 0x28a   : > { %v2530_v15 = vpop.f32.mrb[114].mxu0  ;;  %v3075_v19 = vpop.f32.mrb[114].mxu1  ;;  %v5897_v11 = vld [vmem:[%s6243_s18 + $0x76c] ss:$16 sps:$4 sm:$0xff]  }
 0x28b   : > { %v2532_v20 = vpop.f32.mrb[115].mxu0  ;;  %v3415_v22 = vadd.f32 %v3073_v13, %v405_v9  ;;  %v3076_v23 = vadd.f32 %v3075_v19, %v2530_v15  ;;  %v3077_v24 = vpop.f32.mrb[115].mxu1 }
 0x28c   : > { %v5899_v20 = vld [vmem:[%s6243_s18 + $0x760] ss:$16 sps:$4 sm:$0xff]   ;;  %v5900_v24 = vld [vmem:[%s6243_s18 + $0x768] ss:$16 sps:$4 sm:$0xff]  }
 0x28d   : > { %2742 = vmatmul.mubr.bf16.gmra.mrb[220].mxu0 %v5875_v12  ;;  %3543 = vst [vmem:[#allocation2 + $0x1c0] sm:$0xff] %v3415_v22  ;;  %v3416_v25 = vadd.f32 %v3076_v23, %v406_v18  ;;  %3287 = vmatmul.mubr.bf16.gmra.mrb[220].mxu1 %v5876_v16 }
 0x28e   : > { %2749 = vmatprep.mubr.bf16.mxu0 %v5877_v17  ;;  %3294 = vmatprep.mubr.bf16.mxu1 %v5879_v21  ;;  %v413_v17 = vld [vmem:[#allocation2 + $0x200] sm:$0xff] }
 0x28f   : > { %3544 = vst [vmem:[#allocation2 + $0x1c8] sm:$0xff] %v3416_v25  ;;  %v5901_v25 = vld [vmem:[%s6243_s18 + $0x784] ss:$16 sps:$4 sm:$0xff]  }
 0x290   : > { %v2535_v26 = vpop.f32.mrb[116].mxu0  ;;  %v3080_v28 = vpop.f32.mrb[116].mxu1 }
 0x291   : > { %v2537_v29 = vpop.f32.mrb[117].mxu0  ;;  %v3081_v31 = vadd.f32 %v3080_v28, %v2535_v26  ;;  %v3082_v32 = vpop.f32.mrb[117].mxu1  ;;  %v414_v26 = vld [vmem:[#allocation2 + $0x208] sm:$0xff] }
 0x292   : > { %v2538_v33 = vpop.f32.mrb[118].mxu0  ;;  %v3083_v37 = vpop.f32.mrb[118].mxu1  ;;  %v5903_v29 = vld [vmem:[%s6243_s18 + $0x78c] ss:$16 sps:$4 sm:$0xff]  }
 0x293   : > { %v2540_v38 = vpop.f32.mrb[119].mxu0  ;;  %v3417_v40 = vadd.f32 %v3081_v31, %v407_v27  ;;  %v3084_v41 = vadd.f32 %v3083_v37, %v2538_v33  ;;  %v3085_v42 = vpop.f32.mrb[119].mxu1 }
 0x294   : > { %v5905_v38 = vld [vmem:[%s6243_s18 + $0x780] ss:$16 sps:$4 sm:$0xff]   ;;  %v5906_v42 = vld [vmem:[%s6243_s18 + $0x788] ss:$16 sps:$4 sm:$0xff]  }
 0x295   : > { %2750 = vmatmul.mubr.bf16.gmra.mrb[224].mxu0 %v5881_v30  ;;  %3545 = vst [vmem:[#allocation2 + $0x1d0] sm:$0xff] %v3417_v40  ;;  %v3418_v43 = vadd.f32 %v3084_v41, %v408_v36  ;;  %3295 = vmatmul.mubr.bf16.gmra.mrb[224].mxu1 %v5882_v34 }
 0x296   : > { %2757 = vmatprep.mubr.bf16.mxu0 %v5883_v35  ;;  %3302 = vmatprep.mubr.bf16.mxu1 %v5885_v39  ;;  %v415_v35 = vld [vmem:[#allocation2 + $0x210] sm:$0xff] }
 0x297   : > { %3546 = vst [vmem:[#allocation2 + $0x1d8] sm:$0xff] %v3418_v43  ;;  %v5907_v43 = vld [vmem:[%s6243_s18 + $0x7a4] ss:$16 sps:$4 sm:$0xff]  }
 0x298   : > { %v2543_v44 = vpop.f32.mrb[120].mxu0  ;;  %v3088_v46 = vpop.f32.mrb[120].mxu1 }
 0x299   : > { %v2545_v47 = vpop.f32.mrb[121].mxu0  ;;  %v3089_v49 = vadd.f32 %v3088_v46, %v2543_v44  ;;  %v3090_v50 = vpop.f32.mrb[121].mxu1  ;;  %v416_v44 = vld [vmem:[#allocation2 + $0x218] sm:$0xff] }
 0x29a   : > { %v2546_v51 = vpop.f32.mrb[122].mxu0  ;;  %v3091_v55 = vpop.f32.mrb[122].mxu1  ;;  %v5909_v47 = vld [vmem:[%s6243_s18 + $0x7ac] ss:$16 sps:$4 sm:$0xff]  }
 0x29b   : > { %v2548_v56 = vpop.f32.mrb[123].mxu0  ;;  %v3419_v58 = vadd.f32 %v3089_v49, %v409_v45  ;;  %v3092_v59 = vadd.f32 %v3091_v55, %v2546_v51  ;;  %v3093_v60 = vpop.f32.mrb[123].mxu1 }
 0x29c   : > { %v5911_v56 = vld [vmem:[%s6243_s18 + $0x7a0] ss:$16 sps:$4 sm:$0xff]   ;;  %v5912_v60 = vld [vmem:[%s6243_s18 + $0x7a8] ss:$16 sps:$4 sm:$0xff]  }
 0x29d   : > { %2758 = vmatmul.mubr.bf16.gmra.mrb[228].mxu0 %v5887_v48  ;;  %3547 = vst [vmem:[#allocation2 + $0x1e0] sm:$0xff] %v3419_v58  ;;  %v3420_v61 = vadd.f32 %v3092_v59, %v410_v54  ;;  %3303 = vmatmul.mubr.bf16.gmra.mrb[228].mxu1 %v5888_v52 }
 0x29e   : > { %2765 = vmatprep.mubr.bf16.mxu0 %v5889_v53  ;;  %3310 = vmatprep.mubr.bf16.mxu1 %v5891_v57  ;;  %v417_v53 = vld [vmem:[#allocation2 + $0x220] sm:$0xff] }
 0x29f   : > { %3548 = vst [vmem:[#allocation2 + $0x1e8] sm:$0xff] %v3420_v61  ;;  %v5913_v61 = vld [vmem:[%s6243_s18 + $0x7c4] ss:$16 sps:$4 sm:$0xff]  }
 0x2a0   : > { %v2551_v62 = vpop.f32.mrb[124].mxu0  ;;  %v3096_v0 = vpop.f32.mrb[124].mxu1 }
 0x2a1   : > { %v2553_v1 = vpop.f32.mrb[125].mxu0  ;;  %v3097_v3 = vadd.f32 %v3096_v0, %v2551_v62  ;;  %v3098_v4 = vpop.f32.mrb[125].mxu1  ;;  %v418_v62 = vld [vmem:[#allocation2 + $0x228] sm:$0xff] }
 0x2a2   : > { %v2554_v5 = vpop.f32.mrb[126].mxu0  ;;  %v3099_v9 = vpop.f32.mrb[126].mxu1  ;;  %v5915_v1 = vld [vmem:[%s6243_s18 + $0x7cc] ss:$16 sps:$4 sm:$0xff]  }
 0x2a3   : > { %v2556_v10 = vpop.f32.mrb[127].mxu0  ;;  %v3421_v12 = vadd.f32 %v3097_v3, %v411_v63  ;;  %v3100_v13 = vadd.f32 %v3099_v9, %v2554_v5  ;;  %v3101_v14 = vpop.f32.mrb[127].mxu1 }
 0x2a4   : > { %v5917_v10 = vld [vmem:[%s6243_s18 + $0x7c0] ss:$16 sps:$4 sm:$0xff]   ;;  %v5918_v14 = vld [vmem:[%s6243_s18 + $0x7c8] ss:$16 sps:$4 sm:$0xff]  }
 0x2a5   : > { %2766 = vmatmul.mubr.bf16.gmra.mrb[232].mxu0 %v5893_v2  ;;  %3549 = vst [vmem:[#allocation2 + $0x1f0] sm:$0xff] %v3421_v12  ;;  %v3422_v15 = vadd.f32 %v3100_v13, %v412_v8  ;;  %3311 = vmatmul.mubr.bf16.gmra.mrb[232].mxu1 %v5894_v6 }
 0x2a6   : > { %2773 = vmatprep.mubr.bf16.mxu0 %v5895_v7  ;;  %3318 = vmatprep.mubr.bf16.mxu1 %v5897_v11  ;;  %v419_v7 = vld [vmem:[#allocation2 + $0x230] sm:$0xff] }
 0x2a7   : > { %3550 = vst [vmem:[#allocation2 + $0x1f8] sm:$0xff] %v3422_v15  ;;  %v5919_v15 = vld [vmem:[%s6243_s18 + $0x7e4] ss:$16 sps:$4 sm:$0xff]  }
 0x2a8   : > { %v2559_v16 = vpop.f32.mrb[128].mxu0  ;;  %v3104_v18 = vpop.f32.mrb[128].mxu1 }
 0x2a9   : > { %v2561_v19 = vpop.f32.mrb[129].mxu0  ;;  %v3105_v21 = vadd.f32 %v3104_v18, %v2559_v16  ;;  %v3106_v22 = vpop.f32.mrb[129].mxu1  ;;  %v420_v16 = vld [vmem:[#allocation2 + $0x238] sm:$0xff] }
 0x2aa   : > { %v2562_v23 = vpop.f32.mrb[130].mxu0  ;;  %v3107_v27 = vpop.f32.mrb[130].mxu1  ;;  %v5921_v19 = vld [vmem:[%s6243_s18 + $0x7ec] ss:$16 sps:$4 sm:$0xff]  }
 0x2ab   : > { %v2564_v28 = vpop.f32.mrb[131].mxu0  ;;  %v3423_v30 = vadd.f32 %v3105_v21, %v413_v17  ;;  %v3108_v31 = vadd.f32 %v3107_v27, %v2562_v23  ;;  %v3109_v32 = vpop.f32.mrb[131].mxu1 }
 0x2ac   : > { %v5923_v28 = vld [vmem:[%s6243_s18 + $0x7e0] ss:$16 sps:$4 sm:$0xff]   ;;  %v5924_v32 = vld [vmem:[%s6243_s18 + $0x7e8] ss:$16 sps:$4 sm:$0xff]  }
 0x2ad   : > { %2774 = vmatmul.mubr.bf16.gmra.mrb[236].mxu0 %v5899_v20  ;;  %3551 = vst [vmem:[#allocation2 + $0x200] sm:$0xff] %v3423_v30  ;;  %v3424_v33 = vadd.f32 %v3108_v31, %v414_v26  ;;  %3319 = vmatmul.mubr.bf16.gmra.mrb[236].mxu1 %v5900_v24 }
 0x2ae   : > { %2781 = vmatprep.mubr.bf16.mxu0 %v5901_v25  ;;  %3326 = vmatprep.mubr.bf16.mxu1 %v5903_v29  ;;  %v421_v25 = vld [vmem:[#allocation2 + $0x240] sm:$0xff] }
 0x2af   : > { %3552 = vst [vmem:[#allocation2 + $0x208] sm:$0xff] %v3424_v33  ;;  %v422_v33 = vld [vmem:[#allocation2 + $0x248] sm:$0xff] }
 0x2b0   : > { %v2567_v34 = vpop.f32.mrb[132].mxu0  ;;  %v3112_v36 = vpop.f32.mrb[132].mxu1 }
 0x2b1   : > { %v2569_v37 = vpop.f32.mrb[133].mxu0  ;;  %v3113_v39 = vadd.f32 %v3112_v36, %v2567_v34  ;;  %v3114_v40 = vpop.f32.mrb[133].mxu1 }
 0x2b2   : > { %v2570_v41 = vpop.f32.mrb[134].mxu0  ;;  %v3115_v45 = vpop.f32.mrb[134].mxu1 }
 0x2b3   : > { %v2572_v46 = vpop.f32.mrb[135].mxu0  ;;  %v3425_v48 = vadd.f32 %v3113_v39, %v415_v35  ;;  %v3116_v49 = vadd.f32 %v3115_v45, %v2570_v41  ;;  %v3117_v50 = vpop.f32.mrb[135].mxu1  ;;  %v423_v41 = vld [vmem:[#allocation2 + $0x250] sm:$0xff] }
 0x2b5   : > { %2782 = vmatmul.mubr.bf16.gmra.mrb[240].mxu0 %v5905_v38  ;;  %3553 = vst [vmem:[#allocation2 + $0x210] sm:$0xff] %v3425_v48  ;;  %v3426_v51 = vadd.f32 %v3116_v49, %v416_v44  ;;  %3327 = vmatmul.mubr.bf16.gmra.mrb[240].mxu1 %v5906_v42 }
 0x2b6   : > { %2789 = vmatprep.mubr.bf16.mxu0 %v5907_v43  ;;  %3334 = vmatprep.mubr.bf16.mxu1 %v5909_v47  ;;  %v424_v47 = vld [vmem:[#allocation2 + $0x258] sm:$0xff] }
 0x2b7   : > { %3554 = vst [vmem:[#allocation2 + $0x218] sm:$0xff] %v3426_v51 }
 0x2b8   : > { %v2575_v52 = vpop.f32.mrb[136].mxu0  ;;  %v3120_v54 = vpop.f32.mrb[136].mxu1 }
 0x2b9   : > { %v2577_v55 = vpop.f32.mrb[137].mxu0  ;;  %v3121_v57 = vadd.f32 %v3120_v54, %v2575_v52  ;;  %v3122_v58 = vpop.f32.mrb[137].mxu1 }
 0x2ba   : > { %v2578_v59 = vpop.f32.mrb[138].mxu0  ;;  %v3123_v63 = vpop.f32.mrb[138].mxu1  ;;  %v425_v55 = vld [vmem:[#allocation2 + $0x260] sm:$0xff] }
 0x2bb   : > { %v2580_v0 = vpop.f32.mrb[139].mxu0  ;;  %v3427_v2 = vadd.f32 %v3121_v57, %v417_v53  ;;  %v3124_v3 = vadd.f32 %v3123_v63, %v2578_v59  ;;  %v3125_v4 = vpop.f32.mrb[139].mxu1 }
 0x2bd   : > { %2790 = vmatmul.mubr.bf16.gmra.mrb[244].mxu0 %v5911_v56  ;;  %3555 = vst [vmem:[#allocation2 + $0x220] sm:$0xff] %v3427_v2  ;;  %v3428_v5 = vadd.f32 %v3124_v3, %v418_v62  ;;  %3335 = vmatmul.mubr.bf16.gmra.mrb[244].mxu1 %v5912_v60 }
 0x2be   : > { %2797 = vmatprep.mubr.bf16.mxu0 %v5913_v61  ;;  %3342 = vmatprep.mubr.bf16.mxu1 %v5915_v1  ;;  %v426_v61 = vld [vmem:[#allocation2 + $0x268] sm:$0xff] }
 0x2bf   : > { %3556 = vst [vmem:[#allocation2 + $0x228] sm:$0xff] %v3428_v5  ;;  %v427_v5 = vld [vmem:[#allocation2 + $0x270] sm:$0xff] }
 0x2c0   : > { %v2583_v6 = vpop.f32.mrb[140].mxu0  ;;  %v3128_v8 = vpop.f32.mrb[140].mxu1 }
 0x2c1   : > { %v2585_v9 = vpop.f32.mrb[141].mxu0  ;;  %v3129_v11 = vadd.f32 %v3128_v8, %v2583_v6  ;;  %v3130_v12 = vpop.f32.mrb[141].mxu1 }
 0x2c2   : > { %v2586_v13 = vpop.f32.mrb[142].mxu0  ;;  %v3131_v17 = vpop.f32.mrb[142].mxu1 }
 0x2c3   : > { %v2588_v18 = vpop.f32.mrb[143].mxu0  ;;  %v3429_v20 = vadd.f32 %v3129_v11, %v419_v7  ;;  %v3132_v21 = vadd.f32 %v3131_v17, %v2586_v13  ;;  %v3133_v22 = vpop.f32.mrb[143].mxu1  ;;  %v428_v11 = vld [vmem:[#allocation2 + $0x278] sm:$0xff] }
 0x2c5   : > { %2798 = vmatmul.mubr.bf16.gmra.mrb[248].mxu0 %v5917_v10  ;;  %3557 = vst [vmem:[#allocation2 + $0x230] sm:$0xff] %v3429_v20  ;;  %v3430_v23 = vadd.f32 %v3132_v21, %v420_v16  ;;  %3343 = vmatmul.mubr.bf16.gmra.mrb[248].mxu1 %v5918_v14 }
 0x2c6   : > { %2805 = vmatprep.mubr.bf16.mxu0 %v5919_v15  ;;  %3350 = vmatprep.mubr.bf16.mxu1 %v5921_v19  ;;  %v429_v19 = vld [vmem:[#allocation2 + $0x280] sm:$0xff] }
 0x2c7   : > { %3558 = vst [vmem:[#allocation2 + $0x238] sm:$0xff] %v3430_v23 }
 0x2c8   : > { %v2591_v24 = vpop.f32.mrb[144].mxu0  ;;  %v3136_v26 = vpop.f32.mrb[144].mxu1 }
 0x2c9   : > { %v2593_v27 = vpop.f32.mrb[145].mxu0  ;;  %v3137_v29 = vadd.f32 %v3136_v26, %v2591_v24  ;;  %v3138_v30 = vpop.f32.mrb[145].mxu1 }
 0x2ca   : > { %v2594_v31 = vpop.f32.mrb[146].mxu0  ;;  %v3139_v34 = vpop.f32.mrb[146].mxu1 }
 0x2cb   : > { %v2596_v35 = vpop.f32.mrb[147].mxu0  ;;  %v3431_v36 = vadd.f32 %v3137_v29, %v421_v25  ;;  %v3140_v37 = vadd.f32 %v3139_v34, %v2594_v31  ;;  %v3141_v38 = vpop.f32.mrb[147].mxu1  ;;  %v430_v25 = vld [vmem:[#allocation2 + $0x288] sm:$0xff] }
 0x2cd   : > { %2806 = vmatmul.mubr.bf16.gmra.mrb[252].mxu0 %v5923_v28  ;;  %3559 = vst [vmem:[#allocation2 + $0x240] sm:$0xff] %v3431_v36  ;;  %v3432_v39 = vadd.f32 %v3140_v37, %v422_v33  ;;  %3351 = vmatmul.mubr.bf16.gmra.mrb[252].mxu1 %v5924_v32  ;;  %v431_v33 = vld [vmem:[#allocation2 + $0x290] sm:$0xff] }
 0x2cf   : > { %3560 = vst [vmem:[#allocation2 + $0x248] sm:$0xff] %v3432_v39  ;;  %v432_v39 = vld [vmem:[#allocation2 + $0x298] sm:$0xff] }
 0x2d0   : > { %v2599_v40 = vpop.f32.mrb[148].mxu0  ;;  %v3144_v42 = vpop.f32.mrb[148].mxu1 }
 0x2d1   : > { %v2601_v43 = vpop.f32.mrb[149].mxu0  ;;  %v3145_v44 = vadd.f32 %v3144_v42, %v2599_v40  ;;  %v3146_v45 = vpop.f32.mrb[149].mxu1 }
 0x2d2   : > { %v2602_v46 = vpop.f32.mrb[150].mxu0  ;;  %v3147_v48 = vpop.f32.mrb[150].mxu1 }
 0x2d3   : > { %v2604_v49 = vpop.f32.mrb[151].mxu0  ;;  %v3433_v50 = vadd.f32 %v3145_v44, %v423_v41  ;;  %v3148_v51 = vadd.f32 %v3147_v48, %v2602_v46  ;;  %v3149_v52 = vpop.f32.mrb[151].mxu1 }
 0x2d5   : > { %3561 = vst [vmem:[#allocation2 + $0x250] sm:$0xff] %v3433_v50  ;;  %v3434_v53 = vadd.f32 %v3148_v51, %v424_v47  ;;  %v433_v47 = vld [vmem:[#allocation2 + $0x2a0] sm:$0xff] }
 0x2d7   : > { %3562 = vst [vmem:[#allocation2 + $0x258] sm:$0xff] %v3434_v53  ;;  %v434_v53 = vld [vmem:[#allocation2 + $0x2a8] sm:$0xff] }
 0x2d8   : > { %v2607_v54 = vpop.f32.mrb[152].mxu0  ;;  %v3152_v56 = vpop.f32.mrb[152].mxu1 }
 0x2d9   : > { %v2609_v57 = vpop.f32.mrb[153].mxu0  ;;  %v3153_v58 = vadd.f32 %v3152_v56, %v2607_v54  ;;  %v3154_v59 = vpop.f32.mrb[153].mxu1 }
 0x2da   : > { %v2610_v60 = vpop.f32.mrb[154].mxu0  ;;  %v3155_v62 = vpop.f32.mrb[154].mxu1 }
 0x2db   : > { %v2612_v63 = vpop.f32.mrb[155].mxu0  ;;  %v3435_v0 = vadd.f32 %v3153_v58, %v425_v55  ;;  %v3156_v1 = vadd.f32 %v3155_v62, %v2610_v60  ;;  %v3157_v2 = vpop.f32.mrb[155].mxu1 }
 0x2dd   : > { %3563 = vst [vmem:[#allocation2 + $0x260] sm:$0xff] %v3435_v0  ;;  %v3436_v3 = vadd.f32 %v3156_v1, %v426_v61  ;;  %v435_v61 = vld [vmem:[#allocation2 + $0x2b0] sm:$0xff] }
 0x2df   : > { %3564 = vst [vmem:[#allocation2 + $0x268] sm:$0xff] %v3436_v3  ;;  %v436_v3 = vld [vmem:[#allocation2 + $0x2b8] sm:$0xff] }
 0x2e0   : > { %v2615_v4 = vpop.f32.mrb[156].mxu0  ;;  %v3160_v6 = vpop.f32.mrb[156].mxu1 }
 0x2e1   : > { %v2617_v7 = vpop.f32.mrb[157].mxu0  ;;  %v3161_v8 = vadd.f32 %v3160_v6, %v2615_v4  ;;  %v3162_v9 = vpop.f32.mrb[157].mxu1 }
 0x2e2   : > { %v2618_v10 = vpop.f32.mrb[158].mxu0  ;;  %v3163_v12 = vpop.f32.mrb[158].mxu1 }
 0x2e3   : > { %v2620_v13 = vpop.f32.mrb[159].mxu0  ;;  %v3437_v14 = vadd.f32 %v3161_v8, %v427_v5  ;;  %v3164_v15 = vadd.f32 %v3163_v12, %v2618_v10  ;;  %v3165_v16 = vpop.f32.mrb[159].mxu1 }
 0x2e5   : > { %3565 = vst [vmem:[#allocation2 + $0x270] sm:$0xff] %v3437_v14  ;;  %v3438_v17 = vadd.f32 %v3164_v15, %v428_v11  ;;  %v437_v11 = vld [vmem:[#allocation2 + $0x2c0] sm:$0xff] }
 0x2e7   : > { %3566 = vst [vmem:[#allocation2 + $0x278] sm:$0xff] %v3438_v17  ;;  %v438_v17 = vld [vmem:[#allocation2 + $0x2c8] sm:$0xff] }
 0x2e8   : > { %v2623_v18 = vpop.f32.mrb[160].mxu0  ;;  %v3168_v20 = vpop.f32.mrb[160].mxu1 }
 0x2e9   : > { %v2625_v21 = vpop.f32.mrb[161].mxu0  ;;  %v3169_v22 = vadd.f32 %v3168_v20, %v2623_v18  ;;  %v3170_v23 = vpop.f32.mrb[161].mxu1 }
 0x2ea   : > { %v2626_v24 = vpop.f32.mrb[162].mxu0  ;;  %v3171_v26 = vpop.f32.mrb[162].mxu1 }
 0x2eb   : > { %v2628_v27 = vpop.f32.mrb[163].mxu0  ;;  %v3439_v28 = vadd.f32 %v3169_v22, %v429_v19  ;;  %v3172_v29 = vadd.f32 %v3171_v26, %v2626_v24  ;;  %v3173_v30 = vpop.f32.mrb[163].mxu1 }
 0x2ed   : > { %3567 = vst [vmem:[#allocation2 + $0x280] sm:$0xff] %v3439_v28  ;;  %v3440_v31 = vadd.f32 %v3172_v29, %v430_v25  ;;  %v439_v25 = vld [vmem:[#allocation2 + $0x2d0] sm:$0xff] }
 0x2ef   : > { %3568 = vst [vmem:[#allocation2 + $0x288] sm:$0xff] %v3440_v31  ;;  %v440_v31 = vld [vmem:[#allocation2 + $0x2d8] sm:$0xff] }
 0x2f0   : > { %v2631_v32 = vpop.f32.mrb[164].mxu0  ;;  %v3176_v34 = vpop.f32.mrb[164].mxu1 }
 0x2f1   : > { %v2633_v35 = vpop.f32.mrb[165].mxu0  ;;  %v3177_v36 = vadd.f32 %v3176_v34, %v2631_v32  ;;  %v3178_v37 = vpop.f32.mrb[165].mxu1 }
 0x2f2   : > { %v2634_v38 = vpop.f32.mrb[166].mxu0  ;;  %v3179_v40 = vpop.f32.mrb[166].mxu1 }
 0x2f3   : > { %v2636_v41 = vpop.f32.mrb[167].mxu0  ;;  %v3441_v42 = vadd.f32 %v3177_v36, %v431_v33  ;;  %v3180_v43 = vadd.f32 %v3179_v40, %v2634_v38  ;;  %v3181_v44 = vpop.f32.mrb[167].mxu1 }
 0x2f5   : > { %3569 = vst [vmem:[#allocation2 + $0x290] sm:$0xff] %v3441_v42  ;;  %v3442_v45 = vadd.f32 %v3180_v43, %v432_v39  ;;  %v441_v39 = vld [vmem:[#allocation2 + $0x2e0] sm:$0xff] }
 0x2f7   : > { %3570 = vst [vmem:[#allocation2 + $0x298] sm:$0xff] %v3442_v45  ;;  %v442_v45 = vld [vmem:[#allocation2 + $0x2e8] sm:$0xff] }
 0x2f8   : > { %v2639_v46 = vpop.f32.mrb[168].mxu0  ;;  %v3184_v48 = vpop.f32.mrb[168].mxu1 }
 0x2f9   : > { %v2641_v49 = vpop.f32.mrb[169].mxu0  ;;  %v3185_v50 = vadd.f32 %v3184_v48, %v2639_v46  ;;  %v3186_v51 = vpop.f32.mrb[169].mxu1 }
 0x2fa   : > { %v2642_v52 = vpop.f32.mrb[170].mxu0  ;;  %v3187_v54 = vpop.f32.mrb[170].mxu1 }
 0x2fb   : > { %v2644_v55 = vpop.f32.mrb[171].mxu0  ;;  %v3443_v56 = vadd.f32 %v3185_v50, %v433_v47  ;;  %v3188_v57 = vadd.f32 %v3187_v54, %v2642_v52  ;;  %v3189_v58 = vpop.f32.mrb[171].mxu1 }
 0x2fd   : > { %3571 = vst [vmem:[#allocation2 + $0x2a0] sm:$0xff] %v3443_v56  ;;  %v3444_v59 = vadd.f32 %v3188_v57, %v434_v53  ;;  %v443_v53 = vld [vmem:[#allocation2 + $0x2f0] sm:$0xff] }
 0x2ff   : > { %3572 = vst [vmem:[#allocation2 + $0x2a8] sm:$0xff] %v3444_v59  ;;  %v444_v59 = vld [vmem:[#allocation2 + $0x2f8] sm:$0xff] }
 0x300   : > { %v2647_v60 = vpop.f32.mrb[172].mxu0  ;;  %v3192_v62 = vpop.f32.mrb[172].mxu1 }
 0x301   : > { %v2649_v63 = vpop.f32.mrb[173].mxu0  ;;  %v3193_v0 = vadd.f32 %v3192_v62, %v2647_v60  ;;  %v3194_v1 = vpop.f32.mrb[173].mxu1 }
 0x302   : > { %v2650_v2 = vpop.f32.mrb[174].mxu0  ;;  %v3195_v4 = vpop.f32.mrb[174].mxu1 }
 0x303   : > { %v2652_v5 = vpop.f32.mrb[175].mxu0  ;;  %v3445_v6 = vadd.f32 %v3193_v0, %v435_v61  ;;  %v3196_v7 = vadd.f32 %v3195_v4, %v2650_v2  ;;  %v3197_v8 = vpop.f32.mrb[175].mxu1 }
 0x305   : > { %3573 = vst [vmem:[#allocation2 + $0x2b0] sm:$0xff] %v3445_v6  ;;  %v3446_v9 = vadd.f32 %v3196_v7, %v436_v3  ;;  %v445_v3 = vld [vmem:[#allocation2 + $0x300] sm:$0xff] }
 0x307   : > { %3574 = vst [vmem:[#allocation2 + $0x2b8] sm:$0xff] %v3446_v9  ;;  %v446_v9 = vld [vmem:[#allocation2 + $0x308] sm:$0xff] }
 0x308   : > { %v2655_v10 = vpop.f32.mrb[176].mxu0  ;;  %v3200_v12 = vpop.f32.mrb[176].mxu1 }
 0x309   : > { %v2657_v13 = vpop.f32.mrb[177].mxu0  ;;  %v3201_v14 = vadd.f32 %v3200_v12, %v2655_v10  ;;  %v3202_v15 = vpop.f32.mrb[177].mxu1 }
 0x30a   : > { %v2658_v16 = vpop.f32.mrb[178].mxu0  ;;  %v3203_v18 = vpop.f32.mrb[178].mxu1 }
 0x30b   : > { %v2660_v19 = vpop.f32.mrb[179].mxu0  ;;  %v3447_v20 = vadd.f32 %v3201_v14, %v437_v11  ;;  %v3204_v21 = vadd.f32 %v3203_v18, %v2658_v16  ;;  %v3205_v22 = vpop.f32.mrb[179].mxu1 }
 0x30d   : > { %3575 = vst [vmem:[#allocation2 + $0x2c0] sm:$0xff] %v3447_v20  ;;  %v3448_v23 = vadd.f32 %v3204_v21, %v438_v17  ;;  %v447_v17 = vld [vmem:[#allocation2 + $0x310] sm:$0xff] }
 0x30f   : > { %3576 = vst [vmem:[#allocation2 + $0x2c8] sm:$0xff] %v3448_v23  ;;  %v448_v23 = vld [vmem:[#allocation2 + $0x318] sm:$0xff] }
 0x310   : > { %v2663_v24 = vpop.f32.mrb[180].mxu0  ;;  %v3208_v26 = vpop.f32.mrb[180].mxu1 }
 0x311   : > { %v2665_v27 = vpop.f32.mrb[181].mxu0  ;;  %v3209_v28 = vadd.f32 %v3208_v26, %v2663_v24  ;;  %v3210_v29 = vpop.f32.mrb[181].mxu1 }
 0x312   : > { %v2666_v30 = vpop.f32.mrb[182].mxu0  ;;  %v3211_v32 = vpop.f32.mrb[182].mxu1 }
 0x313   : > { %v2668_v33 = vpop.f32.mrb[183].mxu0  ;;  %v3449_v34 = vadd.f32 %v3209_v28, %v439_v25  ;;  %v3212_v35 = vadd.f32 %v3211_v32, %v2666_v30  ;;  %v3213_v36 = vpop.f32.mrb[183].mxu1 }
 0x315   : > { %3577 = vst [vmem:[#allocation2 + $0x2d0] sm:$0xff] %v3449_v34  ;;  %v3450_v37 = vadd.f32 %v3212_v35, %v440_v31  ;;  %v449_v31 = vld [vmem:[#allocation2 + $0x320] sm:$0xff] }
 0x317   : > { %3578 = vst [vmem:[#allocation2 + $0x2d8] sm:$0xff] %v3450_v37  ;;  %v450_v37 = vld [vmem:[#allocation2 + $0x328] sm:$0xff] }
 0x318   : > { %v2671_v38 = vpop.f32.mrb[184].mxu0  ;;  %v3216_v40 = vpop.f32.mrb[184].mxu1 }
 0x319   : > { %v2673_v41 = vpop.f32.mrb[185].mxu0  ;;  %v3217_v42 = vadd.f32 %v3216_v40, %v2671_v38  ;;  %v3218_v43 = vpop.f32.mrb[185].mxu1 }
 0x31a   : > { %v2674_v44 = vpop.f32.mrb[186].mxu0  ;;  %v3219_v46 = vpop.f32.mrb[186].mxu1 }
 0x31b   : > { %v2676_v47 = vpop.f32.mrb[187].mxu0  ;;  %v3451_v48 = vadd.f32 %v3217_v42, %v441_v39  ;;  %v3220_v49 = vadd.f32 %v3219_v46, %v2674_v44  ;;  %v3221_v50 = vpop.f32.mrb[187].mxu1 }
 0x31d   : > { %3579 = vst [vmem:[#allocation2 + $0x2e0] sm:$0xff] %v3451_v48  ;;  %v3452_v51 = vadd.f32 %v3220_v49, %v442_v45  ;;  %v451_v45 = vld [vmem:[#allocation2 + $0x330] sm:$0xff] }
 0x31f   : > { %3580 = vst [vmem:[#allocation2 + $0x2e8] sm:$0xff] %v3452_v51  ;;  %v452_v51 = vld [vmem:[#allocation2 + $0x338] sm:$0xff] }
 0x320   : > { %v2679_v52 = vpop.f32.mrb[188].mxu0  ;;  %v3224_v54 = vpop.f32.mrb[188].mxu1 }
 0x321   : > { %v2681_v55 = vpop.f32.mrb[189].mxu0  ;;  %v3225_v56 = vadd.f32 %v3224_v54, %v2679_v52  ;;  %v3226_v57 = vpop.f32.mrb[189].mxu1 }
 0x322   : > { %v2682_v58 = vpop.f32.mrb[190].mxu0  ;;  %v3227_v60 = vpop.f32.mrb[190].mxu1 }
 0x323   : > { %v2684_v61 = vpop.f32.mrb[191].mxu0  ;;  %v3453_v62 = vadd.f32 %v3225_v56, %v443_v53  ;;  %v3228_v63 = vadd.f32 %v3227_v60, %v2682_v58  ;;  %v3229_v0 = vpop.f32.mrb[191].mxu1 }
 0x325   : > { %3581 = vst [vmem:[#allocation2 + $0x2f0] sm:$0xff] %v3453_v62  ;;  %v3454_v1 = vadd.f32 %v3228_v63, %v444_v59  ;;  %v453_v59 = vld [vmem:[#allocation2 + $0x340] sm:$0xff] }
 0x327   : > { %3582 = vst [vmem:[#allocation2 + $0x2f8] sm:$0xff] %v3454_v1  ;;  %v454_v1 = vld [vmem:[#allocation2 + $0x348] sm:$0xff] }
 0x328   : > { %v2687_v2 = vpop.f32.mrb[192].mxu0  ;;  %v3232_v4 = vpop.f32.mrb[192].mxu1 }
 0x329   : > { %v2689_v5 = vpop.f32.mrb[193].mxu0  ;;  %v3233_v6 = vadd.f32 %v3232_v4, %v2687_v2  ;;  %v3234_v7 = vpop.f32.mrb[193].mxu1 }
 0x32a   : > { %v2690_v8 = vpop.f32.mrb[194].mxu0  ;;  %v3235_v10 = vpop.f32.mrb[194].mxu1 }
 0x32b   : > { %v2692_v11 = vpop.f32.mrb[195].mxu0  ;;  %v3455_v12 = vadd.f32 %v3233_v6, %v445_v3  ;;  %v3236_v13 = vadd.f32 %v3235_v10, %v2690_v8  ;;  %v3237_v14 = vpop.f32.mrb[195].mxu1 }
 0x32d   : > { %3583 = vst [vmem:[#allocation2 + $0x300] sm:$0xff] %v3455_v12  ;;  %v3456_v15 = vadd.f32 %v3236_v13, %v446_v9  ;;  %v455_v9 = vld [vmem:[#allocation2 + $0x350] sm:$0xff] }
 0x32f   : > { %3584 = vst [vmem:[#allocation2 + $0x308] sm:$0xff] %v3456_v15  ;;  %v456_v15 = vld [vmem:[#allocation2 + $0x358] sm:$0xff] }
 0x330   : > { %v2695_v16 = vpop.f32.mrb[196].mxu0  ;;  %v3240_v18 = vpop.f32.mrb[196].mxu1 }
 0x331   : > { %v2697_v19 = vpop.f32.mrb[197].mxu0  ;;  %v3241_v20 = vadd.f32 %v3240_v18, %v2695_v16  ;;  %v3242_v21 = vpop.f32.mrb[197].mxu1 }
 0x332   : > { %v2698_v22 = vpop.f32.mrb[198].mxu0  ;;  %v3243_v24 = vpop.f32.mrb[198].mxu1 }
 0x333   : > { %v2700_v25 = vpop.f32.mrb[199].mxu0  ;;  %v3457_v26 = vadd.f32 %v3241_v20, %v447_v17  ;;  %v3244_v27 = vadd.f32 %v3243_v24, %v2698_v22  ;;  %v3245_v28 = vpop.f32.mrb[199].mxu1 }
 0x335   : > { %3585 = vst [vmem:[#allocation2 + $0x310] sm:$0xff] %v3457_v26  ;;  %v3458_v29 = vadd.f32 %v3244_v27, %v448_v23  ;;  %v457_v23 = vld [vmem:[#allocation2 + $0x360] sm:$0xff] }
 0x337   : > { %3586 = vst [vmem:[#allocation2 + $0x318] sm:$0xff] %v3458_v29  ;;  %v458_v29 = vld [vmem:[#allocation2 + $0x368] sm:$0xff] }
 0x338   : > { %v2703_v30 = vpop.f32.mrb[200].mxu0  ;;  %v3248_v32 = vpop.f32.mrb[200].mxu1 }
 0x339   : > { %v2705_v33 = vpop.f32.mrb[201].mxu0  ;;  %v3249_v34 = vadd.f32 %v3248_v32, %v2703_v30  ;;  %v3250_v35 = vpop.f32.mrb[201].mxu1 }
 0x33a   : > { %v2706_v36 = vpop.f32.mrb[202].mxu0  ;;  %v3251_v38 = vpop.f32.mrb[202].mxu1 }
 0x33b   : > { %v2708_v39 = vpop.f32.mrb[203].mxu0  ;;  %v3459_v40 = vadd.f32 %v3249_v34, %v449_v31  ;;  %v3252_v41 = vadd.f32 %v3251_v38, %v2706_v36  ;;  %v3253_v42 = vpop.f32.mrb[203].mxu1 }
 0x33d   : > { %3587 = vst [vmem:[#allocation2 + $0x320] sm:$0xff] %v3459_v40  ;;  %v3460_v43 = vadd.f32 %v3252_v41, %v450_v37  ;;  %v459_v37 = vld [vmem:[#allocation2 + $0x370] sm:$0xff] }
 0x33f   : > { %3588 = vst [vmem:[#allocation2 + $0x328] sm:$0xff] %v3460_v43  ;;  %v460_v43 = vld [vmem:[#allocation2 + $0x378] sm:$0xff] }
 0x340   : > { %v2711_v44 = vpop.f32.mrb[204].mxu0  ;;  %v3256_v46 = vpop.f32.mrb[204].mxu1 }
 0x341   : > { %v2713_v47 = vpop.f32.mrb[205].mxu0  ;;  %v3257_v48 = vadd.f32 %v3256_v46, %v2711_v44  ;;  %v3258_v49 = vpop.f32.mrb[205].mxu1 }
 0x342   : > { %v2714_v50 = vpop.f32.mrb[206].mxu0  ;;  %v3259_v52 = vpop.f32.mrb[206].mxu1 }
 0x343   : > { %v2716_v53 = vpop.f32.mrb[207].mxu0  ;;  %v3461_v54 = vadd.f32 %v3257_v48, %v451_v45  ;;  %v3260_v55 = vadd.f32 %v3259_v52, %v2714_v50  ;;  %v3261_v56 = vpop.f32.mrb[207].mxu1 }
 0x345   : > { %3589 = vst [vmem:[#allocation2 + $0x330] sm:$0xff] %v3461_v54  ;;  %v3462_v57 = vadd.f32 %v3260_v55, %v452_v51  ;;  %v461_v51 = vld [vmem:[#allocation2 + $0x380] sm:$0xff] }
 0x347   : > { %3590 = vst [vmem:[#allocation2 + $0x338] sm:$0xff] %v3462_v57  ;;  %v462_v57 = vld [vmem:[#allocation2 + $0x388] sm:$0xff] }
 0x348   : > { %v2719_v58 = vpop.f32.mrb[208].mxu0  ;;  %v3264_v60 = vpop.f32.mrb[208].mxu1 }
 0x349   : > { %v2721_v61 = vpop.f32.mrb[209].mxu0  ;;  %v3265_v62 = vadd.f32 %v3264_v60, %v2719_v58  ;;  %v3266_v63 = vpop.f32.mrb[209].mxu1 }
 0x34a   : > { %v2722_v0 = vpop.f32.mrb[210].mxu0  ;;  %v3267_v2 = vpop.f32.mrb[210].mxu1 }
 0x34b   : > { %v2724_v3 = vpop.f32.mrb[211].mxu0  ;;  %v3463_v4 = vadd.f32 %v3265_v62, %v453_v59  ;;  %v3268_v5 = vadd.f32 %v3267_v2, %v2722_v0  ;;  %v3269_v6 = vpop.f32.mrb[211].mxu1 }
 0x34d   : > { %3591 = vst [vmem:[#allocation2 + $0x340] sm:$0xff] %v3463_v4  ;;  %v3464_v7 = vadd.f32 %v3268_v5, %v454_v1  ;;  %v463_v1 = vld [vmem:[#allocation2 + $0x390] sm:$0xff] }
 0x34f   : > { %3592 = vst [vmem:[#allocation2 + $0x348] sm:$0xff] %v3464_v7  ;;  %v464_v7 = vld [vmem:[#allocation2 + $0x398] sm:$0xff] }
 0x350   : > { %v2727_v8 = vpop.f32.mrb[212].mxu0  ;;  %v3272_v10 = vpop.f32.mrb[212].mxu1 }
 0x351   : > { %v2729_v11 = vpop.f32.mrb[213].mxu0  ;;  %v3273_v12 = vadd.f32 %v3272_v10, %v2727_v8  ;;  %v3274_v13 = vpop.f32.mrb[213].mxu1 }
 0x352   : > { %v2730_v14 = vpop.f32.mrb[214].mxu0  ;;  %v3275_v16 = vpop.f32.mrb[214].mxu1 }
 0x353   : > { %v2732_v17 = vpop.f32.mrb[215].mxu0  ;;  %v3465_v18 = vadd.f32 %v3273_v12, %v455_v9  ;;  %v3276_v19 = vadd.f32 %v3275_v16, %v2730_v14  ;;  %v3277_v20 = vpop.f32.mrb[215].mxu1 }
 0x355   : > { %3593 = vst [vmem:[#allocation2 + $0x350] sm:$0xff] %v3465_v18  ;;  %v3466_v21 = vadd.f32 %v3276_v19, %v456_v15  ;;  %v465_v15 = vld [vmem:[#allocation2 + $0x3a0] sm:$0xff] }
 0x357   : > { %3594 = vst [vmem:[#allocation2 + $0x358] sm:$0xff] %v3466_v21  ;;  %v466_v21 = vld [vmem:[#allocation2 + $0x3a8] sm:$0xff] }
 0x358   : > { %v2735_v22 = vpop.f32.mrb[216].mxu0  ;;  %v3280_v24 = vpop.f32.mrb[216].mxu1 }
 0x359   : > { %v2737_v25 = vpop.f32.mrb[217].mxu0  ;;  %v3281_v26 = vadd.f32 %v3280_v24, %v2735_v22  ;;  %v3282_v27 = vpop.f32.mrb[217].mxu1 }
 0x35a   : > { %v2738_v28 = vpop.f32.mrb[218].mxu0  ;;  %v3283_v30 = vpop.f32.mrb[218].mxu1 }
 0x35b   : > { %v2740_v31 = vpop.f32.mrb[219].mxu0  ;;  %v3467_v32 = vadd.f32 %v3281_v26, %v457_v23  ;;  %v3284_v33 = vadd.f32 %v3283_v30, %v2738_v28  ;;  %v3285_v34 = vpop.f32.mrb[219].mxu1 }
 0x35d   : > { %3595 = vst [vmem:[#allocation2 + $0x360] sm:$0xff] %v3467_v32  ;;  %v3468_v35 = vadd.f32 %v3284_v33, %v458_v29  ;;  %v467_v29 = vld [vmem:[#allocation2 + $0x3b0] sm:$0xff] }
 0x35f   : > { %3596 = vst [vmem:[#allocation2 + $0x368] sm:$0xff] %v3468_v35  ;;  %v468_v35 = vld [vmem:[#allocation2 + $0x3b8] sm:$0xff] }
 0x360   : > { %v2743_v36 = vpop.f32.mrb[220].mxu0  ;;  %v3288_v38 = vpop.f32.mrb[220].mxu1 }
 0x361   : > { %v2745_v39 = vpop.f32.mrb[221].mxu0  ;;  %v3289_v40 = vadd.f32 %v3288_v38, %v2743_v36  ;;  %v3290_v41 = vpop.f32.mrb[221].mxu1 }
 0x362   : > { %v2746_v42 = vpop.f32.mrb[222].mxu0  ;;  %v3291_v44 = vpop.f32.mrb[222].mxu1 }
 0x363   : > { %v2748_v45 = vpop.f32.mrb[223].mxu0  ;;  %v3469_v46 = vadd.f32 %v3289_v40, %v459_v37  ;;  %v3292_v47 = vadd.f32 %v3291_v44, %v2746_v42  ;;  %v3293_v48 = vpop.f32.mrb[223].mxu1 }
 0x365   : > { %3597 = vst [vmem:[#allocation2 + $0x370] sm:$0xff] %v3469_v46  ;;  %v3470_v49 = vadd.f32 %v3292_v47, %v460_v43  ;;  %v469_v43 = vld [vmem:[#allocation2 + $0x3c0] sm:$0xff] }
 0x367   : > { %3598 = vst [vmem:[#allocation2 + $0x378] sm:$0xff] %v3470_v49  ;;  %v470_v49 = vld [vmem:[#allocation2 + $0x3c8] sm:$0xff] }
 0x368   : > { %v2751_v50 = vpop.f32.mrb[224].mxu0  ;;  %v3296_v52 = vpop.f32.mrb[224].mxu1 }
 0x369   : > { %v2753_v53 = vpop.f32.mrb[225].mxu0  ;;  %v3297_v54 = vadd.f32 %v3296_v52, %v2751_v50  ;;  %v3298_v55 = vpop.f32.mrb[225].mxu1 }
 0x36a   : > { %v2754_v56 = vpop.f32.mrb[226].mxu0  ;;  %v3299_v58 = vpop.f32.mrb[226].mxu1 }
 0x36b   : > { %v2756_v59 = vpop.f32.mrb[227].mxu0  ;;  %v3471_v60 = vadd.f32 %v3297_v54, %v461_v51  ;;  %v3300_v61 = vadd.f32 %v3299_v58, %v2754_v56  ;;  %v3301_v62 = vpop.f32.mrb[227].mxu1 }
 0x36d   : > { %3599 = vst [vmem:[#allocation2 + $0x380] sm:$0xff] %v3471_v60  ;;  %v3472_v63 = vadd.f32 %v3300_v61, %v462_v57  ;;  %v471_v57 = vld [vmem:[#allocation2 + $0x3d0] sm:$0xff] }
 0x36f   : > { %3600 = vst [vmem:[#allocation2 + $0x388] sm:$0xff] %v3472_v63  ;;  %v472_v63 = vld [vmem:[#allocation2 + $0x3d8] sm:$0xff] }
 0x370   : > { %v2759_v0 = vpop.f32.mrb[228].mxu0  ;;  %v3304_v2 = vpop.f32.mrb[228].mxu1 }
 0x371   : > { %v2761_v3 = vpop.f32.mrb[229].mxu0  ;;  %v3305_v4 = vadd.f32 %v3304_v2, %v2759_v0  ;;  %v3306_v5 = vpop.f32.mrb[229].mxu1 }
 0x372   : > { %v2762_v6 = vpop.f32.mrb[230].mxu0  ;;  %v3307_v8 = vpop.f32.mrb[230].mxu1 }
 0x373   : > { %v2764_v9 = vpop.f32.mrb[231].mxu0  ;;  %v3473_v10 = vadd.f32 %v3305_v4, %v463_v1  ;;  %v3308_v11 = vadd.f32 %v3307_v8, %v2762_v6  ;;  %v3309_v12 = vpop.f32.mrb[231].mxu1 }
 0x375   : > { %3601 = vst [vmem:[#allocation2 + $0x390] sm:$0xff] %v3473_v10  ;;  %v3474_v13 = vadd.f32 %v3308_v11, %v464_v7  ;;  %v473_v7 = vld [vmem:[#allocation2 + $0x3e0] sm:$0xff] }
 0x377   : > { %3602 = vst [vmem:[#allocation2 + $0x398] sm:$0xff] %v3474_v13  ;;  %v474_v13 = vld [vmem:[#allocation2 + $0x3e8] sm:$0xff] }
 0x378   : > { %v2767_v14 = vpop.f32.mrb[232].mxu0  ;;  %v3312_v16 = vpop.f32.mrb[232].mxu1 }
 0x379   : > { %v2769_v17 = vpop.f32.mrb[233].mxu0  ;;  %v3313_v18 = vadd.f32 %v3312_v16, %v2767_v14  ;;  %v3314_v19 = vpop.f32.mrb[233].mxu1 }
 0x37a   : > { %v2770_v20 = vpop.f32.mrb[234].mxu0  ;;  %v3315_v22 = vpop.f32.mrb[234].mxu1 }
 0x37b   : > { %v2772_v23 = vpop.f32.mrb[235].mxu0  ;;  %v3475_v24 = vadd.f32 %v3313_v18, %v465_v15  ;;  %v3316_v25 = vadd.f32 %v3315_v22, %v2770_v20  ;;  %v3317_v26 = vpop.f32.mrb[235].mxu1 }
 0x37d   : > { %3603 = vst [vmem:[#allocation2 + $0x3a0] sm:$0xff] %v3475_v24  ;;  %v3476_v27 = vadd.f32 %v3316_v25, %v466_v21  ;;  %v475_v21 = vld [vmem:[#allocation2 + $0x3f0] sm:$0xff] }
 0x37f   : > { %3604 = vst [vmem:[#allocation2 + $0x3a8] sm:$0xff] %v3476_v27  ;;  %v476_v27 = vld [vmem:[#allocation2 + $0x3f8] sm:$0xff] }
 0x380   : > { %v2775_v28 = vpop.f32.mrb[236].mxu0  ;;  %v3320_v30 = vpop.f32.mrb[236].mxu1 }
 0x381   : > { %v2777_v31 = vpop.f32.mrb[237].mxu0  ;;  %v3321_v32 = vadd.f32 %v3320_v30, %v2775_v28  ;;  %v3322_v33 = vpop.f32.mrb[237].mxu1 }
 0x382   : > { %v2778_v34 = vpop.f32.mrb[238].mxu0  ;;  %v3323_v36 = vpop.f32.mrb[238].mxu1 }
 0x383   : > { %v2780_v37 = vpop.f32.mrb[239].mxu0  ;;  %v3477_v38 = vadd.f32 %v3321_v32, %v467_v29  ;;  %v3324_v39 = vadd.f32 %v3323_v36, %v2778_v34  ;;  %v3325_v40 = vpop.f32.mrb[239].mxu1  ;;  %v3619_v34 = vld [vmem:[#allocation2] sm:$0xff] (!%p4787_p12)  ;;  %v3621_v36 = vld [vmem:[#allocation2 + $0x10] sm:$0xff] (!%p4787_p12) }
 0x384   : > { %v3624_v40 = vld [vmem:[#allocation2 + $0x28] sm:$0xff] (!%p4787_p12) }
 0x385   : > { %3605 = vst [vmem:[#allocation2 + $0x3b0] sm:$0xff] %v3477_v38  ;;  %v3478_v41 = vadd.f32 %v3324_v39, %v468_v35  ;;  %v3620_v35 = vld [vmem:[#allocation2 + $0x8] sm:$0xff] (!%p4787_p12)  ;;  %v3622_v38 = vld [vmem:[#allocation2 + $0x18] sm:$0xff] (!%p4787_p12)  ;;  %v3623_v39 = vld [vmem:[#allocation2 + $0x20] sm:$0xff] (!%p4787_p12) }
 0x386   : > { %v5053_v37 = vpack.c.bf16 (!%p4787_p12), %v3620_v35, %v3619_v34  ;;  %v3662_v34 = vld [vmem:[#allocation2 + $0x158] sm:$0xff] (!%p4787_p12)  ;;  %v3663_v35 = vld [vmem:[#allocation2 + $0x160] sm:$0xff] (!%p4787_p12) }
 0x387   : > { %3606 = vst [vmem:[#allocation2 + $0x3b8] sm:$0xff] %v3478_v41  ;;  %v5058_v41 = vpack.c.bf16 (!%p4787_p12), %v3622_v38, %v3621_v36  ;;  %v3665_v38 = vld [vmem:[#allocation2 + $0x170] sm:$0xff] (!%p4787_p12) }
 0x388   : > { %v2783_v42 = vpop.f32.mrb[240].mxu0  ;;  %v3328_v44 = vpop.f32.mrb[240].mxu1  ;;  %5054 = vst [vmem:[#allocation8] sm:$0xff] (!%p4787_p12), %v5053_v37   ;;  %v3664_v37 = vld [vmem:[#allocation2 + $0x168] sm:$0xff] (!%p4787_p12) }
 0x389   : > { %v2785_v45 = vpop.f32.mrb[241].mxu0  ;;  %v3329_v46 = vadd.f32 %v3328_v44, %v2783_v42  ;;  %v3330_v47 = vpop.f32.mrb[241].mxu1  ;;  %v5063_v42 = vpack.c.bf16 (!%p4787_p12), %v3624_v40, %v3623_v39  ;;  %v3626_v44 = vld [vmem:[#allocation2 + $0x38] sm:$0xff] (!%p4787_p12)  ;;  %5370 = vst [vmem:[#allocation8 + $0x8] sm:$0xff] (!%p4787_p12), %v5058_v41   ;;  %v5163_v40 = vpack.c.bf16 (!%p4787_p12), %v3664_v37, %v3663_v35  ;;  %v3707_v37 = vld [vmem:[#allocation2 + $0x2c0] sm:$0xff] (!%p4787_p12) }
 0x38a   : > { %v2786_v48 = vpop.f32.mrb[242].mxu0  ;;  %v3331_v50 = vpop.f32.mrb[242].mxu1  ;;  %v3627_v45 = vld [vmem:[#allocation2 + $0x40] sm:$0xff] (!%p4787_p12)  ;;  %v3628_v47 = vld [vmem:[#allocation2 + $0x48] sm:$0xff] (!%p4787_p12)  ;;  %v3666_v39 = vld [vmem:[#allocation2 + $0x178] sm:$0xff] (!%p4787_p12) }
 0x38b   : > { %v2788_v51 = vpop.f32.mrb[243].mxu0  ;;  %v3479_v52 = vadd.f32 %v3329_v46, %v469_v43  ;;  %v3332_v53 = vadd.f32 %v3331_v50, %v2786_v48  ;;  %v3333_v54 = vpop.f32.mrb[243].mxu1  ;;  %v3625_v43 = vld [vmem:[#allocation2 + $0x30] sm:$0xff] (!%p4787_p12)  ;;  %5371 = vst [vmem:[#allocation8 + $0x10] sm:$0xff] (!%p4787_p12), %v5063_v42   ;;  %v5073_v50 = vpack.c.bf16 (!%p4787_p12), %v3628_v47, %v3627_v45  ;;  %v5168_v41 = vpack.c.bf16 (!%p4787_p12), %v3666_v39, %v3665_v38  ;;  %v3667_v42 = vld [vmem:[#allocation2 + $0x180] sm:$0xff] (!%p4787_p12)  ;;  %v3708_v38 = vld [vmem:[#allocation2 + $0x2c8] sm:$0xff] (!%p4787_p12) }
 0x38c   : > { %v5068_v46 = vpack.c.bf16 (!%p4787_p12), %v3626_v44, %v3625_v43  ;;  %v3629_v48 = vld [vmem:[#allocation2 + $0x50] sm:$0xff] (!%p4787_p12)  ;;  %v3668_v43 = vld [vmem:[#allocation2 + $0x188] sm:$0xff] (!%p4787_p12)  ;;  %v3671_v47 = vld [vmem:[#allocation2 + $0x1a0] sm:$0xff] (!%p4787_p12)  ;;  %5391 = vst [vmem:[#allocation8 + $0xb0] sm:$0xff] (!%p4787_p12), %v5163_v40   ;;  %v5273_v40 = vpack.c.bf16 (!%p4787_p12), %v3708_v38, %v3707_v37 }
 0x38d   : > { %3607 = vst [vmem:[#allocation2 + $0x3c0] sm:$0xff] %v3479_v52  ;;  %v3480_v55 = vadd.f32 %v3332_v53, %v470_v49  ;;  %v3630_v49 = vld [vmem:[#allocation2 + $0x58] sm:$0xff] (!%p4787_p12)  ;;  %v3631_v52 = vld [vmem:[#allocation2 + $0x60] sm:$0xff] (!%p4787_p12)  ;;  %v3632_v53 = vld [vmem:[#allocation2 + $0x68] sm:$0xff] (!%p4787_p12)  ;;  %v5173_v45 = vpack.c.bf16 (!%p4787_p12), %v3668_v43, %v3667_v42 }
 0x38e   : > { %v5078_v51 = vpack.c.bf16 (!%p4787_p12), %v3630_v49, %v3629_v48  ;;  %v3633_v54 = vld [vmem:[#allocation2 + $0x70] sm:$0xff] (!%p4787_p12)  ;;  %5372 = vst [vmem:[#allocation8 + $0x18] sm:$0xff] (!%p4787_p12), %v5068_v46   ;;  %5373 = vst [vmem:[#allocation8 + $0x20] sm:$0xff] (!%p4787_p12), %v5073_v50   ;;  %v3670_v46 = vld [vmem:[#allocation2 + $0x198] sm:$0xff] (!%p4787_p12) }
 0x38f   : > { %3608 = vst [vmem:[#allocation2 + $0x3c8] sm:$0xff] %v3480_v55  ;;  %v5083_v55 = vpack.c.bf16 (!%p4787_p12), %v3632_v53, %v3631_v52  ;;  %v3669_v44 = vld [vmem:[#allocation2 + $0x190] sm:$0xff] (!%p4787_p12)  ;;  %v3672_v48 = vld [vmem:[#allocation2 + $0x1a8] sm:$0xff] (!%p4787_p12)  ;;  %5392 = vst [vmem:[#allocation8 + $0xb8] sm:$0xff] (!%p4787_p12), %v5168_v41  }
 0x390   : > { %v2791_v56 = vpop.f32.mrb[244].mxu0  ;;  %v3336_v58 = vpop.f32.mrb[244].mxu1  ;;  %5374 = vst [vmem:[#allocation8 + $0x28] sm:$0xff] (!%p4787_p12), %v5078_v51   ;;  %v5178_v49 = vpack.c.bf16 (!%p4787_p12), %v3670_v46, %v3669_v44  ;;  %v5183_v50 = vpack.c.bf16 (!%p4787_p12), %v3672_v48, %v3671_v47  ;;  %v3673_v51 = vld [vmem:[#allocation2 + $0x1b0] sm:$0xff] (!%p4787_p12)  ;;  %v3674_v52 = vld [vmem:[#allocation2 + $0x1b8] sm:$0xff] (!%p4787_p12)  ;;  %v3675_v53 = vld [vmem:[#allocation2 + $0x1c0] sm:$0xff] (!%p4787_p12) }
 0x391   : > { %v2793_v59 = vpop.f32.mrb[245].mxu0  ;;  %v3337_v60 = vadd.f32 %v3336_v58, %v2791_v56  ;;  %v3338_v61 = vpop.f32.mrb[245].mxu1  ;;  %v3634_v56 = vld [vmem:[#allocation2 + $0x78] sm:$0xff] (!%p4787_p12)  ;;  %v3636_v58 = vld [vmem:[#allocation2 + $0x88] sm:$0xff] (!%p4787_p12)  ;;  %5375 = vst [vmem:[#allocation8 + $0x30] sm:$0xff] (!%p4787_p12), %v5083_v55   ;;  %5393 = vst [vmem:[#allocation8 + $0xc0] sm:$0xff] (!%p4787_p12), %v5173_v45  }
 0x392   : > { %v2794_v62 = vpop.f32.mrb[246].mxu0  ;;  %v3339_v0 = vpop.f32.mrb[246].mxu1  ;;  %v5088_v59 = vpack.c.bf16 (!%p4787_p12), %v3634_v56, %v3633_v54  ;;  %v3637_v61 = vld [vmem:[#allocation2 + $0x90] sm:$0xff] (!%p4787_p12)  ;;  %v5188_v54 = vpack.c.bf16 (!%p4787_p12), %v3674_v52, %v3673_v51  ;;  %v3676_v55 = vld [vmem:[#allocation2 + $0x1c8] sm:$0xff] (!%p4787_p12)  ;;  %5394 = vst [vmem:[#allocation8 + $0xc8] sm:$0xff] (!%p4787_p12), %v5178_v49   ;;  %5395 = vst [vmem:[#allocation8 + $0xd0] sm:$0xff] (!%p4787_p12), %v5183_v50  }
 0x393   : > { %v2796_v1 = vpop.f32.mrb[247].mxu0  ;;  %v3481_v2 = vadd.f32 %v3337_v60, %v471_v57  ;;  %v3340_v3 = vadd.f32 %v3339_v0, %v2794_v62  ;;  %v3341_v4 = vpop.f32.mrb[247].mxu1  ;;  %v3635_v57 = vld [vmem:[#allocation2 + $0x80] sm:$0xff] (!%p4787_p12)  ;;  %v3638_v62 = vld [vmem:[#allocation2 + $0x98] sm:$0xff] (!%p4787_p12)  ;;  %v3677_v56 = vld [vmem:[#allocation2 + $0x1d0] sm:$0xff] (!%p4787_p12)  ;;  %5413 = vst [vmem:[#allocation8 + $0x160] sm:$0xff] (!%p4787_p12), %v5273_v40  }
 0x394   : > { %v5093_v60 = vpack.c.bf16 (!%p4787_p12), %v3636_v58, %v3635_v57  ;;  %v5098_v0 = vpack.c.bf16 (!%p4787_p12), %v3638_v62, %v3637_v61  ;;  %v3640_v1 = vld [vmem:[#allocation2 + $0xa8] sm:$0xff] (!%p4787_p12)  ;;  %5376 = vst [vmem:[#allocation8 + $0x38] sm:$0xff] (!%p4787_p12), %v5088_v59   ;;  %v3678_v57 = vld [vmem:[#allocation2 + $0x1d8] sm:$0xff] (!%p4787_p12)  ;;  %v5193_v58 = vpack.c.bf16 (!%p4787_p12), %v3676_v55, %v3675_v53  ;;  %v3681_v62 = vld [vmem:[#allocation2 + $0x1f0] sm:$0xff] (!%p4787_p12) }
 0x395   : > { %3609 = vst [vmem:[#allocation2 + $0x3d0] sm:$0xff] %v3481_v2  ;;  %v3482_v5 = vadd.f32 %v3340_v3, %v472_v63  ;;  %v3639_v63 = vld [vmem:[#allocation2 + $0xa0] sm:$0xff] (!%p4787_p12)  ;;  %v3641_v2 = vld [vmem:[#allocation2 + $0xb0] sm:$0xff] (!%p4787_p12)  ;;  %v3642_v3 = vld [vmem:[#allocation2 + $0xb8] sm:$0xff] (!%p4787_p12)  ;;  %v5198_v59 = vpack.c.bf16 (!%p4787_p12), %v3678_v57, %v3677_v56 }
 0x396   : > { %5377 = vst [vmem:[#allocation8 + $0x40] sm:$0xff] (!%p4787_p12), %v5093_v60   ;;  %v5103_v4 = vpack.c.bf16 (!%p4787_p12), %v3640_v1, %v3639_v63  ;;  %5378 = vst [vmem:[#allocation8 + $0x48] sm:$0xff] (!%p4787_p12), %v5098_v0   ;;  %v3679_v60 = vld [vmem:[#allocation2 + $0x1e0] sm:$0xff] (!%p4787_p12)  ;;  %v3680_v61 = vld [vmem:[#allocation2 + $0x1e8] sm:$0xff] (!%p4787_p12) }
 0x397   : > { %3610 = vst [vmem:[#allocation2 + $0x3d8] sm:$0xff] %v3482_v5  ;;  %v5108_v5 = vpack.c.bf16 (!%p4787_p12), %v3642_v3, %v3641_v2  ;;  %5396 = vst [vmem:[#allocation8 + $0xd8] sm:$0xff] (!%p4787_p12), %v5188_v54   ;;  %v5203_v63 = vpack.c.bf16 (!%p4787_p12), %v3680_v61, %v3679_v60  ;;  %v3682_v0 = vld [vmem:[#allocation2 + $0x1f8] sm:$0xff] (!%p4787_p12)  ;;  %v3683_v1 = vld [vmem:[#allocation2 + $0x200] sm:$0xff] (!%p4787_p12) }
 0x398   : > { %v2799_v6 = vpop.f32.mrb[248].mxu0  ;;  %v3344_v8 = vpop.f32.mrb[248].mxu1  ;;  %5379 = vst [vmem:[#allocation8 + $0x50] sm:$0xff] (!%p4787_p12), %v5103_v4   ;;  %v3684_v2 = vld [vmem:[#allocation2 + $0x208] sm:$0xff] (!%p4787_p12)  ;;  %5397 = vst [vmem:[#allocation8 + $0xe0] sm:$0xff] (!%p4787_p12), %v5193_v58   ;;  %v5208_v3 = vpack.c.bf16 (!%p4787_p12), %v3682_v0, %v3681_v62  ;;  %v3709_v41 = vld [vmem:[#allocation2 + $0x2d0] sm:$0xff] (!%p4787_p12) }
 0x399   : > { %v2801_v9 = vpop.f32.mrb[249].mxu0  ;;  %v3345_v10 = vadd.f32 %v3344_v8, %v2799_v6  ;;  %v3346_v11 = vpop.f32.mrb[249].mxu1  ;;  %v3643_v6 = vld [vmem:[#allocation2 + $0xc0] sm:$0xff] (!%p4787_p12)  ;;  %v3645_v8 = vld [vmem:[#allocation2 + $0xd0] sm:$0xff] (!%p4787_p12)  ;;  %5380 = vst [vmem:[#allocation8 + $0x58] sm:$0xff] (!%p4787_p12), %v5108_v5   ;;  %5398 = vst [vmem:[#allocation8 + $0xe8] sm:$0xff] (!%p4787_p12), %v5198_v59   ;;  %v5213_v4 = vpack.c.bf16 (!%p4787_p12), %v3684_v2, %v3683_v1 }
 0x39a   : > { %v2802_v12 = vpop.f32.mrb[250].mxu0  ;;  %v3347_v14 = vpop.f32.mrb[250].mxu1  ;;  %v3647_v11 = vld [vmem:[#allocation2 + $0xe0] sm:$0xff] (!%p4787_p12)  ;;  %v3685_v5 = vld [vmem:[#allocation2 + $0x210] sm:$0xff] (!%p4787_p12)  ;;  %5399 = vst [vmem:[#allocation8 + $0xf0] sm:$0xff] (!%p4787_p12), %v5203_v63   ;;  %5400 = vst [vmem:[#allocation8 + $0xf8] sm:$0xff] (!%p4787_p12), %v5208_v3  }
 0x39b   : > { %v2804_v15 = vpop.f32.mrb[251].mxu0  ;;  %v3483_v16 = vadd.f32 %v3345_v10, %v473_v7  ;;  %v3348_v17 = vadd.f32 %v3347_v14, %v2802_v12  ;;  %v3349_v18 = vpop.f32.mrb[251].mxu1  ;;  %v3644_v7 = vld [vmem:[#allocation2 + $0xc8] sm:$0xff] (!%p4787_p12)  ;;  %v3646_v10 = vld [vmem:[#allocation2 + $0xd8] sm:$0xff] (!%p4787_p12)  ;;  %5401 = vst [vmem:[#allocation8 + $0x100] sm:$0xff] (!%p4787_p12), %v5213_v4   ;;  %v3711_v43 = vld [vmem:[#allocation2 + $0x2e0] sm:$0xff] (!%p4787_p12) }
 0x39c   : > { %v5113_v9 = vpack.c.bf16 (!%p4787_p12), %v3644_v7, %v3643_v6  ;;  %v3648_v12 = vld [vmem:[#allocation2 + $0xe8] sm:$0xff] (!%p4787_p12)  ;;  %v3649_v15 = vld [vmem:[#allocation2 + $0xf0] sm:$0xff] (!%p4787_p12)  ;;  %v3686_v6 = vld [vmem:[#allocation2 + $0x218] sm:$0xff] (!%p4787_p12) }
 0x39d   : > { %3611 = vst [vmem:[#allocation2 + $0x3e0] sm:$0xff] %v3483_v16  ;;  %v3484_v19 = vadd.f32 %v3348_v17, %v474_v13  ;;  %v5118_v13 = vpack.c.bf16 (!%p4787_p12), %v3646_v10, %v3645_v8  ;;  %v5123_v14 = vpack.c.bf16 (!%p4787_p12), %v3648_v12, %v3647_v11  ;;  %v3650_v16 = vld [vmem:[#allocation2 + $0xf8] sm:$0xff] (!%p4787_p12)  ;;  %v3651_v17 = vld [vmem:[#allocation2 + $0x100] sm:$0xff] (!%p4787_p12)  ;;  %v5218_v8 = vpack.c.bf16 (!%p4787_p12), %v3686_v6, %v3685_v5  ;;  %v3689_v10 = vld [vmem:[#allocation2 + $0x230] sm:$0xff] (!%p4787_p12) }
 0x39e   : > { %5381 = vst [vmem:[#allocation8 + $0x60] sm:$0xff] (!%p4787_p12), %v5113_v9   ;;  %v5128_v18 = vpack.c.bf16 (!%p4787_p12), %v3650_v16, %v3649_v15  ;;  %v3687_v7 = vld [vmem:[#allocation2 + $0x220] sm:$0xff] (!%p4787_p12)  ;;  %v3688_v9 = vld [vmem:[#allocation2 + $0x228] sm:$0xff] (!%p4787_p12)  ;;  %v3690_v11 = vld [vmem:[#allocation2 + $0x238] sm:$0xff] (!%p4787_p12) }
 0x39f   : > { %3612 = vst [vmem:[#allocation2 + $0x3e8] sm:$0xff] %v3484_v19  ;;  %v3652_v19 = vld [vmem:[#allocation2 + $0x108] sm:$0xff] (!%p4787_p12)  ;;  %5382 = vst [vmem:[#allocation8 + $0x68] sm:$0xff] (!%p4787_p12), %v5118_v13   ;;  %v5223_v12 = vpack.c.bf16 (!%p4787_p12), %v3688_v9, %v3687_v7  ;;  %v5228_v13 = vpack.c.bf16 (!%p4787_p12), %v3690_v11, %v3689_v10  ;;  %v3693_v16 = vld [vmem:[#allocation2 + $0x250] sm:$0xff] (!%p4787_p12) }
 0x3a0   : > { %v2807_v20 = vpop.f32.mrb[252].mxu0  ;;  %v3352_v22 = vpop.f32.mrb[252].mxu1  ;;  %5383 = vst [vmem:[#allocation8 + $0x70] sm:$0xff] (!%p4787_p12), %v5123_v14   ;;  %5384 = vst [vmem:[#allocation8 + $0x78] sm:$0xff] (!%p4787_p12), %v5128_v18   ;;  %v3691_v14 = vld [vmem:[#allocation2 + $0x240] sm:$0xff] (!%p4787_p12)  ;;  %v3692_v15 = vld [vmem:[#allocation2 + $0x248] sm:$0xff] (!%p4787_p12) }
 0x3a1   : > { %v2809_v23 = vpop.f32.mrb[253].mxu0  ;;  %v3353_v24 = vadd.f32 %v3352_v22, %v2807_v20  ;;  %v3354_v25 = vpop.f32.mrb[253].mxu1  ;;  %3618 = sbr.rel (%p4787_p12) target bundleno = 956 (0x3bc), region = 44  ;;  %v3653_v20 = vld [vmem:[#allocation2 + $0x110] sm:$0xff] (!%p4787_p12)  ;;  %v5133_v22 = vpack.c.bf16 (!%p4787_p12), %v3652_v19, %v3651_v17  ;;  %5402 = vst [vmem:[#allocation8 + $0x108] sm:$0xff] (!%p4787_p12), %v5218_v8   ;;  %v5233_v17 = vpack.c.bf16 (!%p4787_p12), %v3692_v15, %v3691_v14  ;;  %v3694_v18 = vld [vmem:[#allocation2 + $0x258] sm:$0xff] (!%p4787_p12) }
 0x3a2   : > { %v2810_v26 = vpop.f32.mrb[254].mxu0  ;;  %v3355_v28 = vpop.f32.mrb[254].mxu1  ;;  %v3656_v25 = vld [vmem:[#allocation2 + $0x128] sm:$0xff] (!%p4787_p12)  ;;  %v3695_v19 = vld [vmem:[#allocation2 + $0x260] sm:$0xff] (!%p4787_p12)  ;;  %5403 = vst [vmem:[#allocation8 + $0x110] sm:$0xff] (!%p4787_p12), %v5223_v12   ;;  %5404 = vst [vmem:[#allocation8 + $0x118] sm:$0xff] (!%p4787_p12), %v5228_v13  }
 0x3a3   : > { %v2812_v29 = vpop.f32.mrb[255].mxu0  ;;  %v3485_v30 = vadd.f32 %v3353_v24, %v475_v21  ;;  %v3356_v31 = vadd.f32 %v3355_v28, %v2810_v26  ;;  %v3357_v32 = vpop.f32.mrb[255].mxu1  ;;  %v3654_v21 = vld [vmem:[#allocation2 + $0x118] sm:$0xff] (!%p4787_p12)  ;;  %v3655_v24 = vld [vmem:[#allocation2 + $0x120] sm:$0xff] (!%p4787_p12)  ;;  %v3657_v26 = vld [vmem:[#allocation2 + $0x130] sm:$0xff] (!%p4787_p12)  ;;  %5385 = vst [vmem:[#allocation8 + $0x80] sm:$0xff] (!%p4787_p12), %v5133_v22  }
 0x3a4   : > { %v5138_v23 = vpack.c.bf16 (!%p4787_p12), %v3654_v21, %v3653_v20  ;;  %v3658_v28 = vld [vmem:[#allocation2 + $0x138] sm:$0xff] (!%p4787_p12)  ;;  %v3659_v29 = vld [vmem:[#allocation2 + $0x140] sm:$0xff] (!%p4787_p12)  ;;  %v3696_v20 = vld [vmem:[#allocation2 + $0x268] sm:$0xff] (!%p4787_p12)  ;;  %v5238_v21 = vpack.c.bf16 (!%p4787_p12), %v3694_v18, %v3693_v16  ;;  %5405 = vst [vmem:[#allocation8 + $0x120] sm:$0xff] (!%p4787_p12), %v5233_v17  }
 0x3a5   : > { %3613 = vst [vmem:[#allocation2 + $0x3f0] sm:$0xff] %v3485_v30  ;;  %v3486_v33 = vadd.f32 %v3356_v31, %v476_v27  ;;  %v5143_v27 = vpack.c.bf16 (!%p4787_p12), %v3656_v25, %v3655_v24  ;;  %v3660_v30 = vld [vmem:[#allocation2 + $0x148] sm:$0xff] (!%p4787_p12)  ;;  %v5148_v31 = vpack.c.bf16 (!%p4787_p12), %v3658_v28, %v3657_v26  ;;  %v5243_v22 = vpack.c.bf16 (!%p4787_p12), %v3696_v20, %v3695_v19  ;;  %v3698_v24 = vld [vmem:[#allocation2 + $0x278] sm:$0xff] (!%p4787_p12)  ;;  %v3699_v25 = vld [vmem:[#allocation2 + $0x280] sm:$0xff] (!%p4787_p12) }
 0x3a6   : > { %5386 = vst [vmem:[#allocation8 + $0x88] sm:$0xff] (!%p4787_p12), %v5138_v23   ;;  %v5153_v32 = vpack.c.bf16 (!%p4787_p12), %v3660_v30, %v3659_v29  ;;  %v3697_v23 = vld [vmem:[#allocation2 + $0x270] sm:$0xff] (!%p4787_p12)  ;;  %v3702_v29 = vld [vmem:[#allocation2 + $0x298] sm:$0xff] (!%p4787_p12)  ;;  %5406 = vst [vmem:[#allocation8 + $0x128] sm:$0xff] (!%p4787_p12), %v5238_v21  }
 0x3a7   : > { %3614 = vst [vmem:[#allocation2 + $0x3f8] sm:$0xff] %v3486_v33  ;;  %v3661_v33 = vld [vmem:[#allocation2 + $0x150] sm:$0xff] (!%p4787_p12)  ;;  %5387 = vst [vmem:[#allocation8 + $0x90] sm:$0xff] (!%p4787_p12), %v5143_v27   ;;  %v5248_v26 = vpack.c.bf16 (!%p4787_p12), %v3698_v24, %v3697_v23  ;;  %v3700_v27 = vld [vmem:[#allocation2 + $0x288] sm:$0xff] (!%p4787_p12) }
 0x3a8   : > { %v5158_v36 = vpack.c.bf16 %v3662_v34, %v3661_v33  ;;  %5388 = vst [vmem:[#allocation8 + $0x98] sm:$0xff] %v5148_v31   ;;  %5389 = vst [vmem:[#allocation8 + $0xa0] sm:$0xff] %v5153_v32   ;;  %v3701_v28 = vld [vmem:[#allocation2 + $0x290] sm:$0xff]  ;;  %v5253_v30 = vpack.c.bf16 %v3700_v27, %v3699_v25  ;;  %v3703_v32 = vld [vmem:[#allocation2 + $0x2a0] sm:$0xff] }
 0x3a9   : > { %5407 = vst [vmem:[#allocation8 + $0x130] sm:$0xff] %v5243_v22   ;;  %v5258_v31 = vpack.c.bf16 %v3702_v29, %v3701_v28  ;;  %v3704_v33 = vld [vmem:[#allocation2 + $0x2a8] sm:$0xff]  ;;  %v3705_v34 = vld [vmem:[#allocation2 + $0x2b0] sm:$0xff]  ;;  %5408 = vst [vmem:[#allocation8 + $0x138] sm:$0xff] %v5248_v26  }
 0x3aa   : > { %5390 = vst [vmem:[#allocation8 + $0xa8] sm:$0xff] %v5158_v36   ;;  %v5263_v35 = vpack.c.bf16 %v3704_v33, %v3703_v32  ;;  %v3706_v36 = vld [vmem:[#allocation2 + $0x2b8] sm:$0xff]  ;;  %5409 = vst [vmem:[#allocation8 + $0x140] sm:$0xff] %v5253_v30   ;;  %v3712_v45 = vld [vmem:[#allocation2 + $0x2e8] sm:$0xff] }
 0x3ab   : > { %5410 = vst [vmem:[#allocation8 + $0x148] sm:$0xff] %v5258_v31   ;;  %v5268_v39 = vpack.c.bf16 %v3706_v36, %v3705_v34  ;;  %v3710_v42 = vld [vmem:[#allocation2 + $0x2d8] sm:$0xff]  ;;  %v3713_v46 = vld [vmem:[#allocation2 + $0x2f0] sm:$0xff]  ;;  %v5283_v48 = vpack.c.bf16 %v3712_v45, %v3711_v43  ;;  %v3715_v50 = vld [vmem:[#allocation2 + $0x300] sm:$0xff] }
 0x3ac   : > { %5411 = vst [vmem:[#allocation8 + $0x150] sm:$0xff] %v5263_v35   ;;  %v5278_v44 = vpack.c.bf16 %v3710_v42, %v3709_v41  ;;  %v3714_v47 = vld [vmem:[#allocation2 + $0x2f8] sm:$0xff]  ;;  %v3716_v51 = vld [vmem:[#allocation2 + $0x308] sm:$0xff]  ;;  %v3717_v52 = vld [vmem:[#allocation2 + $0x310] sm:$0xff] }
 0x3ad   : > { %5412 = vst [vmem:[#allocation8 + $0x158] sm:$0xff] %v5268_v39   ;;  %v5288_v49 = vpack.c.bf16 %v3714_v47, %v3713_v46  ;;  %v5293_v53 = vpack.c.bf16 %v3716_v51, %v3715_v50  ;;  %v3718_v54 = vld [vmem:[#allocation2 + $0x318] sm:$0xff]  ;;  %v3719_v55 = vld [vmem:[#allocation2 + $0x320] sm:$0xff]  ;;  %v3720_v56 = vld [vmem:[#allocation2 + $0x328] sm:$0xff] }
 0x3ae   : > { %5414 = vst [vmem:[#allocation8 + $0x168] sm:$0xff] %v5278_v44   ;;  %5415 = vst [vmem:[#allocation8 + $0x170] sm:$0xff] %v5283_v48   ;;  %v5298_v57 = vpack.c.bf16 %v3718_v54, %v3717_v52  ;;  %v5303_v58 = vpack.c.bf16 %v3720_v56, %v3719_v55  ;;  %v3721_v59 = vld [vmem:[#allocation2 + $0x330] sm:$0xff]  ;;  %v3722_v60 = vld [vmem:[#allocation2 + $0x338] sm:$0xff] }
 0x3af   : > { %5416 = vst [vmem:[#allocation8 + $0x178] sm:$0xff] %v5288_v49   ;;  %v3723_v61 = vld [vmem:[#allocation2 + $0x340] sm:$0xff]  ;;  %5417 = vst [vmem:[#allocation8 + $0x180] sm:$0xff] %v5293_v53   ;;  %v5308_v62 = vpack.c.bf16 %v3722_v60, %v3721_v59  ;;  %v3724_v63 = vld [vmem:[#allocation2 + $0x348] sm:$0xff] }
 0x3b0   : > { %v3725_v0 = vld [vmem:[#allocation2 + $0x350] sm:$0xff]  ;;  %v3726_v1 = vld [vmem:[#allocation2 + $0x358] sm:$0xff]  ;;  %5418 = vst [vmem:[#allocation8 + $0x188] sm:$0xff] %v5298_v57   ;;  %5419 = vst [vmem:[#allocation8 + $0x190] sm:$0xff] %v5303_v58   ;;  %v5313_v2 = vpack.c.bf16 %v3724_v63, %v3723_v61 }
 0x3b1   : > { %v5318_v3 = vpack.c.bf16 %v3726_v1, %v3725_v0  ;;  %v3727_v4 = vld [vmem:[#allocation2 + $0x360] sm:$0xff]  ;;  %v3728_v5 = vld [vmem:[#allocation2 + $0x368] sm:$0xff]  ;;  %v3729_v6 = vld [vmem:[#allocation2 + $0x370] sm:$0xff]  ;;  %5420 = vst [vmem:[#allocation8 + $0x198] sm:$0xff] %v5308_v62  }
 0x3b2   : > { %v5323_v7 = vpack.c.bf16 %v3728_v5, %v3727_v4  ;;  %v3730_v8 = vld [vmem:[#allocation2 + $0x378] sm:$0xff]  ;;  %v3731_v9 = vld [vmem:[#allocation2 + $0x380] sm:$0xff]  ;;  %v3732_v10 = vld [vmem:[#allocation2 + $0x388] sm:$0xff]  ;;  %5421 = vst [vmem:[#allocation8 + $0x1a0] sm:$0xff] %v5313_v2  }
 0x3b3   : > { %5422 = vst [vmem:[#allocation8 + $0x1a8] sm:$0xff] %v5318_v3   ;;  %v5328_v11 = vpack.c.bf16 %v3730_v8, %v3729_v6  ;;  %v5333_v12 = vpack.c.bf16 %v3732_v10, %v3731_v9  ;;  %v3733_v13 = vld [vmem:[#allocation2 + $0x390] sm:$0xff]  ;;  %v3734_v14 = vld [vmem:[#allocation2 + $0x398] sm:$0xff]  ;;  %v3735_v15 = vld [vmem:[#allocation2 + $0x3a0] sm:$0xff] }
 0x3b4   : > { %5423 = vst [vmem:[#allocation8 + $0x1b0] sm:$0xff] %v5323_v7   ;;  %v5338_v16 = vpack.c.bf16 %v3734_v14, %v3733_v13  ;;  %v3736_v17 = vld [vmem:[#allocation2 + $0x3a8] sm:$0xff]  ;;  %v3737_v18 = vld [vmem:[#allocation2 + $0x3b0] sm:$0xff]  ;;  %v3738_v19 = vld [vmem:[#allocation2 + $0x3b8] sm:$0xff] }
 0x3b5   : > { %5424 = vst [vmem:[#allocation8 + $0x1b8] sm:$0xff] %v5328_v11   ;;  %5425 = vst [vmem:[#allocation8 + $0x1c0] sm:$0xff] %v5333_v12   ;;  %v5343_v20 = vpack.c.bf16 %v3736_v17, %v3735_v15  ;;  %v5348_v21 = vpack.c.bf16 %v3738_v19, %v3737_v18  ;;  %v3739_v22 = vld [vmem:[#allocation2 + $0x3c0] sm:$0xff]  ;;  %v3740_v23 = vld [vmem:[#allocation2 + $0x3c8] sm:$0xff] }
 0x3b6   : > { %v3741_v24 = vld [vmem:[#allocation2 + $0x3d0] sm:$0xff]  ;;  %5426 = vst [vmem:[#allocation8 + $0x1c8] sm:$0xff] %v5338_v16   ;;  %v5353_v25 = vpack.c.bf16 %v3740_v23, %v3739_v22  ;;  %v3742_v26 = vld [vmem:[#allocation2 + $0x3d8] sm:$0xff]  ;;  %v3743_v27 = vld [vmem:[#allocation2 + $0x3e0] sm:$0xff] }
 0x3b7   : > { %v3744_v28 = vld [vmem:[#allocation2 + $0x3e8] sm:$0xff]  ;;  %5427 = vst [vmem:[#allocation8 + $0x1d0] sm:$0xff] %v5343_v20   ;;  %5428 = vst [vmem:[#allocation8 + $0x1d8] sm:$0xff] %v5348_v21   ;;  %v5358_v29 = vpack.c.bf16 %v3742_v26, %v3741_v24  ;;  %v3745_v31 = vld [vmem:[#allocation2 + $0x3f0] sm:$0xff] }
 0x3b8   : > { %v5363_v30 = vpack.c.bf16 %v3744_v28, %v3743_v27  ;;  %v3746_v32 = vld [vmem:[#allocation2 + $0x3f8] sm:$0xff]  ;;  %5429 = vst [vmem:[#allocation8 + $0x1e0] sm:$0xff] %v5353_v25  }
 0x3b9   : > { %v5368_v33 = vpack.c.bf16 %v3746_v32, %v3745_v31  ;;  %5430 = vst [vmem:[#allocation8 + $0x1e8] sm:$0xff] %v5358_v29  }
 0x3ba   : > { %5431 = vst [vmem:[#allocation8 + $0x1f0] sm:$0xff] %v5363_v30  }
 0x3bb   : > { %5432 = vst [vmem:[#allocation8 + $0x1f8] sm:$0xff] %v5368_v33  }
 0x3bc PF: > { %p6707_p4 = scmp.eq.s32.totalorder %s4486_s15, 1  ;;  %s6080_s20 = smov [#allocation8]  }
 0x3bd   : > { %s4396_s5 = sshll.u32 %s6080_s20, 4  ;;  %s4397_s5 = int_to_ptr.vmem [resolvable:$true] %s4396_s5 }
 0x3be   : > { %s5985_s8 = scalar_lea.vmem %s4397_s5, 8192  ;;  %p5992_p0 = scmp.lt.s32.totalorder %s4397_s5, %s4397_s5 }
 0x3bf   : > { %p5986_p8 = scmp.ne.s32.totalorder %s4397_s5, %s5985_s8  ;;  %p5993_p10 = scmp.lt.s32.totalorder %s5985_s8, %s5985_s8 }
 0x3c1   : > { %p5987_p2 = pnand %p5986_p8, %p6707_p4  ;;  %p5994_p5 = por %p5993_p10, %p5992_p0 }
 0x3c3   : > { %p5988_p3 = pneg %p5987_p2 }
 0x3c5   : > { %p5995_p6 = pnand %p5994_p5, %p5988_p3 }
 0x3c7   : > { %5998 = shalt.err (!%p5995_p6)
}
 0x3c8   : > { %s5999_s15 = scalar_lea.hbm %s6753_s2, 8192 }
 0x3c9   : > { %p6000_p11 = scmp.ne.s32.totalorder %s6753_s2, %s5999_s15  ;;  %p6005_p7 = scmp.lt.u32.totalorder %s5999_s15, %s6753_s2 }
 0x3cb   : > { %p6001_p13 = pnand %p6000_p11, %p6707_p4 }
 0x3cd   : > { %p6002_p1 = pneg %p6001_p13 }
 0x3cf   : > { %p6007_p9 = pnand %p6005_p7, %p6002_p1 }
 0x3d1   : > { %6010 = shalt.err (!%p6007_p9)
}
 0x3d2   : > { %s6081_s28 = smov 64   ;;  %s6082_s4 = smov 4  }
 0x3d3   : > { %5438 = dma.vmem_to_hbm [thread:$0]  (%p6707_p4), %s4397_s5, 8192, %s6753_s2, [#allocation5], %s6081_s28, %s6081_s28, %s6082_s4  }
 0x3d4   : > { %6044 = dma.done.wait (%p6707_p4), [#allocation5], 8192  }
 0x3d5   : > { %6046 = vsyncadd (%p6707_p4), [#allocation5], 4294959104 }
 0x3d6 PF: > { %s19_s14 = sadd.s32 1, %s6069_s14   ;;  %s6762_s9 = smov %s6053_s10 }
 0x3d7   : > { %p16_p12 = scmp.ge.s32.totalorder %s19_s14, 4   ;;  %s6763_s10 = smov %s6057_s11 }
 0x3d8   : > { %s6764_s11 = smov %s6149_s21  ;;  %s6765_s12 = smov %s6065_s13 }
 0x3d9   : > { %s6766_s13 = smov %s6768_s16  ;;  %18 = sbr.rel (!%p16_p12) target bundleno = 7 (0x7), region = 87 }
 0x3e0   :  { %4412 = vsyncpa [#allocation4], 1 }
 0x3e1   :  { %4414 = vsyncpa [#allocation4 + $0x1], 1 }
 0x3e2   :  { %4415 = vsyncpa [#allocation7], 1 }
 0x3e3   :  { %4417 = vsyncpa [#allocation7 + $0x1], 1 }
 0x3e4   :  { %4418 = vsyncpa [#allocation5], 1 }
 0x3e5   :  { %4420 = vsyncpa [#allocation5 + $0x1], 1 }

</bundles_post_ra>
